<compile_context>
chip_gen: v7x
topology: tpu7x:2x2x1
jax: 0.10.0
libtpu: 0.0.40
codegen_flags: <defaults>
</compile_context>

<pallas_src>
import functools

import jax
import jax.numpy as jnp
import numpy as np
from jax.experimental import pallas as pl
from jax.experimental.pallas import tpu as pltpu

EPS = 1e-5                 # BatchNorm2d default eps (batch statistics, training-mode semantics)
ACT_DTYPE = jnp.bfloat16   # activations / MXU inputs (accumulation stays f32)


def _tpu_budgets():
    """VMEM-capacity-aware budgets: bigger tiles on 128 MiB parts, tighter on v7x (64 MiB)."""
    try:
        cap = pltpu.get_tpu_info().vmem_capacity_bytes
    except Exception:
        cap = 64 * 1024 * 1024
    vmem_limit = min(int(cap * 0.45), 96 * 1024 * 1024)
    tile_budget = max(2 * 1024 * 1024, cap // 16)
    return vmem_limit, tile_budget


VMEM_LIMIT, TILE_BUDGET = _tpu_budgets()


def _cparams(sem):
    return pltpu.CompilerParams(dimension_semantics=sem, vmem_limit_bytes=VMEM_LIMIT)


def _pick_rows(total, unit, bytes_per_unit, budget):
    """Largest tile (rows = k*unit) with k | (total//unit), tile%8==0 or tile==total, and
    tile bytes <= budget.  Falls back to the *smallest* valid divisor (bounded tiles)."""
    n = total // unit
    valid = [k for k in range(1, n + 1)
             if n % k == 0 and ((k * unit) % 8 == 0 or k * unit == total)]
    if not valid:
        return total
    fit = [k for k in valid if k * bytes_per_unit <= budget]
    k = max(fit) if fit else min(valid)
    return k * unit


def _conv_pixel_bytes(n_inputs):
    """Conservative per-pixel-row VMEM estimate for conv pass 1 (lane-padded to 128)."""
    lane = 128
    per = n_inputs * (3 * 2 * 2 * lane    # 3 slab blocks, double-buffered, bf16
                      + 8 * 2 * lane)     # in-kernel shifted / activated temporaries
    per += 3 * 4 * lane                   # f32 acc + centered-diff temporaries
    per += 2 * 2 * lane                   # y output block, double-buffered
    return per


# ----------------------------- Pallas kernels ------------------------------

def _conv3x3_pass1_kernel(*refs, width, height, n_inputs, fuse_bn):
    """3x3 conv (padding=1) for one pixel-row tile.

    refs: for each input j: (prev_blk, cur_blk, next_blk) of shape (tm, Cin_j);
          then (scale, shift) if fuse_bn (BN+ReLU of the *previous* conv, fused here);
          then per-input weight (9, Cin_j, Cout); outputs: y (tm, Cout), stats (1, 2, Cout).
    dy halos come from the neighbouring (clamped) blocks; dx shifts are done in-kernel.
    """
    n_slab = 3 * n_inputs
    slab_refs = refs[:n_slab]
    idx = n_slab
    if fuse_bn:
        scale_ref, shift_ref = refs[idx], refs[idx + 1]
        idx += 2
    w_refs = refs[idx:idx + n_inputs]
    y_ref, stats_ref = refs[idx + n_inputs], refs[idx + n_inputs + 1]

    tm, cout = y_ref.shape
    wdt = width
    wh = width * height

    start = pl.program_id(0) * tm
    gpos = jax.lax.broadcasted_iota(jnp.int32, (tm, 1), 0) + start
    col = gpos % wdt
    pos = gpos % wh
    not_l = (col != 0).astype(ACT_DTYPE)                  # pixel has a left neighbour
    not_r = (col != (wdt - 1)).astype(ACT_DTYPE)          # pixel has a right neighbour
    not_top = (pos >= wdt).astype(ACT_DTYPE)              # pixel has a row above
    not_bot = (pos < wdt * (height - 1)).astype(ACT_DTYPE)  # pixel has a row below

    acc = jnp.zeros((tm, cout), jnp.float32)
    for j in range(n_inputs):
        xp = slab_refs[3 * j][...]
        xc = slab_refs[3 * j + 1][...]
        xn = slab_refs[3 * j + 2][...]
        if fuse_bn:
            sc = scale_ref[...]
            sh = shift_ref[...]

            def _act(t):
                return jnp.maximum(t.astype(jnp.float32) * sc + sh, 0.0).astype(ACT_DTYPE)

            xp, xc, xn = _act(xp), _act(xc), _act(xn)
        cin = xc.shape[1]

        # dy-shifted base slabs (halo rows from the neighbouring blocks, edge rows masked).
        if tm == wdt:
            up = xp * not_top
            dn = xn * not_bot
        else:
            up = jnp.concatenate([xp[tm - wdt:, :], xc[:tm - wdt, :]], axis=0) * not_top
            dn = jnp.concatenate([xc[wdt:, :], xn[:wdt, :]], axis=0) * not_bot

        w3 = w_refs[j]                         # (9, Cin_j, Cout)
        zrow = jnp.zeros((1, cin), ACT_DTYPE)
        t = 0
        for base in (up, xc, dn):              # dy = -1, 0, +1
            left = jnp.concatenate([zrow, base[:-1, :]], axis=0) * not_l
            right = jnp.concatenate([base[1:, :], zrow], axis=0) * not_r
            for tap in (left, base, right):    # dx = -1, 0, +1
                acc = acc + jnp.dot(tap, w3[t], preferred_element_type=jnp.float32)
                t += 1

    # Per-tile partial BN statistics: (sum, centered M2) -> combined outside (Welford).
    s = jnp.sum(acc, axis=0, keepdims=True)
    mean_t = s * (1.0 / tm)
    d = acc - mean_t
    m2 = jnp.sum(d * d, axis=0, keepdims=True)
    stats_ref[...] = jnp.concatenate([s, m2], axis=0)[None]
    y_ref[...] = acc.astype(y_ref.dtype)


def _bn_relu_kernel(y_ref, scale_ref, shift_ref, o_ref):
    y = y_ref[...].astype(jnp.float32)
    o_ref[...] = jnp.maximum(y * scale_ref[...] + shift_ref[...], 0.0).astype(o_ref.dtype)


def _bn_relu_conv1x1_kernel(y_ref, scale_ref, shift_ref, w_ref, b_ref, o_ref):
    # Fused BN+ReLU epilogue + final 1x1 conv, lane-dense: w is block-diagonal (W*C, W*OutC).
    a = jnp.maximum(y_ref[...].astype(jnp.float32) * scale_ref[...] + shift_ref[...], 0.0)
    o_ref[...] = (jnp.dot(a.astype(w_ref.dtype), w_ref[...],
                          preferred_element_type=jnp.float32) + b_ref[...]).astype(o_ref.dtype)


def _matmul_bias_kernel(x_ref, w_ref, b_ref, o_ref):
    o_ref[...] = (jnp.dot(x_ref[...], w_ref[...], preferred_element_type=jnp.float32)
                  + b_ref[...]).astype(o_ref.dtype)


def _maxpool_kernel(x_ref, o_ref):
    # x_ref: (tr, 2, Wo, 2, C) -> o_ref: (tr, Wo, C); 2x2 stride-2 max pool.
    v = jnp.max(x_ref[...], axis=3)
    o_ref[...] = jnp.max(v, axis=1)


# ----------------------------- op wrappers ---------------------------------

def conv3x3_pass1(slabs, weights, H, W, gamma, beta, bn_in=None, tile_budget=None):
    """3x3 conv (bias=False) over one or more pixel-major (M, Cin_j) slabs.

    Returns (y_raw (M, Cout) bf16, scale (Cout,), shift (Cout,)) where scale/shift fold this
    conv's global batch-norm (training-mode batch statistics) for a later fused apply.
    bn_in=(scale, shift): BN+ReLU of the *previous* conv applied to the input in-kernel.
    """
    M = slabs[0].shape[0]
    Cout = weights[0].shape[-1]
    cins = [s.shape[-1] for s in slabs]
    n_inputs = len(slabs)
    fuse = bn_in is not None
    assert not (fuse and n_inputs != 1)

    budget = TILE_BUDGET if tile_budget is None else tile_budget
    tm = _pick_rows(M, W, _conv_pixel_bytes(n_inputs) * W, budget)
    # Edge-pixel masking silently requires every tile to start at column 0.
    assert tm % W == 0 and M % tm == 0 and tm >= W
    n_tiles = M // tm

    def _prev_map(i):
        return (jnp.maximum(i - 1, 0), 0)

    def _cur_map(i):
        return (i, 0)

    def _next_map_factory(nblk):
        return lambda i: (jnp.minimum(i + 1, nblk - 1), 0)

    _next_map = _next_map_factory(n_tiles)

    operands, in_specs = [], []
    for s, cin in zip(slabs, cins):
        xs = s.astype(ACT_DTYPE)
        in_specs += [pl.BlockSpec((tm, cin), _prev_map),
                     pl.BlockSpec((tm, cin), _cur_map),
                     pl.BlockSpec((tm, cin), _next_map)]
        operands += [xs, xs, xs]
    if fuse:
        sc_in, sh_in = bn_in
        cin0 = cins[0]
        in_specs += [pl.BlockSpec((1, cin0), lambda i: (0, 0))] * 2
        operands += [sc_in.reshape(1, cin0).astype(jnp.float32),
                     sh_in.reshape(1, cin0).astype(jnp.float32)]
    for wgt, cin in zip(weights, cins):
        wk = wgt.reshape(9, cin, Cout).astype(ACT_DTYPE)    # (ky*3+kx, cin, cout)
        in_specs.append(pl.BlockSpec((9, cin, Cout), lambda i: (0, 0, 0)))
        operands.append(wk)

    kern = functools.partial(_conv3x3_pass1_kernel, width=W, height=H,
                             n_inputs=n_inputs, fuse_bn=fuse)
    y, stats = pl.pallas_call(
        kern,
        out_shape=(jax.ShapeDtypeStruct((M, Cout), ACT_DTYPE),
                   jax.ShapeDtypeStruct((n_tiles, 2, Cout), jnp.float32)),
        grid=(n_tiles,),
        in_specs=in_specs,
        out_specs=(pl.BlockSpec((tm, Cout), lambda i: (i, 0)),
                   pl.BlockSpec((1, 2, Cout), lambda i: (i, 0, 0))),
        # Per-tile partial stats => no resident accumulator => the grid axis is parallel
        # (lets v7x shard pass 1 across both TensorCores).
        compiler_params=_cparams(("parallel",)),
    )(*operands)

    # Parallel-Welford combination of the per-tile partials (all f32).
    sums = stats[:, 0, :]
    m2s = stats[:, 1, :]
    mean = jnp.sum(sums, axis=0) / M
    mean_t = sums / tm
    m2 = jnp.sum(m2s, axis=0) + tm * jnp.sum((mean_t - mean[None, :]) ** 2, axis=0)
    var = jnp.maximum(m2 / M, 0.0)
    scale = gamma.astype(jnp.float32) * jax.lax.rsqrt(var + EPS)
    shift = beta.astype(jnp.float32) - mean * scale
    return y, scale, shift


def bn_relu_epilogue(y, scale, shift, W):
    """Lane-dense BN+ReLU: operates on the free (N*H, W*C) view of the (M, C) slab."""
    M, C = y.shape
    D = W * C
    R = M // W
    y2 = y.reshape(R, D)
    scale_w = jnp.tile(scale, W).reshape(1, D)
    shift_w = jnp.tile(shift, W).reshape(1, D)
    tr = _pick_rows(R, 1, D * 8, TILE_BUDGET)
    out = pl.pallas_call(
        _bn_relu_kernel,
        out_shape=jax.ShapeDtypeStruct((R, D), ACT_DTYPE),
        grid=(R // tr,),
        in_specs=[pl.BlockSpec((tr, D), lambda i: (i, 0)),
                  pl.BlockSpec((1, D), lambda i: (0, 0)),
                  pl.BlockSpec((1, D), lambda i: (0, 0))],
        out_specs=pl.BlockSpec((tr, D), lambda i: (i, 0)),
        compiler_params=_cparams(("parallel",)),
    )(y2, scale_w, shift_w)
    return out.reshape(M, C)


def bn_relu_conv1x1_epilogue(y, scale, shift, W, w1x1, b1x1):
    """Lane-dense BN+ReLU + final 1x1 conv (bias) fused, via a block-diagonal weight."""
    M, C = y.shape
    OutC = w1x1.shape[1]
    D, Do = W * C, W * OutC
    R = M // W
    y2 = y.reshape(R, D)
    scale_w = jnp.tile(scale, W).reshape(1, D)
    shift_w = jnp.tile(shift, W).reshape(1, D)
    w_bd = jnp.kron(jnp.eye(W, dtype=jnp.float32), w1x1.astype(jnp.float32)).astype(ACT_DTYPE)
    bias_w = jnp.tile(b1x1.astype(jnp.float32), W).reshape(1, Do)
    tr = _pick_rows(R, 1, D * 8 + Do * 8, TILE_BUDGET)
    out = pl.pallas_call(
        _bn_relu_conv1x1_kernel,
        out_shape=jax.ShapeDtypeStruct((R, Do), jnp.float32),
        grid=(R // tr,),
        in_specs=[pl.BlockSpec((tr, D), lambda i: (i, 0)),
                  pl.BlockSpec((1, D), lambda i: (0, 0)),
                  pl.BlockSpec((1, D), lambda i: (0, 0)),
                  pl.BlockSpec((D, Do), lambda i: (0, 0)),
                  pl.BlockSpec((1, Do), lambda i: (0, 0))],
        out_specs=pl.BlockSpec((tr, Do), lambda i: (i, 0)),
        compiler_params=_cparams(("parallel",)),
    )(y2, scale_w, shift_w, w_bd, bias_w)
    return out.reshape(M, OutC)


def double_conv(xs, p, *, final=None):
    """DoubleConv on a list of NHWC inputs (a virtual channel concat; weights are split).
    conv1 -> (BN1+ReLU fused into) conv2 -> BN2+ReLU epilogue (optionally fused final 1x1)."""
    N, H, W, _ = xs[0].shape
    cins = [a.shape[-1] for a in xs]
    offs = [0]
    for c in cins:
        offs.append(offs[-1] + c)
    w1s = [p["w1"][:, :, offs[j]:offs[j + 1], :] for j in range(len(xs))]
    slabs = [a.reshape(-1, a.shape[-1]) for a in xs]

    y1, sc1, sh1 = conv3x3_pass1(slabs, w1s, H, W, p["g1"], p["b1"])
    y2, sc2, sh2 = conv3x3_pass1([y1], [p["w2"]], H, W, p["g2"], p["b2"], bn_in=(sc1, sh1))

    cout = p["w2"].shape[-1]
    if final is None:
        out = bn_relu_epilogue(y2, sc2, sh2, W)
        return out.reshape(N, H, W, cout)
    w1x1, b1x1 = final
    out = bn_relu_conv1x1_epilogue(y2, sc2, sh2, W, w1x1, b1x1)
    return out.reshape(N, H, W, w1x1.shape[1])


def matmul_bias(x2d, w2d, bias, out_dtype):
    M, K = x2d.shape
    Nout = w2d.shape[1]
    tm = _pick_rows(M, 1, K * 4 + Nout * 8, TILE_BUDGET)
    return pl.pallas_call(
        _matmul_bias_kernel,
        out_shape=jax.ShapeDtypeStruct((M, Nout), out_dtype),
        grid=(M // tm,),
        in_specs=[pl.BlockSpec((tm, K), lambda i: (i, 0)),
                  pl.BlockSpec((K, Nout), lambda i: (0, 0)),
                  pl.BlockSpec((1, Nout), lambda i: (0, 0))],
        out_specs=pl.BlockSpec((tm, Nout), lambda i: (i, 0)),
        compiler_params=_cparams(("parallel",)),
    )(x2d.astype(ACT_DTYPE), w2d.astype(ACT_DTYPE), bias.reshape(1, Nout).astype(jnp.float32))


def maxpool2x2(x):
    # MaxPool2d(kernel_size=2, stride=2) as one tiled kernel on a free 5-D view.
    # TODO(synk): not lane-dense for small C; kept in the proven (tr,2,Wo,2,C) block layout.
    N, H, W, C = x.shape
    Ho, Wo = H // 2, W // 2
    rows = N * Ho
    xr = x.reshape(rows, 2, Wo, 2, C)
    bpr = (2 * Wo * 2 * C + Wo * C) * 2 * x.dtype.itemsize
    tr = _pick_rows(rows, 1, bpr, TILE_BUDGET)
    out = pl.pallas_call(
        _maxpool_kernel,
        out_shape=jax.ShapeDtypeStruct((rows, Wo, C), x.dtype),
        grid=(rows // tr,),
        in_specs=[pl.BlockSpec((tr, 2, Wo, 2, C), lambda i: (i, 0, 0, 0, 0))],
        out_specs=pl.BlockSpec((tr, Wo, C), lambda i: (i, 0, 0)),
        compiler_params=_cparams(("parallel",)),
    )(xr)
    return out.reshape(N, Ho, Wo, C)


def conv_transpose2x2(x, w, bias):
    # ConvTranspose2d(kernel=2, stride=2). x: (N,H,W,Cin); w: (Cin,Cout,2,2) torch layout.
    N, H, W, Cin = x.shape
    Cout = w.shape[1]
    wk = jnp.transpose(w, (0, 2, 3, 1)).reshape(Cin, 4 * Cout)   # columns = (kh, kw, co)
    bias4 = jnp.tile(bias, 4)
    y = matmul_bias(x.reshape(N * H * W, Cin), wk, bias4, ACT_DTYPE)   # (M, 4*Cout)
    # TODO(synk): pixel interleave stays as XLA glue; writing it interleaved from the kernel
    # needs an in-kernel sublane->lane relayout that is skipped for lowering robustness.
    y = y.reshape(N, H, W, 2, 2, Cout).transpose(0, 1, 3, 2, 4, 5)
    return y.reshape(N, 2 * H, 2 * W, Cout)


# ----------------------------- UNET forward --------------------------------

def unet_forward(x_nchw, params):
    x = jnp.transpose(x_nchw, (0, 2, 3, 1)).astype(ACT_DTYPE)   # NCHW -> NHWC, bf16
    skips = []
    for p in params["downs"]:
        x = double_conv([x], p)
        skips.append(x)
        x = maxpool2x2(x)
    x = double_conv([x], params["bottleneck"])
    skips = skips[::-1]
    n_ups = len(params["ups"])
    for i, up in enumerate(params["ups"]):
        x = conv_transpose2x2(x, up["wt"], up["bt"])
        skip = skips[i]
        # TODO(synk): TF.resize bilinear fallback for shape mismatch not implemented;
        # spatial dims are powers of two here so the branch is never taken.
        final = (params["final_w"], params["final_b"]) if i == n_ups - 1 else None
        # Skip-concat eliminated: skip and x are fed as two slabs with split conv1 weights.
        x = double_conv([skip, x], up["dc"], final=final)
    return jnp.transpose(x, (0, 3, 1, 2))                       # NHWC -> NCHW, f32


# ----------------------------- parameter init ------------------------------

def init_double_conv(key, cin, cout):
    k = jax.random.split(key, 6)
    return {
        "w1": 0.1 * jax.random.normal(k[0], (3, 3, cin, cout), jnp.float32),
        "g1": 1.0 + 0.1 * jax.random.normal(k[1], (cout,), jnp.float32),
        "b1": 0.1 * jax.random.normal(k[2], (cout,), jnp.float32),
        "w2": 0.1 * jax.random.normal(k[3], (3, 3, cout, cout), jnp.float32),
        "g2": 1.0 + 0.1 * jax.random.normal(k[4], (cout,), jnp.float32),
        "b2": 0.1 * jax.random.normal(k[5], (cout,), jnp.float32),
    }


def init_unet(key, in_channels, out_channels, features):
    params = {"downs": [], "ups": []}
    cin = in_channels
    for f in features:
        key, sub = jax.random.split(key)
        params["downs"].append(init_double_conv(sub, cin, f))
        cin = f
    key, sub = jax.random.split(key)
    params["bottleneck"] = init_double_conv(sub, features[-1], features[-1] * 2)
    for f in reversed(features):
        key, k1, k2, k3 = jax.random.split(key, 4)
        params["ups"].append({
            "wt": 0.1 * jax.random.normal(k1, (2 * f, f, 2, 2), jnp.float32),  # torch layout
            "bt": 0.1 * jax.random.normal(k2, (f,), jnp.float32),
            "dc": init_double_conv(k3, 2 * f, f),
        })
    key, k1, k2 = jax.random.split(key, 3)
    params["final_w"] = 0.1 * jax.random.normal(k1, (features[0], out_channels), jnp.float32)
    params["final_b"] = 0.1 * jax.random.normal(k2, (out_channels,), jnp.float32)
    return params


# ----------------------------- reference (sanity) --------------------------

def _ref_conv_bn_relu(x, w, g, b):
    y = jax.lax.conv_general_dilated(x, w, (1, 1), "SAME",
                                     dimension_numbers=("NHWC", "HWIO", "NHWC"))
    mean = jnp.mean(y, axis=(0, 1, 2), keepdims=True)
    var = jnp.mean((y - mean) ** 2, axis=(0, 1, 2), keepdims=True)
    y = (y - mean) * jax.lax.rsqrt(var + EPS) * g.reshape(1, 1, 1, -1) + b.reshape(1, 1, 1, -1)
    return jnp.maximum(y, 0.0)


def _ref_double_conv(x, p):
    y = _ref_conv_bn_relu(x, p["w1"], p["g1"], p["b1"])
    return _ref_conv_bn_relu(y, p["w2"], p["g2"], p["b2"])


if __name__ == "__main__":
    key = jax.random.PRNGKey(0)
    key, kx, kp = jax.random.split(key, 3)

    # Small shapes consistent with UNET(in_channels=3, out_channels=1, features=[4,8,16,32])
    features = [4, 8, 16, 32]
    params = init_unet(kp, 3, 1, features)
    x = jax.random.normal(kx, (2, 3, 16, 16), jnp.float32)  # NCHW, like PyTorch

    x_nhwc = jnp.transpose(x, (0, 2, 3, 1))
    p0 = params["downs"][0]

    # (1) single conv3x3 + BN + ReLU vs an XLA f32 reference (single-tile path).
    ref1 = np.asarray(_ref_conv_bn_relu(x_nhwc, p0["w1"], p0["g1"], p0["b1"]))
    y, sc, sh = conv3x3_pass1([x_nhwc.reshape(-1, 3)], [p0["w1"]], 16, 16, p0["g1"], p0["b1"])
    got1 = bn_relu_epilogue(y, sc, sh, 16).reshape(2, 16, 16, 4)
    np.testing.assert_allclose(np.asarray(got1, np.float32), ref1, rtol=3e-2, atol=3e-2)

    # (1b) same check with a tiny tile budget: exercises multi-tile halos, clamped index
    #      maps, per-row edge masks and the parallel-Welford stats combination.
    yb, scb, shb = conv3x3_pass1([x_nhwc.reshape(-1, 3)], [p0["w1"]], 16, 16,
                                 p0["g1"], p0["b1"], tile_budget=200_000)
    got1b = bn_relu_epilogue(yb, scb, shb, 16).reshape(2, 16, 16, 4)
    np.testing.assert_allclose(np.asarray(got1b, np.float32), ref1, rtol=3e-2, atol=3e-2)

    # (2) full DoubleConv (exercises the fused conv1-BN+ReLU -> conv2 path).
    got2 = double_conv([x_nhwc.astype(ACT_DTYPE)], p0)
    ref2 = np.asarray(_ref_double_conv(x_nhwc, p0))
    np.testing.assert_allclose(np.asarray(got2, np.float32), ref2, rtol=1e-1, atol=1e-1)

    # (3) dual-slab DoubleConv (skip-concat removal) vs the single-slab concat path.
    ka, kb = jax.random.split(key, 2)
    a = jax.random.normal(ka, (2, 16, 16, 4), jnp.float32).astype(ACT_DTYPE)
    b = jax.random.normal(kb, (2, 16, 16, 4), jnp.float32).astype(ACT_DTYPE)
    pud = params["ups"][-1]["dc"]
    d2 = double_conv([a, b], pud)
    d1 = double_conv([jnp.concatenate([a, b], axis=-1)], pud)
    np.testing.assert_allclose(np.asarray(d2, np.float32), np.asarray(d1, np.float32),
                               rtol=3e-2, atol=3e-2)

    out = jax.jit(unet_forward)(x, params)
    out = jax.block_until_ready(out)
    assert out.shape == (2, 1, 16, 16) and out.dtype == jnp.float32
    print("KERNEL_OK")
</pallas_src>

<mosaic_0001>
module attributes {stable_mosaic.version = 11 : i64} {
  func.func @_conv3x3_pass1_kernel(%arg0: i32, %arg1: memref<512x3xbf16, #tpu.memory_space<vmem>>, %arg2: memref<512x3xbf16, #tpu.memory_space<vmem>>, %arg3: memref<512x3xbf16, #tpu.memory_space<vmem>>, %arg4: memref<9x3x4xbf16, #tpu.memory_space<vmem>>, %arg5: memref<512x4xbf16, #tpu.memory_space<vmem>>, %arg6: memref<1x2x4xf32, #tpu.memory_space<vmem>>) attributes {dimension_semantics = [#tpu.dimension_semantics<parallel>], iteration_bounds = array<i64: 1>, scalar_prefetch = 0 : i64, scratch_operands = 0 : i64, tpu.core_type = #tpu.core_type<tc>, window_params = [{transform_indices = @transform_0, window_bounds = array<i64: 512, 3>}, {transform_indices = @transform_1, window_bounds = array<i64: 512, 3>}, {transform_indices = @transform_2, window_bounds = array<i64: 512, 3>}, {pipeline_mode = #tpu.pipeline_mode<synchronous>, transform_indices = @transform_3, window_bounds = array<i64: 9, 3, 4>}, {transform_indices = @transform_4, window_bounds = array<i64: 512, 4>}, {transform_indices = @transform_5, window_bounds = array<i64: 1, 2, 4>}]} {
    %c512_i32 = arith.constant 512 : i32
    %0 = arith.muli %arg0, %c512_i32 : i32
    %1 = tpu.iota {dimensions = array<i32: 0>} : vector<512x1xi32>
    %2 = vector.broadcast %0 : i32 to vector<512x1xi32>
    %3 = arith.addi %1, %2 : vector<512x1xi32>
    %c16_i32 = arith.constant 16 : i32
    %c0_i32 = arith.constant 0 : i32
    %4 = arith.cmpi eq, %c16_i32, %c0_i32 : i32
    %c1_i32 = arith.constant 1 : i32
    %5 = arith.select %4, %c1_i32, %c16_i32 : i32
    %6 = vector.broadcast %5 : i32 to vector<512x1xi32>
    %7 = arith.remsi %3, %6 : vector<512x1xi32>
    %c0_i32_0 = arith.constant 0 : i32
    %8 = vector.broadcast %c0_i32_0 : i32 to vector<512x1xi32>
    %9 = arith.cmpi ne, %7, %8 : vector<512x1xi32>
    %c0_i32_1 = arith.constant 0 : i32
    %10 = vector.broadcast %c0_i32_1 : i32 to vector<512x1xi32>
    %11 = arith.cmpi slt, %7, %10 : vector<512x1xi32>
    %c0_i32_2 = arith.constant 0 : i32
    %12 = arith.cmpi slt, %5, %c0_i32_2 : i32
    %13 = vector.broadcast %12 : i1 to vector<512x1xi1>
    %14 = vector.broadcast %13 : vector<512x1xi1> to vector<512x1xi1>
    %15 = arith.xori %11, %14 : vector<512x1xi1>
    %16 = arith.andi %15, %9 : vector<512x1xi1>
    %17 = vector.broadcast %5 : i32 to vector<512x1xi32>
    %18 = arith.addi %7, %17 : vector<512x1xi32>
    %19 = arith.select %16, %18, %7 : vector<512x1xi1>, vector<512x1xi32>
    %c256_i32 = arith.constant 256 : i32
    %c0_i32_3 = arith.constant 0 : i32
    %20 = arith.cmpi eq, %c256_i32, %c0_i32_3 : i32
    %c1_i32_4 = arith.constant 1 : i32
    %21 = arith.select %20, %c1_i32_4, %c256_i32 : i32
    %22 = vector.broadcast %21 : i32 to vector<512x1xi32>
    %23 = arith.remsi %3, %22 : vector<512x1xi32>
    %c0_i32_5 = arith.constant 0 : i32
    %24 = vector.broadcast %c0_i32_5 : i32 to vector<512x1xi32>
    %25 = arith.cmpi ne, %23, %24 : vector<512x1xi32>
    %c0_i32_6 = arith.constant 0 : i32
    %26 = vector.broadcast %c0_i32_6 : i32 to vector<512x1xi32>
    %27 = arith.cmpi slt, %23, %26 : vector<512x1xi32>
    %c0_i32_7 = arith.constant 0 : i32
    %28 = arith.cmpi slt, %21, %c0_i32_7 : i32
    %29 = vector.broadcast %28 : i1 to vector<512x1xi1>
    %30 = vector.broadcast %29 : vector<512x1xi1> to vector<512x1xi1>
    %31 = arith.xori %27, %30 : vector<512x1xi1>
    %32 = arith.andi %31, %25 : vector<512x1xi1>
    %33 = vector.broadcast %21 : i32 to vector<512x1xi32>
    %34 = arith.addi %23, %33 : vector<512x1xi32>
    %35 = arith.select %32, %34, %23 : vector<512x1xi1>, vector<512x1xi32>
    %c0_i32_8 = arith.constant 0 : i32
    %36 = vector.broadcast %c0_i32_8 : i32 to vector<512x1xi32>
    %37 = arith.cmpi ne, %19, %36 : vector<512x1xi32>
    %38 = arith.extui %37 : vector<512x1xi1> to vector<512x1xi32>
    %39 = arith.sitofp %38 : vector<512x1xi32> to vector<512x1xf32>
    %40 = arith.truncf %39 : vector<512x1xf32> to vector<512x1xbf16>
    %c15_i32 = arith.constant 15 : i32
    %41 = vector.broadcast %c15_i32 : i32 to vector<512x1xi32>
    %42 = arith.cmpi ne, %19, %41 : vector<512x1xi32>
    %43 = arith.extui %42 : vector<512x1xi1> to vector<512x1xi32>
    %44 = arith.sitofp %43 : vector<512x1xi32> to vector<512x1xf32>
    %45 = arith.truncf %44 : vector<512x1xf32> to vector<512x1xbf16>
    %c16_i32_9 = arith.constant 16 : i32
    %46 = vector.broadcast %c16_i32_9 : i32 to vector<512x1xi32>
    %47 = arith.cmpi sge, %35, %46 : vector<512x1xi32>
    %48 = arith.extui %47 : vector<512x1xi1> to vector<512x1xi32>
    %49 = arith.sitofp %48 : vector<512x1xi32> to vector<512x1xf32>
    %50 = arith.truncf %49 : vector<512x1xf32> to vector<512x1xbf16>
    %c240_i32 = arith.constant 240 : i32
    %51 = vector.broadcast %c240_i32 : i32 to vector<512x1xi32>
    %52 = arith.cmpi slt, %35, %51 : vector<512x1xi32>
    %53 = arith.extui %52 : vector<512x1xi1> to vector<512x1xi32>
    %54 = arith.sitofp %53 : vector<512x1xi32> to vector<512x1xf32>
    %55 = arith.truncf %54 : vector<512x1xf32> to vector<512x1xbf16>
    %cst = arith.constant 0.000000e+00 : f32
    %56 = vector.broadcast %cst : f32 to vector<512x4xf32>
    %c0 = arith.constant 0 : index
    %c0_10 = arith.constant 0 : index
    %57 = vector.load %arg1[%c0, %c0_10] : memref<512x3xbf16, #tpu.memory_space<vmem>>, vector<512x3xbf16>
    %c0_11 = arith.constant 0 : index
    %c0_12 = arith.constant 0 : index
    %58 = vector.load %arg2[%c0_11, %c0_12] : memref<512x3xbf16, #tpu.memory_space<vmem>>, vector<512x3xbf16>
    %c0_13 = arith.constant 0 : index
    %c0_14 = arith.constant 0 : index
    %59 = vector.load %arg3[%c0_13, %c0_14] : memref<512x3xbf16, #tpu.memory_space<vmem>>, vector<512x3xbf16>
    %60 = vector.extract_strided_slice %57 {offsets = [496, 0], sizes = [16, 3], strides = [1, 1]} : vector<512x3xbf16> to vector<16x3xbf16>
    %61 = vector.extract_strided_slice %58 {offsets = [0, 0], sizes = [496, 3], strides = [1, 1]} : vector<512x3xbf16> to vector<496x3xbf16>
    %62 = tpu.concatenate %60, %61 in 0 : vector<16x3xbf16>, vector<496x3xbf16> -> vector<512x3xbf16>
    %63 = vector.broadcast %50 : vector<512x1xbf16> to vector<512x3xbf16>
    %64 = arith.mulf %62, %63 : vector<512x3xbf16>
    %65 = vector.extract_strided_slice %58 {offsets = [16, 0], sizes = [496, 3], strides = [1, 1]} : vector<512x3xbf16> to vector<496x3xbf16>
    %66 = vector.extract_strided_slice %59 {offsets = [0, 0], sizes = [16, 3], strides = [1, 1]} : vector<512x3xbf16> to vector<16x3xbf16>
    %67 = tpu.concatenate %65, %66 in 0 : vector<496x3xbf16>, vector<16x3xbf16> -> vector<512x3xbf16>
    %68 = vector.broadcast %55 : vector<512x1xbf16> to vector<512x3xbf16>
    %69 = arith.mulf %67, %68 : vector<512x3xbf16>
    %cst_15 = arith.constant 0.000000e+00 : bf16
    %70 = vector.broadcast %cst_15 : bf16 to vector<1x3xbf16>
    %71 = vector.extract_strided_slice %64 {offsets = [0, 0], sizes = [511, 3], strides = [1, 1]} : vector<512x3xbf16> to vector<511x3xbf16>
    %72 = tpu.concatenate %70, %71 in 0 : vector<1x3xbf16>, vector<511x3xbf16> -> vector<512x3xbf16>
    %73 = vector.broadcast %40 : vector<512x1xbf16> to vector<512x3xbf16>
    %74 = arith.mulf %72, %73 : vector<512x3xbf16>
    %75 = vector.extract_strided_slice %64 {offsets = [1, 0], sizes = [511, 3], strides = [1, 1]} : vector<512x3xbf16> to vector<511x3xbf16>
    %76 = tpu.concatenate %75, %70 in 0 : vector<511x3xbf16>, vector<1x3xbf16> -> vector<512x3xbf16>
    %77 = vector.broadcast %45 : vector<512x1xbf16> to vector<512x3xbf16>
    %78 = arith.mulf %76, %77 : vector<512x3xbf16>
    %c0_16 = arith.constant 0 : index
    %c0_17 = arith.constant 0 : index
    %c0_18 = arith.constant 0 : index
    %79 = vector.load %arg4[%c0_16, %c0_17, %c0_18] : memref<9x3x4xbf16, #tpu.memory_space<vmem>>, vector<1x3x4xbf16>
    %80 = vector.shape_cast %79 : vector<1x3x4xbf16> to vector<3x4xbf16>
    %cst_19 = arith.constant dense<0.000000e+00> : vector<512x4xf32>
    %81 = tpu.matmul %74, %80, %cst_19 {dimension_numbers = #tpu.dot_dimension_numbers<[1], [0], [0], [1], [0, 0, 1, 1], [], []>} : vector<512x3xbf16>, vector<3x4xbf16>, vector<512x4xf32> -> vector<512x4xf32>
    %82 = arith.addf %56, %81 : vector<512x4xf32>
    %c1 = arith.constant 1 : index
    %c0_20 = arith.constant 0 : index
    %c0_21 = arith.constant 0 : index
    %83 = vector.load %arg4[%c1, %c0_20, %c0_21] : memref<9x3x4xbf16, #tpu.memory_space<vmem>>, vector<1x3x4xbf16>
    %84 = vector.shape_cast %83 : vector<1x3x4xbf16> to vector<3x4xbf16>
    %cst_22 = arith.constant dense<0.000000e+00> : vector<512x4xf32>
    %85 = tpu.matmul %64, %84, %cst_22 {dimension_numbers = #tpu.dot_dimension_numbers<[1], [0], [0], [1], [0, 0, 1, 1], [], []>} : vector<512x3xbf16>, vector<3x4xbf16>, vector<512x4xf32> -> vector<512x4xf32>
    %86 = arith.addf %82, %85 : vector<512x4xf32>
    %c2 = arith.constant 2 : index
    %c0_23 = arith.constant 0 : index
    %c0_24 = arith.constant 0 : index
    %87 = vector.load %arg4[%c2, %c0_23, %c0_24] : memref<9x3x4xbf16, #tpu.memory_space<vmem>>, vector<1x3x4xbf16>
    %88 = vector.shape_cast %87 : vector<1x3x4xbf16> to vector<3x4xbf16>
    %cst_25 = arith.constant dense<0.000000e+00> : vector<512x4xf32>
    %89 = tpu.matmul %78, %88, %cst_25 {dimension_numbers = #tpu.dot_dimension_numbers<[1], [0], [0], [1], [0, 0, 1, 1], [], []>} : vector<512x3xbf16>, vector<3x4xbf16>, vector<512x4xf32> -> vector<512x4xf32>
    %90 = arith.addf %86, %89 : vector<512x4xf32>
    %91 = vector.extract_strided_slice %58 {offsets = [0, 0], sizes = [511, 3], strides = [1, 1]} : vector<512x3xbf16> to vector<511x3xbf16>
    %92 = tpu.concatenate %70, %91 in 0 : vector<1x3xbf16>, vector<511x3xbf16> -> vector<512x3xbf16>
    %93 = vector.broadcast %40 : vector<512x1xbf16> to vector<512x3xbf16>
    %94 = arith.mulf %92, %93 : vector<512x3xbf16>
    %95 = vector.extract_strided_slice %58 {offsets = [1, 0], sizes = [511, 3], strides = [1, 1]} : vector<512x3xbf16> to vector<511x3xbf16>
    %96 = tpu.concatenate %95, %70 in 0 : vector<511x3xbf16>, vector<1x3xbf16> -> vector<512x3xbf16>
    %97 = vector.broadcast %45 : vector<512x1xbf16> to vector<512x3xbf16>
    %98 = arith.mulf %96, %97 : vector<512x3xbf16>
    %c3 = arith.constant 3 : index
    %c0_26 = arith.constant 0 : index
    %c0_27 = arith.constant 0 : index
    %99 = vector.load %arg4[%c3, %c0_26, %c0_27] : memref<9x3x4xbf16, #tpu.memory_space<vmem>>, vector<1x3x4xbf16>
    %100 = vector.shape_cast %99 : vector<1x3x4xbf16> to vector<3x4xbf16>
    %cst_28 = arith.constant dense<0.000000e+00> : vector<512x4xf32>
    %101 = tpu.matmul %94, %100, %cst_28 {dimension_numbers = #tpu.dot_dimension_numbers<[1], [0], [0], [1], [0, 0, 1, 1], [], []>} : vector<512x3xbf16>, vector<3x4xbf16>, vector<512x4xf32> -> vector<512x4xf32>
    %102 = arith.addf %90, %101 : vector<512x4xf32>
    %c4 = arith.constant 4 : index
    %c0_29 = arith.constant 0 : index
    %c0_30 = arith.constant 0 : index
    %103 = vector.load %arg4[%c4, %c0_29, %c0_30] : memref<9x3x4xbf16, #tpu.memory_space<vmem>>, vector<1x3x4xbf16>
    %104 = vector.shape_cast %103 : vector<1x3x4xbf16> to vector<3x4xbf16>
    %cst_31 = arith.constant dense<0.000000e+00> : vector<512x4xf32>
    %105 = tpu.matmul %58, %104, %cst_31 {dimension_numbers = #tpu.dot_dimension_numbers<[1], [0], [0], [1], [0, 0, 1, 1], [], []>} : vector<512x3xbf16>, vector<3x4xbf16>, vector<512x4xf32> -> vector<512x4xf32>
    %106 = arith.addf %102, %105 : vector<512x4xf32>
    %c5 = arith.constant 5 : index
    %c0_32 = arith.constant 0 : index
    %c0_33 = arith.constant 0 : index
    %107 = vector.load %arg4[%c5, %c0_32, %c0_33] : memref<9x3x4xbf16, #tpu.memory_space<vmem>>, vector<1x3x4xbf16>
    %108 = vector.shape_cast %107 : vector<1x3x4xbf16> to vector<3x4xbf16>
    %cst_34 = arith.constant dense<0.000000e+00> : vector<512x4xf32>
    %109 = tpu.matmul %98, %108, %cst_34 {dimension_numbers = #tpu.dot_dimension_numbers<[1], [0], [0], [1], [0, 0, 1, 1], [], []>} : vector<512x3xbf16>, vector<3x4xbf16>, vector<512x4xf32> -> vector<512x4xf32>
    %110 = arith.addf %106, %109 : vector<512x4xf32>
    %111 = vector.extract_strided_slice %69 {offsets = [0, 0], sizes = [511, 3], strides = [1, 1]} : vector<512x3xbf16> to vector<511x3xbf16>
    %112 = tpu.concatenate %70, %111 in 0 : vector<1x3xbf16>, vector<511x3xbf16> -> vector<512x3xbf16>
    %113 = vector.broadcast %40 : vector<512x1xbf16> to vector<512x3xbf16>
    %114 = arith.mulf %112, %113 : vector<512x3xbf16>
    %115 = vector.extract_strided_slice %69 {offsets = [1, 0], sizes = [511, 3], strides = [1, 1]} : vector<512x3xbf16> to vector<511x3xbf16>
    %116 = tpu.concatenate %115, %70 in 0 : vector<511x3xbf16>, vector<1x3xbf16> -> vector<512x3xbf16>
    %117 = vector.broadcast %45 : vector<512x1xbf16> to vector<512x3xbf16>
    %118 = arith.mulf %116, %117 : vector<512x3xbf16>
    %c6 = arith.constant 6 : index
    %c0_35 = arith.constant 0 : index
    %c0_36 = arith.constant 0 : index
    %119 = vector.load %arg4[%c6, %c0_35, %c0_36] : memref<9x3x4xbf16, #tpu.memory_space<vmem>>, vector<1x3x4xbf16>
    %120 = vector.shape_cast %119 : vector<1x3x4xbf16> to vector<3x4xbf16>
    %cst_37 = arith.constant dense<0.000000e+00> : vector<512x4xf32>
    %121 = tpu.matmul %114, %120, %cst_37 {dimension_numbers = #tpu.dot_dimension_numbers<[1], [0], [0], [1], [0, 0, 1, 1], [], []>} : vector<512x3xbf16>, vector<3x4xbf16>, vector<512x4xf32> -> vector<512x4xf32>
    %122 = arith.addf %110, %121 : vector<512x4xf32>
    %c7 = arith.constant 7 : index
    %c0_38 = arith.constant 0 : index
    %c0_39 = arith.constant 0 : index
    %123 = vector.load %arg4[%c7, %c0_38, %c0_39] : memref<9x3x4xbf16, #tpu.memory_space<vmem>>, vector<1x3x4xbf16>
    %124 = vector.shape_cast %123 : vector<1x3x4xbf16> to vector<3x4xbf16>
    %cst_40 = arith.constant dense<0.000000e+00> : vector<512x4xf32>
    %125 = tpu.matmul %69, %124, %cst_40 {dimension_numbers = #tpu.dot_dimension_numbers<[1], [0], [0], [1], [0, 0, 1, 1], [], []>} : vector<512x3xbf16>, vector<3x4xbf16>, vector<512x4xf32> -> vector<512x4xf32>
    %126 = arith.addf %122, %125 : vector<512x4xf32>
    %c8 = arith.constant 8 : index
    %c0_41 = arith.constant 0 : index
    %c0_42 = arith.constant 0 : index
    %127 = vector.load %arg4[%c8, %c0_41, %c0_42] : memref<9x3x4xbf16, #tpu.memory_space<vmem>>, vector<1x3x4xbf16>
    %128 = vector.shape_cast %127 : vector<1x3x4xbf16> to vector<3x4xbf16>
    %cst_43 = arith.constant dense<0.000000e+00> : vector<512x4xf32>
    %129 = tpu.matmul %118, %128, %cst_43 {dimension_numbers = #tpu.dot_dimension_numbers<[1], [0], [0], [1], [0, 0, 1, 1], [], []>} : vector<512x3xbf16>, vector<3x4xbf16>, vector<512x4xf32> -> vector<512x4xf32>
    %130 = arith.addf %126, %129 : vector<512x4xf32>
    %cst_44 = arith.constant dense<0.000000e+00> : vector<4xf32>
    %131 = vector.multi_reduction <add>, %130, %cst_44 [0] : vector<512x4xf32> to vector<4xf32>
    %132 = vector.shape_cast %131 : vector<4xf32> to vector<1x4xf32>
    %cst_45 = arith.constant 0.001953125 : f32
    %133 = vector.broadcast %cst_45 : f32 to vector<1x4xf32>
    %134 = arith.mulf %132, %133 : vector<1x4xf32>
    %135 = vector.broadcast %134 : vector<1x4xf32> to vector<512x4xf32>
    %136 = arith.subf %130, %135 : vector<512x4xf32>
    %137 = arith.mulf %136, %136 : vector<512x4xf32>
    %cst_46 = arith.constant dense<0.000000e+00> : vector<4xf32>
    %138 = vector.multi_reduction <add>, %137, %cst_46 [0] : vector<512x4xf32> to vector<4xf32>
    %139 = vector.shape_cast %138 : vector<4xf32> to vector<1x4xf32>
    %140 = tpu.concatenate %132, %139 in 0 : vector<1x4xf32>, vector<1x4xf32> -> vector<2x4xf32>
    %141 = vector.shape_cast %140 : vector<2x4xf32> to vector<1x2x4xf32>
    %c0_47 = arith.constant 0 : index
    %c0_48 = arith.constant 0 : index
    %c0_49 = arith.constant 0 : index
    %142 = vector.load %arg6[%c0_47, %c0_48, %c0_49] : memref<1x2x4xf32, #tpu.memory_space<vmem>>, vector<1x2x4xf32>
    tpu.vector_store %arg6[%c0_47, %c0_48, %c0_49], %141 {strides = array<i32>} : memref<1x2x4xf32, #tpu.memory_space<vmem>>, vector<1x2x4xf32>,
    %143 = arith.truncf %130 : vector<512x4xf32> to vector<512x4xbf16>
    %c0_50 = arith.constant 0 : index
    %c0_51 = arith.constant 0 : index
    %144 = vector.load %arg5[%c0_50, %c0_51] : memref<512x4xbf16, #tpu.memory_space<vmem>>, vector<512x4xbf16>
    tpu.vector_store %arg5[%c0_50, %c0_51], %143 {strides = array<i32>} : memref<512x4xbf16, #tpu.memory_space<vmem>>, vector<512x4xbf16>,
    return
  }
  func.func @transform_0(%arg0: i32) -> (i32, i32) {
    %c1_i32 = arith.constant 1 : i32
    %0 = arith.subi %arg0, %c1_i32 : i32
    %c0_i32 = arith.constant 0 : i32
    %1 = arith.maxsi %0, %c0_i32 : i32
    %c0_i32_0 = arith.constant 0 : i32
    %c0_i32_1 = arith.constant 0 : i32
    return %1, %c0_i32_0 : i32, i32
  }
  func.func @transform_1(%arg0: i32) -> (i32, i32) {
    %c0_i32 = arith.constant 0 : i32
    %c0_i32_0 = arith.constant 0 : i32
    return %arg0, %c0_i32 : i32, i32
  }
  func.func @transform_2(%arg0: i32) -> (i32, i32) {
    %c1_i32 = arith.constant 1 : i32
    %0 = arith.addi %arg0, %c1_i32 : i32
    %c0_i32 = arith.constant 0 : i32
    %1 = arith.minsi %0, %c0_i32 : i32
    %c0_i32_0 = arith.constant 0 : i32
    %c0_i32_1 = arith.constant 0 : i32
    return %1, %c0_i32_0 : i32, i32
  }
  func.func @transform_3(%arg0: i32) -> (i32, i32, i32) {
    %c0_i32 = arith.constant 0 : i32
    %c0_i32_0 = arith.constant 0 : i32
    %c0_i32_1 = arith.constant 0 : i32
    %c0_i32_2 = arith.constant 0 : i32
    return %c0_i32, %c0_i32_0, %c0_i32_1 : i32, i32, i32
  }
  func.func @transform_4(%arg0: i32) -> (i32, i32) {
    %c0_i32 = arith.constant 0 : i32
    %c0_i32_0 = arith.constant 0 : i32
    return %arg0, %c0_i32 : i32, i32
  }
  func.func @transform_5(%arg0: i32) -> (i32, i32, i32) {
    %c0_i32 = arith.constant 0 : i32
    %c0_i32_0 = arith.constant 0 : i32
    %c0_i32_1 = arith.constant 0 : i32
    return %arg0, %c0_i32, %c0_i32_0 : i32, i32, i32
  }
}

</mosaic_0001>

<bundles_post_ra>
// kernel: tpu_custom_call.1
= control target key start
LH: loop header
LB: loop body
LE: loop exit
PB: predicated region body
PF: predicated region fallthrough
CT: control target
= control target key end

     0   :  { %vm3272_vm0 = vcmask 1040384   ;;  %vm3539_vm1 = vcmask 1041408   ;;  %v11052_v2 = vmov 65535   ;;  %vm3473_vm2 = vcmask 23552   ;;  %s14661_s0 = inlined_call_operand.vmem [shape: bf16[512,3], index: 0, kind: input, shape index: {}]   ;;  %s14662_s1 = inlined_call_operand.vmem [shape: bf16[512,3], index: 1, kind: input, shape index: {}]   ;;  %s14663_s2 = inlined_call_operand.vmem [shape: bf16[512,3], index: 2, kind: input, shape index: {}]   ;;  %s14664_s3 = inlined_call_operand.vmem [shape: bf16[9,3,4], index: 3, kind: input, shape index: {}]   ;;  %s14665_s4 = inlined_call_operand.vmem [shape: bf16[512,4], index: 4, kind: output, shape index: {0}]   ;;  %s14666_s5 = inlined_call_operand.hbm [shape: f32[1,2,4], index: 5, kind: output, shape index: {1}]  }
   0x1   :  { %v9144_v0 = vld [vmem:[%s14664_s3 + $0x2] sm:$0x3]  ;;  %v10977_v1 = vld [vmem:[%s14661_s0 + $0xf8] sm:$0xff]   ;;  %v3540_v3 = vsel %vm3272_vm0, 4294967295, %v11052_v2  ;;  %v9275_v4 = vld [vmem:[%s14664_s3 + $0x8] sm:$0x3]  ;;  %v86_v40 = vlaneseq }
   0x2   :  { %v11096_v5 = vsel %vm3539_vm1, %v3540_v3, 0  ;;  %v11098_v6 = vmul.bf16 0.0|0.0, %v10977_v1  ;;  %v11107_v9 = vld [vmem:[%s14662_s1] sm:$0xff]   ;;  %v11123_v14 = vld [vmem:[%s14662_s1 + $0x8] sm:$0xff]   ;;  %v11141_v20 = vld [vmem:[%s14662_s1 + $0x10] sm:$0xff]   ;;  %v14677_v55 = vmov 1.0  }
   0x3   :  { %14990 = vst [vmem:[#allocation5_spill] sm:$0xff] %v11096_v5  ;;  %v3543_v7 = vand.u32 %v9144_v0, %v11096_v5  ;;  %v11102_v8 = vand.u32 %v9275_v4, %v11096_v5  ;;  %14992 = vst [vmem:[#allocation7_spill] sm:$0xff] %v11107_v9  ;;  %v3470_v10 = vld [vmem:[%s14664_s3] sm:$0x3]  ;;  %v11118_v13 = vmul.bf16 1.0|1.0, %v11107_v9  ;;  %10131 = vmatprep.mubr.msk.bf16.mxu0 %vm3473_vm2, %v11107_v9 }
   0x4   :  { %v2989_v11 = vshll.u32 %v11098_v6, 16  ;;  %9867 = vmatprep.mubr.msk.bf16.mxu1 %vm3473_vm2, %v11098_v6  ;;  %v3931_v12 = vand.u32 %v11096_v5, %v3470_v10  ;;  %v9308_v15 = vld [vmem:[%s14664_s3 + $0xa] sm:$0x3]  ;;  %v2986_v16 = vshrl.u32 %v11098_v6, 16  ;;  %v11136_v19 = vmul.bf16 1.0|1.0, %v11123_v14 }
   0x5   :  { %14991 = vst [vmem:[#allocation6_spill] sm:$0xff] %v11102_v8  ;;  %9865 = vmatprep.subr.bf16.mxu1 %v3543_v7  ;;  %10129 = vmatprep.subr.bf16.mxu0 %v11102_v8  ;;  %14993 = vst [vmem:[#allocation8_spill] sm:$0xff] %v11118_v13  ;;  %v6131_v18 = vand.u32 %v9308_v15, %v11096_v5  ;;  %v11156_v22 = vld [vmem:[%s14662_s1 + $0x18] sm:$0xff]   ;;  %v11159_v23 = vmul.bf16 1.0|1.0, %v11141_v20  ;;  %v11167_v25 = vld [vmem:[%s14662_s1 + $0x20] sm:$0xff]  }
   0x6   :  { %9866 = vmatpush3.bf16.msra.mxu1 %v3543_v7  ;;  %10130 = vmatpush3.bf16.msra.mxu0 %v11102_v8  ;;  %v3308_v17 = vrot.slane %v2989_v11, 1  ;;  %14994 = vst [vmem:[#allocation9_spill] sm:$0xff] %v11136_v19  ;;  %14995 = vst [vmem:[#allocation10_spill] sm:$0xff] %v11141_v20  ;;  %v11162_v24 = vmul.bf16 1.0|1.0, %v11156_v22  ;;  %v11180_v26 = vld [vmem:[%s14662_s1 + $0x28] sm:$0xff]  }
   0x7   :  { %9931 = vmatprep.subr.bf16.mxu1 %v3931_v12  ;;  %10195 = vmatprep.subr.bf16.mxu0 %v6131_v18  ;;  %14997 = vst [vmem:[#allocation12_spill] sm:$0xff] %v11156_v22  ;;  %14998 = vst [vmem:[#allocation13_spill] sm:$0xff] %v11159_v23  ;;  %v11183_v27 = vmul.bf16 1.0|1.0, %v11167_v25  ;;  %v11186_v28 = vmul.bf16 1.0|1.0, %v11180_v26 }
   0x8   :  { %v11143_v21 = vor.u32 %v3308_v17, %v2986_v16  ;;  %14999 = vst [vmem:[#allocation14_spill] sm:$0xff] %v11162_v24  ;;  %15000 = vst [vmem:[#allocation15_spill] sm:$0xff] %v11167_v25  ;;  %v11191_v29 = vld [vmem:[%s14662_s1 + $0x30] sm:$0xff]   ;;  %v4684_v30 = vshrl.u32 %v11123_v14, 16  ;;  %v4687_v32 = vshll.u32 %v11123_v14, 16  ;;  %v11210_v33 = vld [vmem:[%s14662_s1 + $0x38] sm:$0xff]  }
   0x9   :  { %9868 = vmatmul.mubr.msk.bf16.vlgmr.msra.gmra.mrb[0].mxu1 %vm3473_vm2, %v11118_v13  ;;  %10132 = vmatmul.mubr.msk.bf16.vlgmr.msra.gmra.mrb[0].mxu0 %vm3473_vm2, %v11123_v14  ;;  %15001 = vst [vmem:[#allocation16_spill] sm:$0xff] %v11180_v26  ;;  %15002 = vst [vmem:[#allocation17_spill] sm:$0xff] %v11183_v27  ;;  %v11213_v34 = vmul.bf16 1.0|1.0, %v11191_v29  ;;  %v11218_v35 = vld [vmem:[%s14662_s1 + $0x40] sm:$0xff]   ;;  %v11246_v41 = vld [vmem:[%s14662_s1 + $0x48] sm:$0xff]  }
   0xa   :  { %14996 = vst [vmem:[#allocation11_spill] sm:$0xff] %v11143_v21  ;;  %9932 = vmatpush3.bf16.msra.mxu1 %v3931_v12  ;;  %10196 = vmatpush3.bf16.msra.mxu0 %v6131_v18  ;;  %15003 = vst [vmem:[#allocation18_spill] sm:$0xff] %v11186_v28  ;;  %v11196_v31 = vrot.slane %v4684_v30, 7  ;;  %v9341_v37 = vld [vmem:[%s14664_s3 + $0xc] sm:$0x3]  ;;  %v14668_v42 = vshrl.u32 %v11118_v13, 16 }
   0xb   :  { %9871 = vmatprep.mubr.msk.bf16.mxu1 %vm3473_vm2, %v11136_v19  ;;  %10135 = vmatprep.mubr.msk.bf16.mxu0 %vm3473_vm2, %v11141_v20  ;;  %15004 = vst [vmem:[#allocation19_spill] sm:$0xff] %v11191_v29  ;;  %15006 = vst [vmem:[#allocation21_spill] sm:$0xff] %v11210_v33  ;;  %v11229_v38 = vmul.bf16 1.0|1.0, %v11210_v33  ;;  %v11232_v39 = vand.u32 %v9341_v37, %v11096_v5  ;;  %v11249_v43 = vshrl.u32 %v86_v40, 7  ;;  %v14667_v46 = vshll.u32 %v11141_v20, 16 }
   0xc   :  { %15005 = vst [vmem:[#allocation20_spill] sm:$0xff] %v11196_v31  ;;  %15007 = vst [vmem:[#allocation22_spill] sm:$0xff] %v11213_v34  ;;  %v11223_v36 = vor.u32 %v4687_v32, %v11196_v31  ;;  %v11252_v44 = vmul.bf16 1.0|1.0, %v11218_v35  ;;  %v11255_v45 = vmul.bf16 1.0|1.0, %v11246_v41 }
   0xd   :  { %15008 = vst [vmem:[#allocation23_spill] sm:$0xff] %v11218_v35  ;;  %15010 = vst [vmem:[#allocation25_spill] sm:$0xff] %v11229_v38  ;;  %10261 = vmatprep.subr.bf16.mxu0 %v11232_v39  ;;  %v11261_v47 = vld [vmem:[%s14662_s1 + $0x50] sm:$0xff]   ;;  %v11263_v48 = vrot.slane %v2986_v16, 7  ;;  %v14669_v49 = vshll.u32 %v11107_v9, 16  ;;  %v14671_v50 = vshll.u32 %v11118_v13, 16 }
   0xe   :  { %15009 = vst [vmem:[#allocation24_spill] sm:$0xff] %v11223_v36  ;;  %15011 = vst [vmem:[#allocation26_spill] sm:$0xff] %v11246_v41  ;;  %v88_v51 = vadd.s32 8, %v11249_v43  ;;  %v11274_v52 = vrot.slane %v14668_v42, 7  ;;  %v11279_v54 = vrot.slane %v14667_v46, 1  ;;  %v11292_v59 = vld [vmem:[%s14662_s1 + $0x60] sm:$0xff]  }
   0xf   :  { %15012 = vst [vmem:[#allocation27_spill] sm:$0xff] %v11252_v44  ;;  %15013 = vst [vmem:[#allocation28_spill] sm:$0xff] %v11255_v45  ;;  %v11298_v61 = vld [vmem:[%s14662_s1 + $0x58] sm:$0xff]   ;;  %v11301_v62 = vmul.bf16 1.0|1.0, %v11261_v47  ;;  %v11309_v0 = vld [vmem:[%s14662_s1 + $0x68] sm:$0xff]  }
  0x10   :  { %15014 = vst [vmem:[#allocation29_spill] sm:$0xff] %v11261_v47  ;;  %15015 = vst [vmem:[#allocation30_spill] sm:$0xff] %v11292_v59  ;;  %v11304_v63 = vmul.bf16 1.0|1.0, %v11298_v61  ;;  %v11314_v1 = vld [vmem:[%s14662_s1 + $0x70] sm:$0xff]   ;;  %v227_v2 = vand.u32 15, %v88_v51 }
  0x11   :  { %9872 = vmatmul.mubr.msk.bf16.gmra.mrb[4].mxu1 %vm3473_vm2, %v11159_v23  ;;  %10136 = vmatmul.mubr.msk.bf16.gmra.mrb[4].mxu0 %vm3473_vm2, %v11156_v22  ;;  %15016 = vst [vmem:[#allocation31_spill] sm:$0xff] %v11298_v61  ;;  %15017 = vst [vmem:[#allocation32_spill] sm:$0xff] %v11301_v62  ;;  %v90_v3 = vadd.s32 24, %v11249_v43  ;;  %v11320_v10 = vmul.bf16 1.0|1.0, %v11292_v59  ;;  %v14670_v18 = vshrl.u32 %v11107_v9, 16 }
  0x12   :  { %9875 = vmatprep.mubr.msk.bf16.mxu1 %vm3473_vm2, %v11162_v24  ;;  %10139 = vmatprep.mubr.msk.bf16.mxu0 %vm3473_vm2, %v11167_v25  ;;  %15018 = vst [vmem:[#allocation33_spill] sm:$0xff] %v11304_v63  ;;  %15019 = vst [vmem:[#allocation34_spill] sm:$0xff] %v11309_v0  ;;  %v11325_v16 = vmul.bf16 1.0|1.0, %v11309_v0  ;;  %v4996_v37 = vrot.slane %v14669_v49, 1  ;;  %v11345_v51 = vld [vmem:[%s14662_s1 + $0x78] sm:$0xff]  }
  0x13   :  { %15020 = vst [vmem:[#allocation35_spill] sm:$0xff] %v11314_v1  ;;  %15021 = vst [vmem:[#allocation36_spill] sm:$0xff] %v11320_v10  ;;  %v11340_v40 = vmul.bf16 1.0|1.0, %v11314_v1  ;;  %vm1977_vm3 = vcmp.ne.s32.totalorder %v227_v2, 15  ;;  %v241_v46 = vand.u32 15, %v90_v3 }
  0x14   :  { %15022 = vst [vmem:[#allocation37_spill] sm:$0xff] %v11325_v16  ;;  %15024 = vst [vmem:[#allocation39_spill] sm:$0xff] %v11345_v51  ;;  %v92_v42 = vadd.s32 40, %v11249_v43  ;;  %v94_v17 = vadd.s32 56, %v11249_v43  ;;  %v11351_v15 = vmul.bf16 0.0|0.0, %v11345_v51  ;;  %v4998_v12 = vrot.slane %v4687_v32, 1 }
  0x15   :  { %15023 = vst [vmem:[#allocation38_spill] sm:$0xff] %v11340_v40  ;;  %v14687_v7 = vmov 0.0   ;;  %v4997_v60 = vor.u32 %v4996_v37, %v14670_v18  ;;  %v14672_v2 = vshll.u32 %v11156_v22, 16  ;;  %vm3307_vm4 = vsmask.f32 7424  ;;  %v11363_v49 = vld [vmem:[%s14662_s1 + $0x80] sm:$0xff]  }
  0x16   :  { %15025 = vst [vmem:[#allocation40_spill] sm:$0xff] %v11351_v15  ;;  %v9078_v4 = vsel %vm1977_vm3, 1.0, %v14687_v7  ;;  %15026 = vst [vmem:[#allocation41_spill] sm:$0xff] %v11363_v49  ;;  %vm1979_vm5 = vcmp.ne.s32.totalorder %v241_v46, 15  ;;  %v255_v58 = vand.u32 15, %v92_v42  ;;  %v11368_v32 = vor.u32 %v14671_v50, %v11274_v52 }
  0x17   :  { %v14673_v57 = vshrl.u32 %v11141_v20, 16  ;;  %v269_v37 = vand.u32 15, %v94_v17  ;;  %v11374_v18 = vor.u32 %v2989_v11, %v11263_v48  ;;  %v11379_v42 = vpack.c.bf16 %v9078_v4, %v14677_v55  ;;  %v11386_v17 = vld [vmem:[%s14662_s1 + $0x88] sm:$0xff]  }
  0x18   :  { %v5000_v46 = vor.u32 %v4998_v12, %v4684_v30  ;;  %15028 = vst [vmem:[#allocation43_spill] sm:$0xff] %v11386_v17  ;;  %v4999_v6 = vsel %vm3307_vm4, %v4997_v60, %v4998_v12  ;;  %v9079_v11 = vsel %vm1979_vm5, 1.0, %v14687_v7  ;;  %v5004_v4 = vrot.slane %v14672_v2, 1 }
  0x19   :  { %9876 = vmatmul.mubr.msk.bf16.gmra.mrb[8].mxu1 %vm3473_vm2, %v11183_v27  ;;  %10140 = vmatmul.mubr.msk.bf16.gmra.mrb[8].mxu0 %vm3473_vm2, %v11180_v26  ;;  %15027 = vst [vmem:[#allocation42_spill] sm:$0xff] %v11379_v42  ;;  %vm1981_vm6 = vcmp.ne.s32.totalorder %v255_v58, 15  ;;  %v96_v50 = vadd.s32 72, %v11249_v43  ;;  %v98_v60 = vadd.s32 88, %v11249_v43 }
  0x1a   :  { %9879 = vmatprep.mubr.msk.bf16.mxu1 %vm3473_vm2, %v11186_v28  ;;  %10143 = vmatprep.mubr.msk.bf16.mxu0 %vm3473_vm2, %v11191_v29 }
  0x21   :  { %9880 = vmatmul.mubr.msk.bf16.gmra.mrb[12].mxu1 %vm3473_vm2, %v11213_v34  ;;  %10144 = vmatmul.mubr.msk.bf16.gmra.mrb[12].mxu0 %vm3473_vm2, %v11210_v33 }
  0x22   :  { %9883 = vmatprep.mubr.msk.bf16.mxu1 %vm3473_vm2, %v11229_v38  ;;  %10147 = vmatprep.mubr.msk.bf16.mxu0 %vm3473_vm2, %v11218_v35 }
  0x29   :  { %9884 = vmatmul.mubr.msk.bf16.gmra.mrb[16].mxu1 %vm3473_vm2, %v11252_v44  ;;  %10148 = vmatmul.mubr.msk.bf16.gmra.mrb[16].mxu0 %vm3473_vm2, %v11246_v41 }
  0x2a   :  { %9887 = vmatprep.mubr.msk.bf16.mxu1 %vm3473_vm2, %v11255_v45  ;;  %10151 = vmatprep.mubr.msk.bf16.mxu0 %vm3473_vm2, %v11261_v47 }
  0x31   :  { %9888 = vmatmul.mubr.msk.bf16.gmra.mrb[20].mxu1 %vm3473_vm2, %v11301_v62  ;;  %10152 = vmatmul.mubr.msk.bf16.gmra.mrb[20].mxu0 %vm3473_vm2, %v11298_v61 }
  0x32   :  { %9891 = vmatprep.mubr.msk.bf16.mxu1 %vm3473_vm2, %v11304_v63  ;;  %10155 = vmatprep.mubr.msk.bf16.mxu0 %vm3473_vm2, %v11292_v59 }
  0x39   :  { %9892 = vmatmul.mubr.msk.bf16.gmra.mrb[24].mxu1 %vm3473_vm2, %v11320_v10  ;;  %10156 = vmatmul.mubr.msk.bf16.gmra.mrb[24].mxu0 %vm3473_vm2, %v11309_v0 }
  0x3a   :  { %9895 = vmatprep.mubr.msk.bf16.mxu1 %vm3473_vm2, %v11325_v16  ;;  %10159 = vmatprep.mubr.msk.bf16.mxu0 %vm3473_vm2, %v11314_v1 }
  0x3b   :  { %11 = vsyncpa [#allocation3], 0  ;;  %v11405_v12 = vmul.bf16 1.0|1.0, %v11363_v49  ;;  %v5003_v2 = vor.u32 %v11279_v54, %v14673_v57  ;;  %v11413_v3 = vld [vmem:[%s14662_s1 + $0x90] sm:$0xff]   ;;  %vm1983_vm7 = vcmp.ne.s32.totalorder %v269_v37, 15  ;;  %v5124_v56 = vmul.bf16 %v4999_v6, %v11379_v42 }
  0x3c   :  { %15030 = vst [vmem:[#allocation45_spill] sm:$0xff] %v11413_v3  ;;  %v100_v58 = vadd.s32 104, %v11249_v43  ;;  %v11418_v53 = vpack.c.bf16 %v9079_v11, %v14677_v55  ;;  %v5002_v30 = vsel %vm3307_vm4, %v5000_v46, %v11279_v54  ;;  %v11423_v14 = vmul.bf16 1.0|1.0, %v11386_v17  ;;  %v11544_v10 = vld [vmem:[%s14662_s1 + $0xb8] sm:$0xff]  }
  0x3d   :  { %15029 = vst [vmem:[#allocation44_spill] sm:$0xff] %v11405_v12  ;;  %v9080_v57 = vsel %vm1981_vm6, 1.0, %v14687_v7  ;;  %v15033_v31 = vshrl.u32 %v11156_v22, 16  ;;  %v102_v20 = vadd.s32 120, %v11249_v43  ;;  %v9081_v6 = vsel %vm1983_vm7, 1.0, %v14687_v7  ;;  %v11445_v7 = vld [vmem:[%s14662_s1 + $0x98] sm:$0xff]  }
  0x3e   :  { %15031 = vst [vmem:[#allocation46_spill] sm:$0xff] %v11418_v53  ;;  %15032 = vst [vmem:[#allocation47_spill] sm:$0xff] %v11423_v14  ;;  %v15034_v11 = vshll.u32 %v11167_v25, 16  ;;  %v283_v9 = vand.u32 15, %v96_v50  ;;  %v297_v8 = vand.u32 15, %v98_v60  ;;  %v5005_v54 = vsel %vm3307_vm4, %v5003_v2, %v5004_v4  ;;  %v11461_v60 = vld [vmem:[%s14662_s1 + $0xa0] sm:$0xff]  }
  0x3f   :  { %v5006_v36 = vor.u32 %v5004_v4, %v15033_v31  ;;  %v11435_v46 = vmul.bf16 1.0|1.0, %v11413_v3  ;;  %v311_v42 = vand.u32 15, %v100_v58  ;;  %v14691_v22 = vshll.u32 %v11210_v33, 16  ;;  %15038 = vst [vmem:[#allocation50_spill] sm:$0xff] %v11445_v7  ;;  %15041 = vst [vmem:[#allocation52_spill] sm:$0xff] %v11461_v60 }
  0x40   :  { %v5007_v55 = vrot.slane %v15034_v11, 1  ;;  %v5125_v31 = vmul.bf16 %v5002_v30, %v11418_v53  ;;  %v15036_v37 = vmov 1.0   ;;  %v325_v11 = vand.u32 15, %v102_v20  ;;  %15057 = vst [vmem:[#allocation61_spill] sm:$0xff] %v11544_v10 }
  0x41   :  { %15035 = vst [vmem:[#allocation48_spill] sm:$0xff] %v11435_v46  ;;  %v11440_v21 = vpack.c.bf16 %v9080_v57, %v15036_v37  ;;  %9896 = vmatmul.mubr.msk.bf16.gmra.mrb[28].mxu1 %vm3473_vm2, %v11340_v40  ;;  %10160 = vmatmul.mubr.msk.bf16.gmra.mrb[28].mxu0 %vm3473_vm2, %v11345_v51  ;;  %v11454_v4 = vpack.c.bf16 %v9081_v6, %v15036_v37  ;;  %v15040_v57 = vshll.u32 %v11180_v26, 16  ;;  %vm1985_vm8 = vcmp.ne.s32.totalorder %v283_v9, 15 }
  0x42   :  { %9899 = vmatprep.mubr.msk.bf16.mxu1 %vm3473_vm2, %v11351_v15  ;;  %10197 = vmatprep.mubr.msk.bf16.mxu0 %vm3473_vm2, %v5124_v56  ;;  %v11468_v2 = vsel %vm3307_vm4, %v5006_v36, %v5007_v55  ;;  %vm1987_vm9 = vcmp.ne.s32.totalorder %v297_v8, 15  ;;  %vm1989_vm10 = vcmp.ne.s32.totalorder %v311_v42, 15  ;;  %v11477_v53 = vmul.bf16 1.0|1.0, %v11445_v7 }
  0x43   :  { %15037 = vst [vmem:[#allocation49_spill] sm:$0xff] %v11440_v21  ;;  %15039 = vst [vmem:[#allocation51_spill] sm:$0xff] %v11454_v4  ;;  %v5010_v30 = vrot.slane %v15040_v57, 1  ;;  %v5016_v57 = vrot.slane %v14691_v22, 1  ;;  %v5126_v58 = vmul.bf16 %v5005_v54, %v11440_v21  ;;  %v15043_v36 = vshrl.u32 %v11167_v25, 16 }
  0x44   :  { %15042 = vst [vmem:[#allocation53_spill] sm:$0xff] %v11477_v53  ;;  %v15044_v8 = vshll.u32 %v11191_v29, 16  ;;  %v5127_v42 = vmul.bf16 %v11468_v2, %v11454_v4  ;;  %v11486_v22 = vmul.bf16 1.0|1.0, %v11461_v60  ;;  %v15046_v50 = vshrl.u32 %v11180_v26, 16 }
  0x45   :  { %v5009_v56 = vor.u32 %v5007_v55, %v15043_v36  ;;  %vm1991_vm11 = vcmp.ne.s32.totalorder %v325_v11, 15  ;;  %v15047_v54 = vmov 0.0   ;;  %v11495_v55 = vld [vmem:[%s14662_s1 + $0xa8] sm:$0xff]   ;;  %v15049_v2 = vshrl.u32 %v11191_v29, 16 }
  0x46   :  { %v5013_v9 = vrot.slane %v15044_v8, 1  ;;  %15045 = vst [vmem:[#allocation54_spill] sm:$0xff] %v11486_v22  ;;  %v5012_v20 = vor.u32 %v5010_v30, %v15046_v50  ;;  %v9082_v6 = vsel %vm1985_vm8, 1.0, %v15047_v54  ;;  %v9083_v21 = vsel %vm1987_vm9, 1.0, %v15047_v54  ;;  %15048 = vst [vmem:[#allocation55_spill] sm:$0xff] %v11495_v55 }
  0x47   :  { %v9084_v36 = vsel %vm1989_vm10, 1.0, %v15047_v54  ;;  %v15050_v25 = vshrl.u32 %v11210_v33, 16  ;;  %v15051_v50 = vshll.u32 %v11218_v35, 16  ;;  %v104_v26 = vadd.s32 136, %v11249_v43 }
  0x48   :  { %v5015_v8 = vor.u32 %v5013_v9, %v15049_v2  ;;  %v5011_v40 = vsel %vm3307_vm4, %v5009_v56, %v5010_v30  ;;  %v9085_v16 = vsel %vm1991_vm11, 1.0, %v15047_v54  ;;  %v106_v15 = vadd.s32 152, %v11249_v43  ;;  %v11522_v30 = vld [vmem:[%s14662_s1 + $0xb0] sm:$0xff]  }
  0x49   :  { %v5018_v4 = vor.u32 %v5016_v57, %v15050_v25  ;;  %v5019_v11 = vrot.slane %v15051_v50, 1  ;;  %9900 = vmatmul.mubr.msk.bf16.gmra.mrb[32].mxu1 %vm3473_vm2, %v11405_v12  ;;  %10198 = vmatmul.mubr.msk.bf16.vlgmr.msra.gmra.mrb[0].mxu0 %vm3473_vm2, %v5125_v31  ;;  %v11514_v25 = vpack.c.bf16 %v9082_v6, %v15036_v37  ;;  %v11517_v2 = vsel %vm3307_vm4, %v5012_v20, %v5013_v9 }
  0x4a   :  { %15053 = vst [vmem:[#allocation57_spill] sm:$0xff] %v11522_v30  ;;  %v108_v56 = vadd.s32 168, %v11249_v43  ;;  %v110_v50 = vadd.s32 184, %v11249_v43  ;;  %10262 = vmatpush3.bf16.msra.mxu0 %v11232_v39  ;;  %9903 = vmatprep.mubr.msk.bf16.mxu1 %vm3473_vm2, %v11423_v14  ;;  %v11530_v31 = vpack.c.bf16 %v9083_v21, %v15036_v37  ;;  %v11533_v6 = vmul.bf16 1.0|1.0, %v11495_v55 }
  0x4b   :  { %15052 = vst [vmem:[#allocation56_spill] sm:$0xff] %v11514_v25  ;;  %v11536_v20 = vpack.c.bf16 %v9084_v36, %v15036_v37  ;;  %v11539_v9 = vsel %vm3307_vm4, %v5015_v8, %v5016_v57  ;;  %10201 = vmatprep.mubr.msk.bf16.mxu0 %vm3473_vm2, %v5126_v58  ;;  %v11548_v39 = vpack.c.bf16 %v9085_v16, %v15036_v37  ;;  %v339_v13 = vand.u32 15, %v104_v26  ;;  %v11558_v57 = vld [vmem:[%s14662_s1 + $0xc0] sm:$0xff]  }
  0x4c   :  { %15054 = vst [vmem:[#allocation58_spill] sm:$0xff] %v11530_v31  ;;  %15055 = vst [vmem:[#allocation59_spill] sm:$0xff] %v11533_v6  ;;  %v11551_v21 = vsel %vm3307_vm4, %v5018_v4, %v5019_v11  ;;  %v15059_v36 = vshrl.u32 %v11218_v35, 16  ;;  %v15061_v8 = vshll.u32 %v11246_v41, 16  ;;  %v353_v14 = vand.u32 15, %v106_v15 }
  0x4d   :  { %15056 = vst [vmem:[#allocation60_spill] sm:$0xff] %v11536_v20  ;;  %15058 = vst [vmem:[#allocation62_spill] sm:$0xff] %v11548_v39  ;;  %v14724_v58 = vshll.u32 %v11261_v47, 16  ;;  %v5128_v4 = vmul.bf16 %v5011_v40, %v11514_v25  ;;  %v11566_v26 = vmul.bf16 1.0|1.0, %v11522_v30  ;;  %v367_v35 = vand.u32 15, %v108_v56 }
  0x4e   :  { %v5021_v33 = vor.u32 %v5019_v11, %v15059_v36  ;;  %15060 = vst [vmem:[#allocation63_spill] sm:$0xff] %v11558_v57  ;;  %v5022_v29 = vrot.slane %v15061_v8, 1  ;;  %v381_v11 = vand.u32 15, %v110_v50  ;;  %v5129_v36 = vmul.bf16 %v11517_v2, %v11530_v31  ;;  %v11588_v2 = vld [vmem:[%s14662_s1 + $0xc8] sm:$0xff]   ;;  %v9209_v31 = vld [vmem:[%s14664_s3 + $0x4] sm:$0x3] }
  0x4f   :  { %15062 = vst [vmem:[#allocation64_spill] sm:$0xff] %v11566_v26  ;;  %v5130_v12 = vmul.bf16 %v11539_v9, %v11536_v20  ;;  %v11573_v8 = vmul.bf16 1.0|1.0, %v11544_v10  ;;  %vm11578_vm12 = vcmp.ne.s32.totalorder %v339_v13, 15  ;;  %v11583_v56 = vmul.bf16 1.0|1.0, %v11558_v57 }
  0x50   :  { %15066 = vst [vmem:[#allocation66_spill] sm:$0xff] %v11588_v2  ;;  %v11592_v9 = vsel %vm3307_vm4, %v5021_v33, %v5022_v29  ;;  %vm11594_vm13 = vcmp.ne.s32.totalorder %v353_v14, 15  ;;  %v5025_v13 = vrot.slane %v14724_v58, 1  ;;  %v15069_v16 = vshll.u32 %v11298_v61, 16 }
  0x51   :  { %15063 = vst [vmem:[#allocation65_spill] sm:$0xff] %v11573_v8  ;;  %9904 = vmatmul.mubr.msk.bf16.gmra.mrb[36].mxu1 %vm3473_vm2, %v11435_v46  ;;  %10202 = vmatmul.mubr.msk.bf16.gmra.mrb[4].mxu0 %vm3473_vm2, %v5127_v42  ;;  %vm1997_vm14 = vcmp.ne.s32.totalorder %v367_v35, 15  ;;  %vm1999_vm15 = vcmp.ne.s32.totalorder %v381_v11, 15  ;;  %v15070_v58 = vshrl.u32 %v11246_v41, 16  ;;  %v11621_v35 = vld [vmem:[%s14662_s1 + $0xd0] sm:$0xff]   ;;  %v112_v42 = vadd.s32 200, %v11249_v43 }
  0x52   :  { %v5028_v20 = vrot.slane %v15069_v16, 1  ;;  %9907 = vmatprep.mubr.msk.bf16.mxu1 %vm3473_vm2, %v11477_v53  ;;  %10205 = vmatprep.mubr.msk.bf16.mxu0 %vm3473_vm2, %v5128_v4  ;;  %v9086_v16 = vsel %vm11578_vm12, 1.0, %v15047_v54  ;;  %15071 = vst [vmem:[#allocation67_spill] sm:$0xff] %v11621_v35  ;;  %v114_v11 = vadd.s32 216, %v11249_v43  ;;  %v9087_v4 = vsel %vm11594_vm13, 1.0, %v15047_v54 }
  0x53   :  { %v5024_v50 = vor.u32 %v5022_v29, %v15070_v58  ;;  %v11629_v14 = vmul.bf16 1.0|1.0, %v11588_v2  ;;  %v15072_v40 = vshrl.u32 %v11261_v47, 16  ;;  %v11634_v29 = vand.u32 %v9209_v31, %v11096_v5  ;;  %v11650_v31 = vld [vmem:[%s14662_s1 + $0xd8] sm:$0xff]  }
  0x54   :  { %v9088_v58 = vsel %vm1997_vm14, 1.0, %v15047_v54  ;;  %v9089_v41 = vsel %vm1999_vm15, 1.0, %v15047_v54  ;;  %v116_v53 = vadd.s32 232, %v11249_v43  ;;  %v11641_v15 = vpack.c.bf16 %v9086_v16, %v15036_v37  ;;  %15076 = vst [vmem:[#allocation69_spill] sm:$0xff] %v11650_v31 }
  0x55   :  { %v5027_v33 = vor.u32 %v5025_v13, %v15072_v40  ;;  %v15074_v46 = vshrl.u32 %v11298_v61, 16  ;;  %v15075_v47 = vshll.u32 %v11292_v59, 16  ;;  %9997 = vmatprep.subr.bf16.mxu1 %v11634_v29  ;;  %v11655_v25 = vsel %vm3307_vm4, %v5024_v50, %v5025_v13  ;;  %v11675_v50 = vld [vmem:[%s14662_s1 + $0xe0] sm:$0xff]  }
  0x56   :  { %15073 = vst [vmem:[#allocation68_spill] sm:$0xff] %v11641_v15  ;;  %v11658_v16 = vmul.bf16 1.0|1.0, %v11621_v35  ;;  %v395_v61 = vand.u32 15, %v112_v42  ;;  %v11661_v62 = vpack.c.bf16 %v9087_v4, %v15036_v37  ;;  %v11670_v5 = vpack.c.bf16 %v9089_v41, %v15036_v37  ;;  %15081 = vst [vmem:[#allocation74_spill] sm:$0xff] %v11675_v50 }
  0x57   :  { %v5030_v63 = vor.u32 %v5028_v20, %v15074_v46  ;;  %v5031_v40 = vrot.slane %v15075_v47, 1  ;;  %v409_v46 = vand.u32 15, %v114_v11  ;;  %v11664_v47 = vpack.c.bf16 %v9088_v58, %v15036_v37 }
  0x58   :  { %15077 = vst [vmem:[#allocation70_spill] sm:$0xff] %v11658_v16  ;;  %15078 = vst [vmem:[#allocation71_spill] sm:$0xff] %v11661_v62  ;;  %v11667_v45 = vsel %vm3307_vm4, %v5027_v33, %v5028_v20  ;;  %v15082_v13 = vshll.u32 %v11309_v0, 16  ;;  %v423_v58 = vand.u32 15, %v116_v53  ;;  %v5132_v41 = vmul.bf16 %v11592_v9, %v11641_v15 }
  0x59   :  { %15079 = vst [vmem:[#allocation72_spill] sm:$0xff] %v11664_v47  ;;  %15080 = vst [vmem:[#allocation73_spill] sm:$0xff] %v11670_v5  ;;  %9908 = vmatmul.mubr.msk.bf16.gmra.mrb[40].mxu1 %vm3473_vm2, %v11486_v22  ;;  %10206 = vmatmul.mubr.msk.bf16.gmra.mrb[8].mxu0 %vm3473_vm2, %v5129_v36  ;;  %v11687_v20 = vsel %vm3307_vm4, %v5030_v63, %v5031_v40  ;;  %v11690_v33 = vmul.bf16 1.0|1.0, %v11650_v31  ;;  %vm2001_vm1 = vcmp.ne.s32.totalorder %v395_v61, 15  ;;  %vm2003_vm3 = vcmp.ne.s32.totalorder %v409_v46, 15 }
  0x5a   :  { %v5034_v42 = vrot.slane %v15082_v13, 1  ;;  %v15084_v13 = vshrl.u32 %v11292_v59, 16  ;;  %9911 = vmatprep.mubr.msk.bf16.mxu1 %vm3473_vm2, %v11533_v6  ;;  %10209 = vmatprep.mubr.msk.bf16.mxu0 %vm3473_vm2, %v5130_v12  ;;  %v11704_v4 = vmul.bf16 1.0|1.0, %v11675_v50  ;;  %v15086_v61 = vshrl.u32 %v11309_v0, 16  ;;  %v11716_v63 = vld [vmem:[%s14662_s1 + $0xe8] sm:$0xff]  }
  0x5b   :  { %15083 = vst [vmem:[#allocation75_spill] sm:$0xff] %v11690_v33  ;;  %15088 = vst [vmem:[#allocation77_spill] sm:$0xff] %v11716_v63  ;;  %vm2005_vm5 = vcmp.ne.s32.totalorder %v423_v58, 15  ;;  %v9090_v9 = vsel %vm2001_vm1, 1.0, %v15047_v54  ;;  %v9091_v59 = vsel %vm2003_vm3, 1.0, %v15047_v54  ;;  %v15090_v12 = vshrl.u32 %v11314_v1, 16 }
  0x5c   :  { %v5033_v11 = vor.u32 %v5031_v40, %v15084_v13  ;;  %15085 = vst [vmem:[#allocation76_spill] sm:$0xff] %v11704_v4  ;;  %v118_v40 = vadd.s32 248, %v11249_v43  ;;  %v5036_v46 = vor.u32 %v5034_v42, %v15086_v61  ;;  %v15087_v13 = vshll.u32 %v11314_v1, 16  ;;  %v11726_v61 = vld [vmem:[%s14662_s1 + $0xf0] sm:$0xff]  }
  0x5d   :  { %15089 = vst [vmem:[#allocation78_spill] sm:$0xff] %v11726_v61  ;;  %v15091_v15 = vshll.u32 %v11345_v51, 16  ;;  %v14769_v6 = vshrl.u32 %v11345_v51, 16  ;;  %v89_v31 = vadd.s32 16, %v11249_v43  ;;  %v11739_v35 = vpack.c.bf16 %v9090_v9, %v15036_v37 }
  0x5e   :  { %v5037_v36 = vrot.slane %v15087_v13, 1  ;;  %v11720_v53 = vsel %vm3307_vm4, %v5033_v11, %v5034_v42  ;;  %v220_v13 = vand.u32 15, %v11249_v43  ;;  %v120_v42 = vadd.s32 264, %v11249_v43 }
  0x5f   :  { %v5040_v58 = vrot.slane %v15091_v15, 1  ;;  %v9092_v11 = vsel %vm2005_vm5, 1.0, %v15047_v54  ;;  %v437_v22 = vand.u32 15, %v118_v40  ;;  %15092 = vst [vmem:[#allocation79_spill] sm:$0xff] %v11739_v35  ;;  %v122_v15 = vadd.s32 280, %v11249_v43 }
  0x60   :  { %v5039_v0 = vor.u32 %v5037_v36, %v15090_v12  ;;  %v11742_v1 = vsel %vm3307_vm4, %v5036_v46, %v5037_v36  ;;  %v11745_v12 = vmul.bf16 1.0|1.0, %v11716_v63  ;;  %v15093_v40 = vmul.bf16 %v11551_v21, %v11548_v39 }
  0x61   :  { %9912 = vmatmul.mubr.msk.bf16.gmra.mrb[44].mxu1 %vm3473_vm2, %v11566_v26  ;;  %v11755_v50 = vpack.c.bf16 %v9091_v59, %v15036_v37  ;;  %v11758_v9 = vmul.bf16 1.0|1.0, %v11726_v61  ;;  %vm1752_vm6 = vcmp.ne.s32.totalorder %v220_v13, 0  ;;  %v11765_v46 = vpack.c.bf16 %v9092_v11, %v15036_v37 }
  0x62   :  { %10210 = vmatmul.mubr.msk.bf16.gmra.mrb[12].mxu0 %vm3473_vm2, %v15093_v40  ;;  %9915 = vmatprep.mubr.msk.bf16.mxu1 %vm3473_vm2, %v11573_v8  ;;  %v11768_v21 = vsel %vm3307_vm4, %v5039_v0, %v5040_v58  ;;  %vm2984_vm7 = vsmask.f32 256  ;;  %v451_v59 = vand.u32 15, %v120_v42  ;;  %vm11770_vm8 = vcmp.ne.s32.totalorder %v437_v22, 15 }
  0x63   :  { %15094 = vst [vmem:[#allocation80_spill] sm:$0xff] %v11755_v50  ;;  %10213 = vmatprep.mubr.msk.bf16.mxu0 %vm3473_vm2, %v5132_v41  ;;  %15095 = vst [vmem:[#allocation81_spill] sm:$0xff] %v11765_v46  ;;  %v5042_v13 = vor.u32 %v5040_v58, %v14769_v6  ;;  %v15098_v36 = vshll.u32 %v11363_v49, 16  ;;  %v234_v8 = vand.u32 15, %v89_v31  ;;  %v9046_v41 = vsel %vm1752_vm6, 1.0, %v15047_v54 }
  0x64   :  { %v465_v26 = vand.u32 15, %v122_v15  ;;  %v91_v0 = vadd.s32 32, %v11249_v43  ;;  %vm11783_vm9 = vmand %vm3272_vm0, %vm2984_vm7  ;;  %v15099_v22 = vmov 0  ;;  %v15102_v42 = vshll.u32 %v11386_v17, 16 }
  0x65   :  { %v5043_v39 = vrot.slane %v15098_v36, 1  ;;  %v15100_v22 = vsel %vm11783_vm9, 4294967295, %v15099_v22  ;;  %v124_v36 = vadd.s32 296, %v11249_v43  ;;  %v5136_v15 = vmul.bf16 %v11720_v53, %v11739_v35 }
  0x66   :  { %15101 = vst [vmem:[#allocation82_spill] sm:$0xff] %v15100_v22  ;;  %v5046_v58 = vrot.slane %v15102_v42, 1  ;;  %vm2009_vm10 = vcmp.ne.s32.totalorder %v451_v59, 15  ;;  %v9093_v42 = vsel %vm11770_vm8, 1.0, %v15047_v54  ;;  %v11805_v31 = vpack.c.bf16 %v15036_v37, %v9046_v41 }
  0x67   :  { %v11802_v6 = vsel %vm3307_vm4, %v5042_v13, %v5043_v39  ;;  %vm1754_vm11 = vcmp.ne.s32.totalorder %v234_v8, 0  ;;  %v3274_v53 = vsel %vm11783_vm9, 0, %v11374_v18  ;;  %v15104_v11 = vshrl.u32 %v11363_v49, 16 }
  0x68   :  { %15103 = vst [vmem:[#allocation83_spill] sm:$0xff] %v11805_v31  ;;  %vm2011_vm12 = vcmp.ne.s32.totalorder %v465_v26, 15  ;;  %v248_v59 = vand.u32 15, %v91_v0  ;;  %v15105_v40 = vmul.bf16 %v11655_v25, %v11661_v62  ;;  %v9094_v13 = vsel %vm2009_vm10, 1.0, %v15047_v54 }
  0x69   :  { %v5045_v35 = vor.u32 %v5043_v39, %v15104_v11  ;;  %9916 = vmatmul.mubr.msk.bf16.gmra.mrb[48].mxu1 %vm3473_vm2, %v11583_v56  ;;  %v15106_v8 = vshrl.u32 %v11386_v17, 16  ;;  %v15107_v18 = vshll.u32 %v11413_v3, 16  ;;  %v479_v49 = vand.u32 15, %v124_v36 }
  0x6a   :  { %10214 = vmatmul.mubr.msk.bf16.gmra.mrb[16].mxu0 %vm3473_vm2, %v15105_v40  ;;  %9919 = vmatprep.mubr.msk.bf16.mxu1 %vm3473_vm2, %v11629_v14  ;;  %v15108_v39 = vmul.bf16 %v11667_v45, %v11664_v47  ;;  %v9047_v25 = vsel %vm1754_vm11, 1.0, %v15047_v54  ;;  %v15109_v26 = vshrl.u32 %v11136_v19, 16  ;;  %v93_v40 = vadd.s32 48, %v11249_v43 }
  0x6b   :  { %v5048_v41 = vor.u32 %v5046_v58, %v15106_v8  ;;  %v5049_v51 = vrot.slane %v15107_v18, 1  ;;  %v11835_v8 = vpack.c.bf16 %v9093_v42, %v15036_v37  ;;  %v9095_v36 = vsel %vm2011_vm12, 1.0, %v15047_v54 }
  0x6c   :  { %10217 = vmatprep.mubr.msk.bf16.mxu0 %vm3473_vm2, %v15108_v39  ;;  %v3003_v11 = vrot.slane %v15109_v26, 7  ;;  %v11841_v39 = vmul.bf16 %v3274_v53, %v11805_v31  ;;  %v11844_v17 = vpack.c.bf16 %v9094_v13, %v15036_v37  ;;  %v11849_v26 = vsel %vm2984_vm7, %v11263_v48, %v11368_v32 }
  0x6d   :  { %15110 = vst [vmem:[#allocation84_spill] sm:$0xff] %v11835_v8  ;;  %vm1756_vm13 = vcmp.ne.s32.totalorder %v248_v59, 0  ;;  %v11852_v42 = vsel %vm3307_vm4, %v5045_v35, %v5046_v58  ;;  %v11855_v0 = vpack.c.bf16 %v15036_v37, %v9047_v25  ;;  %v11858_v45 = vsel %vm3307_vm4, %v5048_v41, %v5049_v51 }
  0x6e   :  { %15111 = vst [vmem:[#allocation85_spill] sm:$0xff] %v11844_v17  ;;  %vm2013_vm14 = vcmp.ne.s32.totalorder %v479_v49, 15  ;;  %v11861_v53 = vpack.c.bf16 %v9095_v36, %v15036_v37  ;;  %v15114_v13 = vshll.u32 %v11136_v19, 16  ;;  %v262_v48 = vand.u32 15, %v93_v40 }
  0x6f   :  { %15112 = vst [vmem:[#allocation86_spill] sm:$0xff] %v11855_v0  ;;  %v126_v32 = vadd.s32 312, %v11249_v43  ;;  %v9048_v35 = vsel %vm1756_vm13, 1.0, %v15047_v54  ;;  %v15115_v58 = vshrl.u32 %v11413_v3, 16  ;;  %v15116_v25 = vshll.u32 %v11445_v7, 16 }
  0x70   :  { %15113 = vst [vmem:[#allocation87_spill] sm:$0xff] %v11861_v53  ;;  %v11865_v18 = vor.u32 %v15114_v13, %v3003_v11  ;;  %v95_v49 = vadd.s32 64, %v11249_v43  ;;  %v9096_v36 = vsel %vm2013_vm14, 1.0, %v15047_v54  ;;  %v15117_v47 = vshrl.u32 %v11159_v23, 16 }
  0x71   :  { %v5051_v59 = vor.u32 %v5049_v51, %v15115_v58  ;;  %v5052_v41 = vrot.slane %v15116_v25, 1  ;;  %v128_v13 = vadd.s32 328, %v11249_v43  ;;  %9920 = vmatmul.mubr.msk.bf16.gmra.mrb[52].mxu1 %vm3473_vm2, %v11658_v16  ;;  %v15118_v51 = vmul.bf16 %v11687_v20, %v11670_v5 }
  0x72   :  { %v11877_v62 = vrot.slane %v15117_v47, 7  ;;  %v97_v40 = vadd.s32 80, %v11249_v43  ;;  %9923 = vmatprep.mubr.msk.bf16.mxu1 %vm3473_vm2, %v11690_v33  ;;  %vm1758_vm15 = vcmp.ne.s32.totalorder %v262_v48, 0  ;;  %v493_v58 = vand.u32 15, %v126_v32 }
  0x73   :  { %10218 = vmatmul.mubr.msk.bf16.gmra.mrb[20].mxu0 %vm3473_vm2, %v15118_v51  ;;  %v11900_v51 = vpack.c.bf16 %v15036_v37, %v9048_v35  ;;  %v11905_v25 = vsel %vm2984_vm7, %v11274_v52, %v11865_v18  ;;  %v11908_v47 = vpack.c.bf16 %v9096_v36, %v15036_v37  ;;  %v276_v5 = vand.u32 15, %v95_v49 }
  0x74   :  { %10221 = vmatprep.mubr.msk.bf16.mxu0 %vm3473_vm2, %v5136_v15  ;;  %v11912_v15 = vsel %vm3307_vm4, %v5051_v59, %v5052_v41  ;;  %v15121_v35 = vshll.u32 %v11159_v23, 16  ;;  %v507_v32 = vand.u32 15, %v128_v13  ;;  %v9049_v19 = vsel %vm1758_vm15, 1.0, %v15047_v54 }
  0x75   :  { %15119 = vst [vmem:[#allocation88_spill] sm:$0xff] %v11900_v51  ;;  %15120 = vst [vmem:[#allocation89_spill] sm:$0xff] %v11908_v47  ;;  %v15122_v52 = vshrl.u32 %v11162_v24, 16  ;;  %v290_v36 = vand.u32 15, %v97_v40  ;;  %v130_v16 = vadd.s32 344, %v11249_v43  ;;  %vm2015_vm1 = vcmp.ne.s32.totalorder %v493_v58, 15 }
  0x76   :  { %v3014_v20 = vor.u32 %v15121_v35, %v11877_v62  ;;  %v14796_v3 = vshll.u32 %v11495_v55, 16  ;;  %v15123_v35 = vshrl.u32 %v11445_v7, 16  ;;  %vm1760_vm3 = vcmp.ne.s32.totalorder %v276_v5, 0 }
  0x77   :  { %v3019_v33 = vrot.slane %v15122_v52, 7  ;;  %v15124_v13 = vshrl.u32 %v11183_v27, 16  ;;  %v11933_v40 = vpack.c.bf16 %v15036_v37, %v9049_v19  ;;  %v15126_v59 = vshll.u32 %v11461_v60, 16 }
  0x78   :  { %v5054_v23 = vor.u32 %v5052_v41, %v15123_v35  ;;  %v11936_v58 = vsel %vm2984_vm7, %v3003_v11, %v3014_v20  ;;  %vm2017_vm5 = vcmp.ne.s32.totalorder %v507_v32, 15  ;;  %v15127_v5 = vmul.bf16 %v11742_v1, %v11755_v50 }
  0x79   :  { %v11929_v48 = vrot.slane %v15124_v13, 7  ;;  %15125 = vst [vmem:[#allocation90_spill] sm:$0xff] %v11933_v40  ;;  %v5055_v49 = vrot.slane %v15126_v59, 1  ;;  %9924 = vmatmul.mubr.msk.bf16.gmra.mrb[56].mxu1 %vm3473_vm2, %v11704_v4  ;;  %v9097_v41 = vsel %vm2015_vm1, 1.0, %v15047_v54  ;;  %vm11947_vm6 = vcmp.ne.s32.totalorder %v290_v36, 0 }
  0x7a   :  { %v521_v11 = vand.u32 15, %v130_v16  ;;  %v99_v20 = vadd.s32 96, %v11249_v43  ;;  %9927 = vmatprep.mubr.msk.bf16.mxu1 %vm3473_vm2, %v11745_v12  ;;  %v15130_v32 = vmul.bf16 %v11768_v21, %v11765_v46  ;;  %v9050_v1 = vsel %vm1760_vm3, 1.0, %v15047_v54 }
  0x7b   :  { %10222 = vmatmul.mubr.msk.bf16.gmra.mrb[24].mxu0 %vm3473_vm2, %v15127_v5  ;;  %v15131_v59 = vshll.u32 %v11162_v24, 16  ;;  %v15132_v36 = vshrl.u32 %v11461_v60, 16  ;;  %v5058_v16 = vrot.slane %v14796_v3, 1  ;;  %v9098_v21 = vsel %vm2017_vm5, 1.0, %v15047_v54 }
  0x7c   :  { %10225 = vmatprep.mubr.msk.bf16.mxu0 %vm3473_vm2, %v15130_v32  ;;  %v15133_v32 = vshll.u32 %v11183_v27, 16  ;;  %v11979_v3 = vsel %vm3307_vm4, %v5054_v23, %v5055_v49  ;;  %v9051_v5 = vsel %vm11947_vm6, 1.0, %v15047_v54  ;;  %v11985_v52 = vpack.c.bf16 %v15036_v37, %v9050_v1 }
  0x7d   :  { %v3022_v35 = vor.u32 %v15131_v59, %v3019_v33  ;;  %v5057_v13 = vor.u32 %v5055_v49, %v15132_v36  ;;  %v11976_v36 = vpack.c.bf16 %v9097_v41, %v15036_v37  ;;  %vm2019_vm8 = vcmp.ne.s32.totalorder %v521_v11, 15 }
  0x7e   :  { %v3030_v7 = vor.u32 %v15133_v32, %v11929_v48  ;;  %15135 = vst [vmem:[#allocation92_spill] sm:$0xff] %v11985_v52  ;;  %v304_v60 = vand.u32 15, %v99_v20  ;;  %v132_v32 = vadd.s32 360, %v11249_v43  ;;  %v11993_v41 = vpack.c.bf16 %v9098_v21, %v15036_v37 }
  0x7f   :  { %15134 = vst [vmem:[#allocation91_spill] sm:$0xff] %v11976_v36  ;;  %v11990_v59 = vsel %vm2984_vm7, %v11877_v62, %v3022_v35  ;;  %v11996_v23 = vsel %vm3307_vm4, %v5057_v13, %v5058_v16  ;;  %v12000_v19 = vpack.c.bf16 %v15036_v37, %v9051_v5  ;;  %v15138_v1 = vshrl.u32 %v11186_v28, 16 }
  0x80   :  { %15136 = vst [vmem:[#allocation93_spill] sm:$0xff] %v11993_v41  ;;  %v12003_v11 = vsel %vm2984_vm7, %v3019_v33, %v3030_v7  ;;  %v9099_v35 = vsel %vm2019_vm8, 1.0, %v15047_v54  ;;  %v101_v13 = vadd.s32 112, %v11249_v43  ;;  %v134_v49 = vadd.s32 376, %v11249_v43 }
  0x81   :  { %15137 = vst [vmem:[#allocation94_spill] sm:$0xff] %v12000_v19  ;;  %v12008_v62 = vrot.slane %v15138_v1, 7  ;;  %9928 = vmatmul.mubr.msk.bf16.gmra.mrb[60].mxu1 %vm3473_vm2, %v11758_v9  ;;  %v15139_v7 = vmul.bf16 %v11802_v6, %v11835_v8  ;;  %vm1764_vm10 = vcmp.ne.s32.totalorder %v304_v60, 0  ;;  %v535_v5 = vand.u32 15, %v132_v32 }
  0x82   :  { %v103_v1 = vadd.s32 128, %v11249_v43  ;;  %9933 = vmatprep.mubr.msk.bf16.mxu1 %vm3473_vm2, %v11841_v39  ;;  %v15140_v21 = vmul.bf16 %v11852_v42, %v11844_v17  ;;  %v15141_v33 = vshrl.u32 %v11495_v55, 16  ;;  %v12039_v39 = vpack.c.bf16 %v9099_v35, %v15036_v37 }
  0x83   :  { %10226 = vmatmul.mubr.msk.bf16.gmra.mrb[28].mxu0 %vm3473_vm2, %v15139_v7  ;;  %v15143_v42 = vshll.u32 %v11522_v30, 16  ;;  %v9052_v6 = vsel %vm1764_vm10, 1.0, %v15047_v54  ;;  %v15144_v7 = vshll.u32 %v11186_v28, 16  ;;  %vm2021_vm11 = vcmp.ne.s32.totalorder %v535_v5, 15 }
  0x84   :  { %10229 = vmatprep.mubr.msk.bf16.mxu0 %vm3473_vm2, %v15140_v21  ;;  %v5060_v60 = vor.u32 %v5058_v16, %v15141_v33  ;;  %15142 = vst [vmem:[#allocation95_spill] sm:$0xff] %v12039_v39  ;;  %v318_v16 = vand.u32 15, %v101_v13  ;;  %v549_v33 = vand.u32 15, %v134_v49  ;;  %v15145_v32 = vshrl.u32 %v11213_v34, 16 }
  0x85   :  { %v5061_v21 = vrot.slane %v15143_v42, 1  ;;  %v3038_v55 = vor.u32 %v15144_v7, %v12008_v62  ;;  %v332_v8 = vand.u32 15, %v103_v1  ;;  %v136_v35 = vadd.s32 392, %v11249_v43 }
  0x86   :  { %v3043_v20 = vrot.slane %v15145_v32, 7  ;;  %v15146_v46 = vshll.u32 %v11544_v10, 16  ;;  %v14811_v17 = vshll.u32 %v11213_v34, 16  ;;  %v14812_v27 = vshll.u32 %v11558_v57, 16 }
  0x87   :  { %v12057_v7 = vsel %vm3307_vm4, %v5060_v60, %v5061_v21  ;;  %v12060_v49 = vpack.c.bf16 %v15036_v37, %v9052_v6  ;;  %v15148_v13 = vshrl.u32 %v11522_v30, 16  ;;  %v105_v1 = vadd.s32 144, %v11249_v43  ;;  %v15175_v30 = vld [vmem:[#allocation69_spill] sm:$0xff] }
  0x88   :  { %v5064_v42 = vrot.slane %v15146_v46, 1  ;;  %v12067_v46 = vsel %vm2984_vm7, %v11929_v48, %v3038_v55  ;;  %v9100_v32 = vsel %vm2021_vm11, 1.0, %v15047_v54  ;;  %vm12070_vm12 = vcmp.ne.s32.totalorder %v318_v16, 0 }
  0x89   :  { %15147 = vst [vmem:[#allocation96_spill] sm:$0xff] %v12060_v49  ;;  %v5063_v5 = vor.u32 %v5061_v21, %v15148_v13  ;;  %vm12074_vm13 = vcmp.ne.s32.totalorder %v549_v33, 15  ;;  %v15153_v6 = vmul.bf16 %v11849_v26, %v11855_v0  ;;  %v15154_v21 = vmul.bf16 %v11858_v45, %v11861_v53 }
  0x8a   :  { %vm12086_vm14 = vcmp.ne.s32.totalorder %v332_v8, 0  ;;  %v15157_v48 = vshrl.u32 %v11229_v38, 16  ;;  %v14813_v33 = vshll.u32 %v11229_v38, 16  ;;  %v563_v13 = vand.u32 15, %v136_v35 }
  0x8b   :  { %9934 = vmatmul.mubr.msk.bf16.vlgmr.msra.gmra.mrb[0].mxu1 %vm3473_vm2, %v15153_v6  ;;  %10230 = vmatmul.mubr.msk.bf16.gmra.mrb[32].mxu0 %vm3473_vm2, %v15154_v21  ;;  %v15158_v26 = vmul.bf16 %v11905_v25, %v11900_v51  ;;  %v3046_v45 = vor.u32 %v14811_v17, %v3043_v20  ;;  %v15159_v6 = vshrl.u32 %v11544_v10, 16  ;;  %v12115_v35 = vpack.c.bf16 %v9100_v32, %v15036_v37 }
  0x8c   :  { %v12092_v16 = vrot.slane %v15157_v48, 7  ;;  %9998 = vmatpush3.bf16.msra.mxu1 %v11634_v29  ;;  %v5067_v48 = vrot.slane %v14812_v27, 1  ;;  %v15160_v29 = vmul.bf16 %v11912_v15, %v11908_v47  ;;  %v346_v17 = vand.u32 15, %v105_v1 }
  0x8d   :  { %9937 = vmatprep.mubr.msk.bf16.mxu1 %vm3473_vm2, %v15158_v26  ;;  %v5066_v21 = vor.u32 %v5064_v42, %v15159_v6  ;;  %15161 = vst [vmem:[#allocation97_spill] sm:$0xff] %v12115_v35  ;;  %v9053_v26 = vsel %vm12070_vm12, 1.0, %v15047_v54  ;;  %v9101_v6 = vsel %vm12074_vm13, 1.0, %v15047_v54  ;;  %v9054_v15 = vsel %vm12086_vm14, 1.0, %v15047_v54 }
  0x8e   :  { %10233 = vmatprep.mubr.msk.bf16.mxu0 %vm3473_vm2, %v15160_v29  ;;  %v14814_v29 = vshrl.u32 %v11558_v57, 16  ;;  %v14815_v27 = vshll.u32 %v11588_v2, 16  ;;  %v5065_v32 = vsel %vm3307_vm4, %v5063_v5, %v5064_v42  ;;  %v3054_v50 = vor.u32 %v14813_v33, %v12092_v16 }
  0x8f   :  { %vm2025_vm15 = vcmp.ne.s32.totalorder %v563_v13, 15  ;;  %v138_v1 = vadd.s32 408, %v11249_v43  ;;  %v12134_v60 = vpack.c.bf16 %v15036_v37, %v9053_v26  ;;  %v12138_v55 = vsel %vm2984_vm7, %v12008_v62, %v3046_v45 }
  0x90   :  { %v12141_v25 = vsel %vm3307_vm4, %v5066_v21, %v5067_v48  ;;  %v107_v8 = vadd.s32 160, %v11249_v43  ;;  %v12145_v42 = vpack.c.bf16 %v9101_v6, %v15036_v37  ;;  %v12148_v5 = vpack.c.bf16 %v15036_v37, %v9054_v15 }
  0x91   :  { %15162 = vst [vmem:[#allocation98_spill] sm:$0xff] %v12134_v60  ;;  %vm1770_vm1 = vcmp.ne.s32.totalorder %v346_v17, 0  ;;  %v15165_v13 = vshrl.u32 %v11252_v44, 16  ;;  %v9102_v33 = vsel %vm2025_vm15, 1.0, %v15047_v54  ;;  %v5069_v62 = vor.u32 %v5067_v48, %v14814_v29  ;;  %v15168_v29 = vld [vmem:[#allocation67_spill] sm:$0xff] }
  0x92   :  { %15163 = vst [vmem:[#allocation99_spill] sm:$0xff] %v12145_v42  ;;  %15164 = vst [vmem:[#allocation100_spill] sm:$0xff] %v12148_v5  ;;  %v5070_v45 = vrot.slane %v14815_v27, 1  ;;  %v15166_v6 = vmul.bf16 %v11936_v58, %v11933_v40  ;;  %v15167_v17 = vmul.bf16 %v11979_v3, %v11976_v36  ;;  %v12169_v15 = vsel %vm2984_vm7, %v3043_v20, %v3054_v50  ;;  %v15177_v36 = vld [vmem:[#allocation28_spill] sm:$0xff] }
  0x93   :  { %v12152_v26 = vrot.slane %v15165_v13, 7  ;;  %v577_v13 = vand.u32 15, %v138_v1  ;;  %v15169_v21 = vmul.bf16 %v11990_v59, %v11985_v52  ;;  %v9055_v3 = vsel %vm1770_vm1, 1.0, %v15047_v54 }
  0x94   :  { %9938 = vmatmul.mubr.msk.bf16.gmra.mrb[4].mxu1 %vm3473_vm2, %v15166_v6  ;;  %10234 = vmatmul.mubr.msk.bf16.gmra.mrb[36].mxu0 %vm3473_vm2, %v15167_v17  ;;  %v15170_v6 = vmul.bf16 %v11996_v23, %v11993_v41  ;;  %v360_v17 = vand.u32 15, %v107_v8  ;;  %v140_v20 = vadd.s32 424, %v11249_v43  ;;  %v109_v50 = vadd.s32 176, %v11249_v43 }
  0x95   :  { %9941 = vmatprep.mubr.msk.bf16.mxu1 %vm3473_vm2, %v15169_v21  ;;  %v5146_v1 = vmul.bf16 %v5065_v32, %v12115_v35  ;;  %v3282_v27 = vmul.bf16 %v12138_v55, %v12134_v60  ;;  %v5147_v21 = vmul.bf16 %v12141_v25, %v12145_v42  ;;  %v12190_v48 = vpack.c.bf16 %v9102_v33, %v15036_v37 }
  0x96   :  { %10237 = vmatprep.mubr.msk.bf16.mxu0 %vm3473_vm2, %v15170_v6  ;;  %v12195_v8 = vsel %vm3307_vm4, %v5069_v62, %v5070_v45  ;;  %v15172_v6 = vshll.u32 %v11252_v44, 16  ;;  %v142_v32 = vadd.s32 440, %v11249_v43  ;;  %v12202_v10 = vpack.c.bf16 %v15036_v37, %v9055_v3 }
  0x97   :  { %15171 = vst [vmem:[#allocation101_spill] sm:$0xff] %v12190_v48  ;;  %vm2027_vm3 = vcmp.ne.s32.totalorder %v577_v13, 15  ;;  %v15174_v25 = vshrl.u32 %v11588_v2, 16  ;;  %v14834_v42 = vshll.u32 %v15175_v30, 16  ;;  %v15176_v23 = vshll.u32 %v15168_v29, 16 }
  0x98   :  { %v3062_v57 = vor.u32 %v15172_v6, %v12152_v26  ;;  %15173 = vst [vmem:[#allocation102_spill] sm:$0xff] %v12202_v10  ;;  %vm1772_vm5 = vcmp.ne.s32.totalorder %v360_v17, 0  ;;  %v591_v62 = vand.u32 15, %v140_v20  ;;  %v374_v41 = vand.u32 15, %v109_v50 }
  0x99   :  { %v5072_v33 = vor.u32 %v5070_v45, %v15174_v25  ;;  %v5073_v35 = vrot.slane %v15176_v23, 1  ;;  %v5148_v6 = vmul.bf16 %v12195_v8, %v12190_v48  ;;  %v15178_v47 = vshrl.u32 %v15177_v36, 16 }
  0x9a   :  { %v12217_v45 = vsel %vm2984_vm7, %v12092_v16, %v3062_v57  ;;  %v9103_v25 = vsel %vm2027_vm3, 1.0, %v15047_v54  ;;  %v605_v23 = vand.u32 15, %v142_v32  ;;  %v111_v17 = vadd.s32 192, %v11249_v43  ;;  %v15181_v16 = vld [vmem:[#allocation32_spill] sm:$0xff] }
  0x9b   :  { %v3067_v53 = vrot.slane %v15178_v47, 7  ;;  %v15179_v20 = vmul.bf16 %v12003_v11, %v12000_v19  ;;  %v15180_v47 = vmul.bf16 %v12057_v7, %v12039_v39  ;;  %v9056_v50 = vsel %vm1772_vm5, 1.0, %v15047_v54 }
  0x9c   :  { %v5076_v57 = vrot.slane %v14834_v42, 1  ;;  %v15182_v8 = vshrl.u32 %v15181_v16, 16  ;;  %v15183_v3 = vmul.bf16 %v12067_v46, %v12060_v49  ;;  %vm2029_vm6 = vcmp.ne.s32.totalorder %v591_v62, 15 }
  0x9d   :  { %9942 = vmatmul.mubr.msk.bf16.gmra.mrb[8].mxu1 %vm3473_vm2, %v15179_v20  ;;  %10238 = vmatmul.mubr.msk.bf16.gmra.mrb[40].mxu0 %vm3473_vm2, %v15180_v47  ;;  %vm1774_vm8 = vcmp.ne.s32.totalorder %v374_v41, 0  ;;  %v14846_v7 = vshrl.u32 %v15175_v30, 16  ;;  %v15184_v20 = vld [vmem:[#allocation74_spill] sm:$0xff]  ;;  %v15186_v13 = vshrl.u32 %v15168_v29, 16  ;;  %v144_v39 = vadd.s32 456, %v11249_v43 }
  0x9e   :  { %v12234_v32 = vrot.slane %v15182_v8, 7  ;;  %9945 = vmatprep.mubr.msk.bf16.mxu1 %vm3473_vm2, %v15183_v3  ;;  %10241 = vmatprep.mubr.msk.bf16.mxu0 %vm3473_vm2, %v5146_v1  ;;  %v15185_v8 = vshll.u32 %v15177_v36, 16  ;;  %v12252_v3 = vpack.c.bf16 %v9103_v25, %v15036_v37  ;;  %v5074_v41 = vsel %vm3307_vm4, %v5072_v33, %v5073_v35 }
  0x9f   :  { %v5075_v48 = vor.u32 %v5073_v35, %v15186_v13  ;;  %vm2031_vm10 = vcmp.ne.s32.totalorder %v605_v23, 15  ;;  %v388_v1 = vand.u32 15, %v111_v17  ;;  %v12256_v62 = vpack.c.bf16 %v15036_v37, %v9056_v50  ;;  %v15191_v35 = vld [vmem:[#allocation33_spill] sm:$0xff]  ;;  %v15195_v17 = vld [vmem:[#allocation40_spill] sm:$0xff] }
  0xa0   :  { %v3070_v2 = vor.u32 %v15185_v8, %v3067_v53  ;;  %15187 = vst [vmem:[#allocation103_spill] sm:$0xff] %v12252_v3  ;;  %v9104_v42 = vsel %vm2029_vm6, 1.0, %v15047_v54  ;;  %v9057_v47 = vsel %vm1774_vm8, 1.0, %v15047_v54  ;;  %v15189_v8 = vshll.u32 %v15181_v16, 16 }
  0xa1   :  { %15188 = vst [vmem:[#allocation104_spill] sm:$0xff] %v12256_v62  ;;  %v5078_v29 = vor.u32 %v5076_v57, %v14846_v7  ;;  %v15190_v25 = vshll.u32 %v15184_v20, 16  ;;  %v15192_v33 = vshrl.u32 %v15191_v35, 16  ;;  %v5077_v44 = vsel %vm3307_vm4, %v5075_v48, %v5076_v57 }
  0xa2   :  { %v3078_v13 = vor.u32 %v15189_v8, %v12234_v32  ;;  %v12274_v50 = vsel %vm2984_vm7, %v12152_v26, %v3070_v2  ;;  %v9105_v8 = vsel %vm2031_vm10, 1.0, %v15047_v54  ;;  %v619_v16 = vand.u32 15, %v144_v39 }
  0xa3   :  { %v5079_v36 = vrot.slane %v15190_v25, 1  ;;  %v12269_v23 = vrot.slane %v15192_v33, 7  ;;  %vm12278_vm11 = vcmp.ne.s32.totalorder %v388_v1, 0  ;;  %v14854_v25 = vshrl.u32 %v15184_v20, 16 }
  0xa4   :  { %v14853_v33 = vshll.u32 %v11716_v63, 16  ;;  %v113_v30 = vadd.s32 208, %v11249_v43  ;;  %v12289_v2 = vpack.c.bf16 %v9104_v42, %v15036_v37  ;;  %v12292_v39 = vpack.c.bf16 %v15036_v37, %v9057_v47  ;;  %v9374_v47 = vld [vmem:[%s14664_s3 + $0xe] sm:$0x3] }
  0xa5   :  { %9946 = vmatmul.mubr.msk.bf16.gmra.mrb[12].mxu1 %vm3473_vm2, %v3282_v27  ;;  %10242 = vmatmul.mubr.msk.bf16.gmra.mrb[44].mxu0 %vm3473_vm2, %v5147_v21  ;;  %v12295_v26 = vsel %vm2984_vm7, %v3067_v53, %v3078_v13  ;;  %v15198_v48 = vmul.bf16 %v12169_v15, %v12148_v5  ;;  %v12303_v27 = vpack.c.bf16 %v9105_v8, %v15036_v37  ;;  %v15200_v42 = vshll.u32 %v15191_v35, 16  ;;  %v15201_v35 = vld [vmem:[#allocation5_spill] sm:$0xff] }
  0xa6   :  { %15196 = vst [vmem:[#allocation105_spill] sm:$0xff] %v12289_v2  ;;  %15197 = vst [vmem:[#allocation106_spill] sm:$0xff] %v12292_v39  ;;  %10245 = vmatprep.mubr.msk.bf16.mxu0 %vm3473_vm2, %v5148_v6  ;;  %v12306_v21 = vsel %vm3307_vm4, %v5078_v29, %v5079_v36  ;;  %v146_v53 = vadd.s32 472, %v11249_v43  ;;  %v9058_v6 = vsel %vm12278_vm11, 1.0, %v15047_v54  ;;  %vm2033_vm12 = vcmp.ne.s32.totalorder %v619_v16, 15 }
  0xa7   :  { %9949 = vmatprep.mubr.msk.bf16.mxu1 %vm3473_vm2, %v15198_v48  ;;  %15199 = vst [vmem:[#allocation107_spill] sm:$0xff] %v12303_v27  ;;  %v3086_v57 = vor.u32 %v15200_v42, %v12269_v23  ;;  %v115_v1 = vadd.s32 224, %v11249_v43  ;;  %v148_v29 = vadd.s32 488, %v11249_v43  ;;  %v5149_v13 = vmul.bf16 %v5074_v41, %v12252_v3 }
  0xa8   :  { %v5081_v8 = vor.u32 %v5079_v36, %v14854_v25  ;;  %v5082_v48 = vrot.slane %v14853_v33, 1  ;;  %v402_v42 = vand.u32 15, %v113_v30  ;;  %v3285_v38 = vmul.bf16 %v12274_v50, %v12256_v62  ;;  %v12342_v25 = vld [vmem:[%s14662_s1 + $0xf8] sm:$0xff]  }
  0xa9   :  { %v5150_v7 = vmul.bf16 %v5077_v44, %v12289_v2  ;;  %v3286_v16 = vmul.bf16 %v12295_v26, %v12292_v39  ;;  %v12331_v34 = vand.u32 %v9374_v47, %v15201_v35  ;;  %v5151_v41 = vmul.bf16 %v12306_v21, %v12303_v27  ;;  %15203 = vst [vmem:[#allocation108_spill] sm:$0xff] %v12342_v25  ;;  %v15205_v47 = vld [vmem:[#allocation36_spill] sm:$0xff] }
  0xaa   :  { %v12336_v36 = vpack.c.bf16 %v15036_v37, %v9058_v6  ;;  %v9106_v33 = vsel %vm2033_vm12, 1.0, %v15047_v54  ;;  %v633_v30 = vand.u32 15, %v146_v53  ;;  %v12346_v44 = vsel %vm2984_vm7, %v12234_v32, %v3086_v57 }
  0xab   :  { %15204 = vst [vmem:[#allocation109_spill] sm:$0xff] %v12346_v44  ;;  %v15206_v20 = vshrl.u32 %v15205_v47, 16  ;;  %v416_v3 = vand.u32 15, %v115_v1  ;;  %v647_v21 = vand.u32 15, %v148_v29  ;;  %10327 = vmatprep.subr.bf16.mxu0 %v12331_v34  ;;  %v5083_v6 = vsel %vm3307_vm4, %v5081_v8, %v5082_v48  ;;  %v15211_v1 = vld [vmem:[#allocation37_spill] sm:$0xff] }
  0xac   :  { %15202 = vst [vmem:[#allocation5_spill] sm:$0xff] %v12336_v36  ;;  %vm12352_vm13 = vcmp.ne.s32.totalorder %v402_v42, 0  ;;  %v14868_v27 = vshll.u32 %v15205_v47, 16  ;;  %v14870_v28 = vshll.u32 %v11726_v61, 16  ;;  %v15209_v32 = vmul.bf16 %v12217_v45, %v12202_v10 }
  0xad   :  { %v3091_v2 = vrot.slane %v15206_v20, 7  ;;  %10246 = vmatmul.mubr.msk.bf16.gmra.mrb[48].mxu0 %vm3473_vm2, %v5149_v13  ;;  %v12364_v20 = vpack.c.bf16 %v9106_v33, %v15036_v37  ;;  %v15212_v29 = vshrl.u32 %v15211_v1, 16  ;;  %vm2035_vm14 = vcmp.ne.s32.totalorder %v633_v30, 15 }
  0xae   :  { %9950 = vmatmul.mubr.msk.bf16.gmra.mrb[16].mxu1 %vm3473_vm2, %v15209_v32  ;;  %10249 = vmatprep.mubr.msk.bf16.mxu0 %vm3473_vm2, %v5150_v7  ;;  %v3287_v32 = vmul.bf16 %v12346_v44, %v12336_v36  ;;  %vm1780_vm15 = vcmp.ne.s32.totalorder %v416_v3, 0  ;;  %vm2037_vm1 = vcmp.ne.s32.totalorder %v647_v21, 15  ;;  %v117_v57 = vadd.s32 240, %v11249_v43 }
  0xaf   :  { %15210 = vst [vmem:[#allocation110_spill] sm:$0xff] %v12364_v20  ;;  %v12369_v8 = vrot.slane %v15212_v29, 7  ;;  %9953 = vmatprep.mubr.msk.bf16.mxu1 %vm3473_vm2, %v3285_v38  ;;  %v150_v29 = vadd.s32 504, %v11249_v43  ;;  %v9059_v38 = vsel %vm12352_vm13, 1.0, %v15047_v54  ;;  %v3094_v7 = vor.u32 %v14868_v27, %v3091_v2 }
  0xb0   :  { %v5085_v30 = vrot.slane %v14870_v28, 1  ;;  %v119_v13 = vadd.s32 256, %v11249_v43  ;;  %v5152_v33 = vmul.bf16 %v5083_v6, %v12364_v20  ;;  %v9107_v3 = vsel %vm2035_vm14, 1.0, %v15047_v54 }
  0xb1   :  { %v15213_v21 = vshrl.u32 %v11716_v63, 16  ;;  %v15214_v24 = vshll.u32 %v15211_v1, 16  ;;  %v9060_v36 = vsel %vm1780_vm15, 1.0, %v15047_v54  ;;  %v9108_v27 = vsel %vm2037_vm1, 1.0, %v15047_v54  ;;  %v15218_v63 = vld [vmem:[#allocation44_spill] sm:$0xff] }
  0xb2   :  { %v15215_v47 = vshrl.u32 %v11726_v61, 16  ;;  %v15216_v39 = vshll.u32 %v12342_v25, 16  ;;  %v15217_v6 = vshrl.u32 %v15195_v17, 16  ;;  %v661_v62 = vand.u32 15, %v150_v29  ;;  %v15222_v29 = vld [vmem:[#allocation38_spill] sm:$0xff] }
  0xb3   :  { %v5084_v42 = vor.u32 %v5082_v48, %v15213_v21  ;;  %v3102_v53 = vor.u32 %v15214_v24, %v12369_v8  ;;  %v14889_v48 = vshrl.u32 %v15218_v63, 16  ;;  %v430_v21 = vand.u32 15, %v117_v57 }
  0xb4   :  { %v5087_v28 = vor.u32 %v5085_v30, %v15215_v47  ;;  %v5088_v44 = vrot.slane %v15216_v39, 1  ;;  %v12403_v20 = vrot.slane %v15217_v6, 7  ;;  %v12407_v24 = vpack.c.bf16 %v15036_v37, %v9059_v38 }
  0xb5   :  { %v12411_v1 = vsel %vm2984_vm7, %v12269_v23, %v3094_v7  ;;  %v12414_v47 = vpack.c.bf16 %v9107_v3, %v15036_v37  ;;  %v444_v61 = vand.u32 15, %v119_v13  ;;  %10250 = vmatmul.mubr.msk.bf16.gmra.mrb[52].mxu0 %vm3473_vm2, %v5151_v41  ;;  %v12419_v39 = vpack.c.bf16 %v15036_v37, %v9060_v36  ;;  %v15224_v13 = vld [vmem:[#allocation47_spill] sm:$0xff] }
  0xb6   :  { %15219 = vst [vmem:[#allocation111_spill] sm:$0xff] %v12407_v24  ;;  %9954 = vmatmul.mubr.msk.bf16.gmra.mrb[20].mxu1 %vm3473_vm2, %v3286_v16  ;;  %v12422_v57 = vpack.c.bf16 %v9108_v27, %v15036_v37  ;;  %v15223_v38 = vshrl.u32 %v15222_v29, 16  ;;  %v14883_v23 = vshll.u32 %v15222_v29, 16  ;;  %10253 = vmatprep.mubr.msk.bf16.mxu0 %vm3473_vm2, %v5152_v33  ;;  %v5086_v16 = vsel %vm3307_vm4, %v5084_v42, %v5085_v30  ;;  %v15254_v29 = vld [vmem:[#allocation70_spill] sm:$0xff] }
  0xb7   :  { %15220 = vst [vmem:[#allocation112_spill] sm:$0xff] %v12414_v47  ;;  %9957 = vmatprep.mubr.msk.bf16.mxu1 %vm3473_vm2, %v3287_v32  ;;  %v12433_v41 = vsel %vm2984_vm7, %v3091_v2, %v3102_v53  ;;  %v5089_v36 = vsel %vm3307_vm4, %v5087_v28, %v5088_v44  ;;  %v14888_v27 = vshrl.u32 %v12342_v25, 16  ;;  %vm1782_vm3 = vcmp.ne.s32.totalorder %v430_v21, 0 }
  0xb8   :  { %15221 = vst [vmem:[#allocation113_spill] sm:$0xff] %v12422_v57  ;;  %v12426_v6 = vrot.slane %v15223_v38, 7  ;;  %vm2039_vm5 = vcmp.ne.s32.totalorder %v661_v62, 15  ;;  %v121_v3 = vadd.s32 272, %v11249_v43  ;;  %v3288_v32 = vmul.bf16 %v12411_v1, %v12407_v24 }
  0xb9   :  { %vm3435_vm6 = vcmask 1047552   ;;  %vm1784_vm8 = vcmp.ne.s32.totalorder %v444_v61, 0  ;;  %v123_v42 = vadd.s32 288, %v11249_v43  ;;  %v5153_v2 = vmul.bf16 %v5086_v16, %v12414_v47 }
  0xba   :  { %v3289_v28 = vmul.bf16 %v12433_v41, %v12419_v39  ;;  %v5154_v33 = vmul.bf16 %v5089_v36, %v12422_v57  ;;  %v3110_v62 = vor.u32 %v14883_v23, %v12426_v6  ;;  %v9061_v30 = vsel %vm1782_vm3, 1.0, %v15047_v54  ;;  %vm12457_vm10 = vmand %vm3435_vm6, %vm3307_vm4 }
  0xbb   :  { %v9109_v53 = vsel %vm2039_vm5, 1.0, %v15047_v54  ;;  %v5090_v61 = vor.u32 %v5088_v44, %v14888_v27  ;;  %v15225_v21 = vshll.u32 %v15195_v17, 16  ;;  %v15226_v16 = vmov 0 }
  0xbc   :  { %v15227_v16 = vsel %vm12457_vm10, 4294967295, %v15226_v16  ;;  %v9062_v36 = vsel %vm1784_vm8, 1.0, %v15047_v54  ;;  %v458_v7 = vand.u32 15, %v121_v3  ;;  %v3123_v23 = vrot.slane %v14889_v48, 7 }
  0xbd   :  { %v3118_v38 = vor.u32 %v15225_v21, %v12403_v20  ;;  %15228 = vst [vmem:[#allocation114_spill] sm:$0xff] %v15227_v16  ;;  %v472_v47 = vand.u32 15, %v123_v42  ;;  %10254 = vmatmul.mubr.msk.bf16.gmra.mrb[56].mxu0 %vm3473_vm2, %v5153_v2  ;;  %v12468_v44 = vpack.c.bf16 %v15036_v37, %v9061_v30  ;;  %v12472_v21 = vsel %vm2984_vm7, %v12369_v8, %v3110_v62 }
  0xbe   :  { %9958 = vmatmul.mubr.msk.bf16.gmra.mrb[24].mxu1 %vm3473_vm2, %v3288_v32  ;;  %v12475_v27 = vpack.c.bf16 %v9109_v53, %v15036_v37  ;;  %v6773_v3 = vsel %vm11783_vm9, 0, %v11865_v18  ;;  %10257 = vmatprep.mubr.msk.bf16.mxu0 %vm3473_vm2, %v5154_v33  ;;  %v5123_v32 = vsel %vm12457_vm10, %v5090_v61, 0  ;;  %v12485_v42 = vpack.c.bf16 %v15036_v37, %v9062_v36  ;;  %v15231_v33 = vld [vmem:[#allocation48_spill] sm:$0xff]  ;;  %v15232_v61 = vld [vmem:[#allocation53_spill] sm:$0xff] }
  0xbf   :  { %9961 = vmatprep.mubr.msk.bf16.mxu1 %vm3473_vm2, %v3289_v28  ;;  %v3119_v8 = vsel %vm2984_vm7, %v12426_v6, %v3118_v38  ;;  %v15230_v2 = vshrl.u32 %v15224_v13, 16  ;;  %vm1786_vm11 = vcmp.ne.s32.totalorder %v458_v7, 0  ;;  %v125_v18 = vadd.s32 304, %v11249_v43 }
  0xc0   :  { %15229 = vst [vmem:[#allocation115_spill] sm:$0xff] %v12475_v27  ;;  %v127_v28 = vadd.s32 320, %v11249_v43  ;;  %vm1788_vm12 = vcmp.ne.s32.totalorder %v472_v47, 0  ;;  %v3290_v36 = vmul.bf16 %v12472_v21, %v12468_v44  ;;  %v5155_v38 = vmul.bf16 %v5123_v32, %v12475_v27  ;;  %v15242_v27 = vld [vmem:[#allocation59_spill] sm:$0xff] }
  0xc1   :  { %v3131_v62 = vrot.slane %v15230_v2, 7  ;;  %v3291_v57 = vmul.bf16 %v3119_v8, %v12485_v42  ;;  %v6774_v7 = vmul.bf16 %v6773_v3, %v11805_v31  ;;  %v9063_v2 = vsel %vm1786_vm11, 1.0, %v15047_v54 }
  0xc2   :  { %v15233_v30 = vshll.u32 %v15218_v63, 16  ;;  %v9064_v47 = vsel %vm1788_vm12, 1.0, %v15047_v54  ;;  %v15234_v53 = vshll.u32 %v15224_v13, 16  ;;  %v486_v48 = vand.u32 15, %v125_v18 }
  0xc3   :  { %v500_v17 = vand.u32 15, %v127_v28  ;;  %v12512_v32 = vpack.c.bf16 %v15036_v37, %v9063_v2  ;;  %v15236_v3 = vshrl.u32 %v15231_v33, 16  ;;  %v12522_v28 = vpack.c.bf16 %v15036_v37, %v9064_v47 }
  0xc4   :  { %v3126_v22 = vor.u32 %v15233_v30, %v3123_v23  ;;  %v12507_v16 = vor.u32 %v15234_v53, %v3131_v62  ;;  %v15238_v53 = vshrl.u32 %v15232_v61, 16  ;;  %vm1790_vm13 = vcmp.ne.s32.totalorder %v486_v48, 0 }
  0xc5   :  { %10258 = vmatmul.mubr.msk.bf16.gmra.mrb[60].mxu0 %vm3473_vm2, %v5155_v38  ;;  %15235 = vst [vmem:[#allocation116_spill] sm:$0xff] %v12512_v32  ;;  %v3139_v8 = vrot.slane %v15236_v3, 7  ;;  %15237 = vst [vmem:[#allocation117_spill] sm:$0xff] %v12522_v28  ;;  %vm1792_vm14 = vcmp.ne.s32.totalorder %v500_v17, 0  ;;  %v15239_v3 = vld [vmem:[#allocation54_spill] sm:$0xff]  ;;  %v15240_v47 = vshll.u32 %v15231_v33, 16  ;;  %v6776_v30 = vmul.bf16 %v11990_v59, %v11900_v51 }
  0xc6   :  { %9962 = vmatmul.mubr.msk.bf16.gmra.mrb[28].mxu1 %vm3473_vm2, %v3290_v36  ;;  %10263 = vmatprep.mubr.msk.bf16.mxu0 %vm3473_vm2, %v6774_v7  ;;  %v3127_v18 = vsel %vm2984_vm7, %v12403_v20, %v3126_v22  ;;  %v3147_v36 = vrot.slane %v15238_v53, 7  ;;  %v3135_v2 = vsel %vm2984_vm7, %v3123_v23, %v12507_v16  ;;  %v131_v7 = vadd.s32 352, %v11249_v43  ;;  %v15246_v59 = vld [vmem:[#allocation64_spill] sm:$0xff] }
  0xc7   :  { %9965 = vmatprep.mubr.msk.bf16.mxu1 %vm3473_vm2, %v3291_v57  ;;  %v129_v57 = vadd.s32 336, %v11249_v43  ;;  %v6775_v22 = vmul.bf16 %v11936_v58, %v11855_v0  ;;  %v3292_v20 = vmul.bf16 %v3127_v18, %v12512_v32  ;;  %v3142_v53 = vor.u32 %v15240_v47, %v3139_v8 }
  0xc8   :  { %v3293_v38 = vmul.bf16 %v3135_v2, %v12522_v28  ;;  %v9065_v23 = vsel %vm1790_vm13, 1.0, %v15047_v54  ;;  %v9066_v17 = vsel %vm1792_vm14, 1.0, %v15047_v54  ;;  %v15241_v48 = vshll.u32 %v15232_v61, 16 }
  0xc9   :  { %v514_v58 = vand.u32 15, %v129_v57  ;;  %v528_v0 = vand.u32 15, %v131_v7  ;;  %v133_v18 = vadd.s32 368, %v11249_v43  ;;  %v12549_v2 = vpack.c.bf16 %v15036_v37, %v9065_v23 }
  0xca   :  { %v3150_v31 = vor.u32 %v15241_v48, %v3147_v36  ;;  %v12552_v47 = vpack.c.bf16 %v15036_v37, %v9066_v17  ;;  %v15245_v48 = vshrl.u32 %v15239_v3, 16  ;;  %v14904_v63 = vshll.u32 %v15239_v3, 16 }
  0xcb   :  { %15243 = vst [vmem:[#allocation118_spill] sm:$0xff] %v12549_v2  ;;  %v14903_v57 = vshrl.u32 %v15246_v59, 16  ;;  %v12561_v7 = vsel %vm2984_vm7, %v3131_v62, %v3142_v53  ;;  %vm1794_vm15 = vcmp.ne.s32.totalorder %v514_v58, 0  ;;  %vm1796_vm1 = vcmp.ne.s32.totalorder %v528_v0, 0 }
  0xcc   :  { %15244 = vst [vmem:[#allocation119_spill] sm:$0xff] %v12552_v47  ;;  %v3155_v13 = vrot.slane %v15245_v48, 7  ;;  %v542_v62 = vand.u32 15, %v133_v18  ;;  %v6778_v53 = vmul.bf16 %v12067_v46, %v11985_v52  ;;  %v9067_v48 = vsel %vm1794_vm15, 1.0, %v15047_v54 }
  0xcd   :  { %10264 = vmatmul.mubr.msk.bf16.vlgmr.msra.gmra.mrb[0].mxu0 %vm3473_vm2, %v6775_v22  ;;  %v12564_v22 = vsel %vm2984_vm7, %v3139_v8, %v3150_v31  ;;  %v135_v31 = vadd.s32 384, %v11249_v43  ;;  %v3294_v8 = vmul.bf16 %v12561_v7, %v12549_v2  ;;  %v3171_v0 = vrot.slane %v14903_v57, 7 }
  0xce   :  { %9966 = vmatmul.mubr.msk.bf16.gmra.mrb[32].mxu1 %vm3473_vm2, %v3292_v20  ;;  %10328 = vmatpush3.bf16.msra.mxu0 %v12331_v34  ;;  %v15247_v20 = vshrl.u32 %v15242_v27, 16  ;;  %v9242_v34 = vld [vmem:[%s14664_s3 + $0x6] sm:$0x3]  ;;  %v3158_v58 = vor.u32 %v14904_v63, %v3155_v13  ;;  %v15249_v51 = vshll.u32 %v15242_v27, 16  ;;  %vm1798_vm3 = vcmp.ne.s32.totalorder %v542_v62, 0 }
  0xcf   :  { %9969 = vmatprep.mubr.msk.bf16.mxu1 %vm3473_vm2, %v3293_v38  ;;  %10267 = vmatprep.mubr.msk.bf16.mxu0 %vm3473_vm2, %v6776_v30  ;;  %v6777_v38 = vmul.bf16 %v12003_v11, %v11933_v40  ;;  %v3295_v30 = vmul.bf16 %v12564_v22, %v12552_v47  ;;  %v14905_v11 = vshll.u32 %v15246_v59, 16  ;;  %v12589_v18 = vand.u32 %v9242_v34, %v15201_v35 }
  0xd0   :  { %v3163_v23 = vrot.slane %v15247_v20, 7  ;;  %v15248_v20 = vld [vmem:[#allocation65_spill] sm:$0xff]  ;;  %v9068_v40 = vsel %vm1796_vm1, 1.0, %v15047_v54  ;;  %v556_v52 = vand.u32 15, %v135_v31  ;;  %v12599_v57 = vpack.c.bf16 %v15036_v37, %v9067_v48 }
  0xd1   :  { %v14906_v17 = vshrl.u32 %v15248_v20, 16  ;;  %10063 = vmatprep.subr.bf16.mxu1 %v12589_v18  ;;  %v137_v34 = vadd.s32 400, %v11249_v43  ;;  %v12609_v62 = vpack.c.bf16 %v15036_v37, %v9068_v40  ;;  %v139_v40 = vadd.s32 416, %v11249_v43 }
  0xd2   :  { %v3166_v46 = vor.u32 %v15249_v51, %v3163_v23  ;;  %15250 = vst [vmem:[#allocation65_spill] sm:$0xff] %v12599_v57  ;;  %v12606_v51 = vsel %vm2984_vm7, %v3147_v36, %v3158_v58  ;;  %v6779_v36 = vmul.bf16 %v12138_v55, %v12000_v19  ;;  %vm1800_vm5 = vcmp.ne.s32.totalorder %v556_v52, 0 }
  0xd3   :  { %15251 = vst [vmem:[#allocation120_spill] sm:$0xff] %v12609_v62  ;;  %v3179_v48 = vrot.slane %v14906_v17, 7  ;;  %v3296_v58 = vmul.bf16 %v12606_v51, %v12599_v57  ;;  %v143_v52 = vadd.s32 448, %v11249_v43  ;;  %v9070_v63 = vsel %vm1800_vm5, 1.0, %v15047_v54 }
  0xd4   :  { %v12614_v31 = vsel %vm2984_vm7, %v3155_v13, %v3166_v46  ;;  %v6780_v13 = vmul.bf16 %v12169_v15, %v12060_v49  ;;  %v570_v46 = vand.u32 15, %v137_v34  ;;  %v15253_v15 = vshrl.u32 %v11583_v56, 16 }
  0xd5   :  { %10268 = vmatmul.mubr.msk.bf16.gmra.mrb[4].mxu0 %vm3473_vm2, %v6777_v38  ;;  %v3174_v38 = vor.u32 %v14905_v11, %v3171_v0  ;;  %v141_v11 = vadd.s32 432, %v11249_v43  ;;  %v3297_v17 = vmul.bf16 %v12614_v31, %v12609_v62  ;;  %v14918_v49 = vshll.u32 %v11583_v56, 16 }
  0xd6   :  { %9970 = vmatmul.mubr.msk.bf16.gmra.mrb[36].mxu1 %vm3473_vm2, %v3294_v8  ;;  %10271 = vmatprep.mubr.msk.bf16.mxu0 %vm3473_vm2, %v6778_v53  ;;  %v9069_v8 = vsel %vm1798_vm3, 1.0, %v15047_v54  ;;  %v3187_v34 = vrot.slane %v15253_v15, 7  ;;  %v14917_v25 = vshrl.u32 %v15254_v29, 16  ;;  %v584_v62 = vand.u32 15, %v139_v40 }
  0xd7   :  { %9973 = vmatprep.mubr.msk.bf16.mxu1 %vm3473_vm2, %v3295_v30  ;;  %v14916_v30 = vshll.u32 %v15248_v20, 16  ;;  %v12632_v53 = vpack.c.bf16 %v15036_v37, %v9069_v8  ;;  %v12635_v55 = vsel %vm2984_vm7, %v3163_v23, %v3174_v38  ;;  %v15255_v8 = vld [vmem:[#allocation75_spill] sm:$0xff]  ;;  %vm1802_vm6 = vcmp.ne.s32.totalorder %v570_v46, 0 }
  0xd8   :  { %v14919_v57 = vshrl.u32 %v15255_v8, 16  ;;  %v598_v38 = vand.u32 15, %v141_v11  ;;  %v6781_v40 = vmul.bf16 %v12217_v45, %v12134_v60  ;;  %v612_v23 = vand.u32 15, %v143_v52 }
  0xd9   :  { %15252 = vst [vmem:[#allocation121_spill] sm:$0xff] %v12632_v53  ;;  %v3182_v19 = vor.u32 %v14916_v30, %v3179_v48  ;;  %v3298_v15 = vmul.bf16 %v12635_v55, %v12632_v53  ;;  %v12656_v30 = vpack.c.bf16 %v15036_v37, %v9070_v63  ;;  %v3190_v11 = vor.u32 %v14918_v49, %v3187_v34 }
  0xda   :  { %v9071_v46 = vsel %vm1802_vm6, 1.0, %v15047_v54  ;;  %vm1804_vm8 = vcmp.ne.s32.totalorder %v584_v62, 0  ;;  %v3203_v45 = vrot.slane %v14917_v25, 7  ;;  %v145_v63 = vadd.s32 464, %v11249_v43 }
  0xdb   :  { %15256 = vst [vmem:[#allocation70_spill] sm:$0xff] %v12656_v30  ;;  %vm1806_vm11 = vcmp.ne.s32.totalorder %v598_v38, 0  ;;  %v6782_v62 = vmul.bf16 %v12274_v50, %v12148_v5  ;;  %vm1808_vm12 = vcmp.ne.s32.totalorder %v612_v23, 0  ;;  %v147_v25 = vadd.s32 480, %v11249_v43 }
  0xdc   :  { %v12687_v52 = vpack.c.bf16 %v15036_v37, %v9071_v46  ;;  %v6783_v60 = vmul.bf16 %v12295_v26, %v12202_v10  ;;  %v9073_v50 = vsel %vm1806_vm11, 1.0, %v15047_v54  ;;  %v626_v23 = vand.u32 15, %v145_v63  ;;  %v15264_v63 = vld [vmem:[#allocation104_spill] sm:$0xff]  ;;  %v15265_v10 = vld [vmem:[#allocation109_spill] sm:$0xff] }
  0xdd   :  { %10272 = vmatmul.mubr.msk.bf16.gmra.mrb[8].mxu0 %vm3473_vm2, %v6779_v36  ;;  %v12695_v38 = vsel %vm2984_vm7, %v3179_v48, %v3190_v11  ;;  %v15260_v49 = vshll.u32 %v15254_v29, 16  ;;  %v15261_v46 = vshll.u32 %v15255_v8, 16  ;;  %v640_v11 = vand.u32 15, %v147_v25 }
  0xde   :  { %9974 = vmatmul.mubr.msk.bf16.gmra.mrb[40].mxu1 %vm3473_vm2, %v3296_v58  ;;  %10275 = vmatprep.mubr.msk.bf16.mxu0 %vm3473_vm2, %v6780_v13  ;;  %v12659_v58 = vsel %vm2984_vm7, %v3171_v0, %v3182_v19  ;;  %v14922_v13 = vshll.u32 %v11629_v14, 16  ;;  %v12673_v0 = vrot.slane %v14919_v57, 7  ;;  %v9072_v19 = vsel %vm1804_vm8, 1.0, %v15047_v54  ;;  %15259 = vst [vmem:[#allocation123_spill] sm:$0xff] %v12687_v52 }
  0xdf   :  { %9977 = vmatprep.mubr.msk.bf16.mxu1 %vm3473_vm2, %v3297_v17  ;;  %15257 = vst [vmem:[#allocation122_spill] sm:$0xff] %v12659_v58  ;;  %v15258_v17 = vshrl.u32 %v11629_v14, 16  ;;  %v3206_v5 = vor.u32 %v15260_v49, %v3203_v45  ;;  %v12706_v26 = vpack.c.bf16 %v15036_v37, %v9072_v19  ;;  %v6784_v53 = vmul.bf16 %v15265_v10, %v15264_v63  ;;  %v11011_v19 = vld [vmem:[%s14662_s1 + $0x78] sm:$0xff]   ;;  %v9407_v10 = vld [vmem:[%s14664_s3 + $0x10] sm:$0x3] }
  0xe0   :  { %vm1810_vm13 = vcmp.ne.s32.totalorder %v626_v23, 0  ;;  %v15269_v25 = vshrl.u32 %v11745_v12, 16  ;;  %vm1812_vm14 = vcmp.ne.s32.totalorder %v640_v11, 0  ;;  %v149_v63 = vadd.s32 496, %v11249_v43 }
  0xe1   :  { %v3195_v36 = vrot.slane %v15258_v17, 7  ;;  %v3299_v17 = vmul.bf16 %v12659_v58, %v12656_v30  ;;  %v3214_v30 = vor.u32 %v15261_v46, %v12673_v0  ;;  %15262 = vst [vmem:[#allocation124_spill] sm:$0xff] %v12706_v26  ;;  %v12717_v46 = vpack.c.bf16 %v15036_v37, %v9073_v50  ;;  %v15272_v58 = vld [vmem:[#allocation5_spill] sm:$0xff] }
  0xe2   :  { %v3300_v50 = vmul.bf16 %v12695_v38, %v12687_v52  ;;  %v6786_v52 = vmul.bf16 %v12433_v41, %v15272_v58  ;;  %v15274_v11 = vshll.u32 %v11745_v12, 16 }
  0xe3   :  { %v3198_v57 = vor.u32 %v14922_v13, %v3195_v36  ;;  %v9074_v13 = vsel %vm1808_vm12, 1.0, %v15047_v54  ;;  %15266 = vst [vmem:[#allocation109_spill] sm:$0xff] %v12717_v46  ;;  %v12743_v23 = vsel %vm2984_vm7, %v3203_v45, %v3214_v30 }
  0xe4   :  { %15271 = vst [vmem:[#allocation127_spill] sm:$0xff] %v12743_v23 }
  0xe5   :  { %10276 = vmatmul.mubr.msk.bf16.gmra.mrb[12].mxu0 %vm3473_vm2, %v6781_v40  ;;  %v14931_v40 = vshll.u32 %v11704_v4, 16  ;;  %v12712_v49 = vsel %vm2984_vm7, %v3187_v34, %v3198_v57  ;;  %v12729_v57 = vrot.slane %v15269_v25, 7 }
  0xe6   :  { %9978 = vmatmul.mubr.msk.bf16.gmra.mrb[44].mxu1 %vm3473_vm2, %v3298_v15  ;;  %10279 = vmatprep.mubr.msk.bf16.mxu0 %vm3473_vm2, %v6782_v62  ;;  %v15263_v15 = vshrl.u32 %v11704_v4, 16  ;;  %v12725_v62 = vpack.c.bf16 %v15036_v37, %v9074_v13  ;;  %v3301_v25 = vmul.bf16 %v12712_v49, %v12706_v26 }
  0xe7   :  { %9981 = vmatprep.mubr.msk.bf16.mxu1 %vm3473_vm2, %v3299_v17  ;;  %v12722_v17 = vmul.bf16 1.0|1.0, %v11011_v19  ;;  %v15270_v19 = vld [vmem:[#allocation106_spill] sm:$0xff]  ;;  %v3230_v43 = vor.u32 %v15274_v11, %v12729_v57  ;;  %v15278_v11 = vshll.u32 %v15232_v61, 16 }
  0xe8   :  { %v3219_v48 = vrot.slane %v15263_v15, 7  ;;  %15268 = vst [vmem:[#allocation126_spill] sm:$0xff] %v12725_v62  ;;  %v12738_v15 = vsel %vm2984_vm7, %v3195_v36, %v3206_v5  ;;  %v6785_v13 = vmul.bf16 %v12411_v1, %v15270_v19  ;;  %v9075_v5 = vsel %vm1810_vm13, 1.0, %v15047_v54 }
  0xe9   :  { %15267 = vst [vmem:[#allocation125_spill] sm:$0xff] %v12722_v17  ;;  %v12755_v1 = vand.u32 %v9407_v10, %v15201_v35  ;;  %v3302_v30 = vmul.bf16 %v12738_v15, %v12717_v46  ;;  %v3303_v45 = vmul.bf16 %v12743_v23, %v12725_v62  ;;  %v9076_v35 = vsel %vm1812_vm14, 1.0, %v15047_v54  ;;  %v12774_v10 = vld [vmem:[%s14662_s1 + $0x80] sm:$0xff]  }
  0xea   :  { %v3222_v34 = vor.u32 %v14931_v40, %v3219_v48  ;;  %v15275_v40 = vshll.u32 %v15231_v33, 16  ;;  %15277 = vst [vmem:[#allocation130_spill] sm:$0xff] %v12774_v10  ;;  %v12777_v36 = vmul.bf16 0.0|0.0, %v12774_v10  ;;  %v3367_v58 = vrot.slane %v15278_v11, 1 }
  0xeb   :  { %15273 = vst [vmem:[#allocation128_spill] sm:$0xff] %v12755_v1  ;;  %v654_v62 = vand.u32 15, %v149_v63  ;;  %v15281_v46 = vshrl.u32 %v12722_v17, 16  ;;  %10393 = vmatprep.subr.bf16.mxu0 %v12755_v1  ;;  %v12811_v63 = vsel %vm2984_vm7, %v3219_v48, %v3230_v43  ;;  %v15290_v43 = vshll.u32 %v15246_v59, 16 }
  0xec   :  { %v12766_v41 = vrot.slane %v15275_v40, 1  ;;  %v15279_v40 = vshll.u32 %v15239_v3, 16  ;;  %v15291_v1 = vshll.u32 %v15248_v20, 16 }
  0xed   :  { %10280 = vmatmul.mubr.msk.bf16.gmra.mrb[16].mxu0 %vm3473_vm2, %v6783_v60  ;;  %v12786_v60 = vpack.c.bf16 %v15036_v37, %v9075_v5  ;;  %v12795_v11 = vrot.slane %v15281_v46, 7  ;;  %v12808_v5 = vpack.c.bf16 %v15036_v37, %v9076_v35  ;;  %v3236_v46 = vshll.u32 %v11758_v9, 16 }
  0xee   :  { %15276 = vst [vmem:[#allocation129_spill] sm:$0xff] %v12766_v41  ;;  %9982 = vmatmul.mubr.msk.bf16.gmra.mrb[48].mxu1 %vm3473_vm2, %v3300_v50  ;;  %v3370_v19 = vrot.slane %v15279_v40, 1  ;;  %10283 = vmatprep.mubr.msk.bf16.mxu0 %vm3473_vm2, %v6784_v53  ;;  %v12790_v50 = vsel %vm2984_vm7, %v12673_v0, %v3222_v34  ;;  %v15282_v40 = vshrl.u32 %v11758_v9, 16  ;;  %v15283_v53 = vshrl.u32 %v15231_v33, 16 }
  0xef   :  { %9985 = vmatprep.mubr.msk.bf16.mxu1 %vm3473_vm2, %v3301_v25  ;;  %15280 = vst [vmem:[#allocation131_spill] sm:$0xff] %v12786_v60  ;;  %v15284_v0 = vshll.u32 %v15242_v27, 16  ;;  %vm12824_vm15 = vcmp.ne.s32.totalorder %v654_v62, 0  ;;  %v15293_v62 = vshll.u32 %v11583_v56, 16 }
  0xf0   :  { %v12799_v23 = vrot.slane %v15282_v40, 7  ;;  %v3366_v25 = vor.u32 %v12766_v41, %v15283_v53  ;;  %v15285_v40 = vshrl.u32 %v15232_v61, 16  ;;  %v15286_v53 = vshrl.u32 %v15239_v3, 16 }
  0xf1   :  { %v3373_v34 = vrot.slane %v15284_v0, 1  ;;  %v15287_v0 = vshrl.u32 %v15242_v27, 16  ;;  %v15294_v3 = vshll.u32 %v11629_v14, 16 }
  0xf2   :  { %v3369_v10 = vor.u32 %v3367_v58, %v15285_v40  ;;  %v12818_v33 = vsel %vm3307_vm4, %v3366_v25, %v3367_v58  ;;  %v3372_v41 = vor.u32 %v3370_v19, %v15286_v53  ;;  %v3376_v40 = vrot.slane %v15290_v43, 1 }
  0xf3   :  { %v3375_v35 = vor.u32 %v3373_v34, %v15287_v0  ;;  %v3379_v58 = vrot.slane %v15291_v1, 1  ;;  %v15292_v25 = vshll.u32 %v12722_v17, 16  ;;  %v3382_v0 = vrot.slane %v15293_v62, 1 }
  0xf4   :  { %v12829_v48 = vsel %vm3307_vm4, %v3369_v10, %v3370_v19  ;;  %v12839_v27 = vsel %vm3307_vm4, %v3372_v41, %v3373_v34  ;;  %v3385_v19 = vrot.slane %v15294_v3, 1  ;;  %v15296_v1 = vshrl.u32 %v15246_v59, 16 }
  0xf5   :  { %v6603_v53 = vor.u32 %v15292_v25, %v12795_v11  ;;  %v12847_v43 = vsel %vm3307_vm4, %v3375_v35, %v3376_v40  ;;  %v15297_v17 = vshrl.u32 %v15248_v20, 16  ;;  %10284 = vmatmul.mubr.msk.bf16.gmra.mrb[20].mxu0 %vm3473_vm2, %v6785_v13  ;;  %v15298_v41 = vshrl.u32 %v12777_v36, 16 }
  0xf6   :  { %15295 = vst [vmem:[#allocation132_spill] sm:$0xff] %v12847_v43  ;;  %v3378_v61 = vor.u32 %v3376_v40, %v15296_v1  ;;  %9986 = vmatmul.mubr.msk.bf16.gmra.mrb[52].mxu1 %vm3473_vm2, %v3302_v30  ;;  %v15299_v3 = vshrl.u32 %v11583_v56, 16  ;;  %v15300_v10 = vshrl.u32 %v11629_v14, 16  ;;  %v15301_v43 = vshll.u32 %v15254_v29, 16  ;;  %10287 = vmatprep.mubr.msk.bf16.mxu0 %vm3473_vm2, %v6786_v52 }
  0xf7   :  { %v3381_v25 = vor.u32 %v3379_v58, %v15297_v17  ;;  %v6608_v34 = vrot.slane %v15298_v41, 7  ;;  %9989 = vmatprep.mubr.msk.bf16.mxu1 %vm3473_vm2, %v3303_v45  ;;  %v15302_v30 = vshll.u32 %v15255_v8, 16  ;;  %v15303_v1 = vshll.u32 %v11704_v4, 16 }
  0xf8   :  { %v3384_v62 = vor.u32 %v3382_v0, %v15299_v3  ;;  %v3387_v35 = vor.u32 %v3385_v19, %v15300_v10  ;;  %v3388_v59 = vrot.slane %v15301_v43, 1  ;;  %v12866_v17 = vsel %vm3307_vm4, %v3378_v61, %v3379_v58 }
  0xf9   :  { %v12869_v13 = vsel %vm3307_vm4, %v3381_v25, %v3382_v0  ;;  %v3391_v40 = vrot.slane %v15302_v30, 1  ;;  %v3394_v41 = vrot.slane %v15303_v1, 1  ;;  %v6787_v10 = vmul.bf16 %v12472_v21, %v12407_v24 }
  0xfa   :  { %v6604_v45 = vsel %vm2984_vm7, %v12426_v6, %v6603_v53  ;;  %v12880_v52 = vsel %vm3307_vm4, %v3384_v62, %v3385_v19  ;;  %v12883_v61 = vsel %vm3307_vm4, %v3387_v35, %v3388_v59  ;;  %v3304_v58 = vmul.bf16 %v12790_v50, %v12786_v60 }
  0xfb   :  { %v3238_v0 = vor.u32 %v3236_v46, %v12799_v23  ;;  %v15304_v43 = vshrl.u32 %v15254_v29, 16  ;;  %v15305_v3 = vshrl.u32 %v15255_v8, 16  ;;  %v3305_v6 = vmul.bf16 %v12811_v63, %v12808_v5  ;;  %v15309_v8 = vld [vmem:[#allocation8_spill] sm:$0xff] }
  0xfc   :  { %v9077_v53 = vsel %vm12824_vm15, 1.0, %v15047_v54  ;;  %v15306_v19 = vshrl.u32 %v11704_v4, 16  ;;  %v15307_v35 = vshll.u32 %v11745_v12, 16  ;;  %v6788_v1 = vmul.bf16 %v6604_v45, %v12419_v39 }
  0xfd   :  { %v3390_v25 = vor.u32 %v3388_v59, %v15304_v43  ;;  %v3393_v21 = vor.u32 %v3391_v40, %v15305_v3  ;;  %v15308_v59 = vshll.u32 %v12777_v36, 16  ;;  %v15310_v26 = vshll.u32 %v15309_v8, 16  ;;  %10288 = vmatmul.mubr.msk.bf16.gmra.mrb[24].mxu0 %vm3473_vm2, %v6787_v10 }
  0xfe   :  { %v3396_v62 = vor.u32 %v3394_v41, %v15306_v19  ;;  %v3397_v30 = vrot.slane %v15307_v35, 1  ;;  %9990 = vmatmul.mubr.msk.bf16.gmra.mrb[56].mxu1 %vm3473_vm2, %v3304_v58  ;;  %v12918_v45 = vpack.c.bf16 %v15036_v37, %v9077_v53  ;;  %v15312_v19 = vshrl.u32 %v11745_v12, 16  ;;  %10291 = vmatprep.mubr.msk.bf16.mxu0 %vm3473_vm2, %v6788_v1 }
  0xff   :  { %v6611_v43 = vor.u32 %v15308_v59, %v6608_v34  ;;  %v12905_v3 = vsel %vm3307_vm4, %v3390_v25, %v3391_v40  ;;  %v12908_v24 = vsel %vm3307_vm4, %v3393_v21, %v3394_v41  ;;  %v3310_v54 = vrot.slane %v15310_v26, 1  ;;  %9993 = vmatprep.mubr.msk.bf16.mxu1 %vm3473_vm2, %v3305_v6  ;;  %v15313_v21 = vld [vmem:[#allocation11_spill] sm:$0xff]  ;;  %v15320_v59 = vld [vmem:[#allocation42_spill] sm:$0xff] }
 0x100   :  { %v12913_v4 = vsel %vm3307_vm4, %v3396_v62, %v3397_v30  ;;  %v3399_v40 = vor.u32 %v3397_v30, %v15312_v19  ;;  %v3400_v25 = vrot.slane %v3236_v46, 1  ;;  %v12926_v41 = vsel %vm2984_vm7, %v12729_v57, %v3238_v0  ;;  %v15317_v62 = vld [vmem:[#allocation9_spill] sm:$0xff] }
 0x101   :  { %15311 = vst [vmem:[#allocation8_spill] sm:$0xff] %v12913_v4  ;;  %v6612_v58 = vsel %vm2984_vm7, %v12795_v11, %v6611_v43  ;;  %v3311_v10 = vsel %vm3307_vm4, %v15313_v21, %v3310_v54  ;;  %v6620_v37 = vsel %vm2984_vm7, %v6608_v34, %v12507_v16  ;;  %v15315_v46 = vshrl.u32 %v11758_v9, 16  ;;  %v15322_v19 = vld [vmem:[#allocation13_spill] sm:$0xff] }
 0x102   :  { %v12935_v53 = vsel %vm3307_vm4, %v3399_v40, %v3400_v25  ;;  %v15318_v35 = vshll.u32 %v15317_v62, 16  ;;  %v3306_v0 = vmul.bf16 %v12926_v41, %v12918_v45  ;;  %v6789_v11 = vmul.bf16 %v6612_v58, %v12468_v44  ;;  %v15325_v58 = vld [vmem:[#allocation46_spill] sm:$0xff] }
 0x103   :  { %15314 = vst [vmem:[#allocation11_spill] sm:$0xff] %v12935_v53  ;;  %v12939_v6 = vor.u32 %v3400_v25, %v15315_v46  ;;  %v15319_v30 = vshrl.u32 %v15309_v8, 16  ;;  %v3438_v16 = vmul.bf16 %v3311_v10, %v15320_v59  ;;  %v6790_v34 = vmul.bf16 %v6620_v37, %v12485_v42  ;;  %v15326_v37 = vld [vmem:[#allocation14_spill] sm:$0xff] }
 0x104   :  { %v3313_v57 = vrot.slane %v15318_v35, 1  ;;  %v15321_v43 = vshrl.u32 %v15317_v62, 16  ;;  %v15323_v40 = vshll.u32 %v15322_v19, 16  ;;  %v6791_v10 = vmul.bf16 %v12561_v7, %v12512_v32  ;;  %v15355_v32 = vld [vmem:[#allocation27_spill] sm:$0xff] }
 0x105   :  { %15316 = vst [vmem:[#allocation133_spill] sm:$0xff] %v12939_v6  ;;  %v3312_v1 = vor.u32 %v3310_v54, %v15319_v30  ;;  %10292 = vmatmul.mubr.msk.bf16.gmra.mrb[28].mxu0 %vm3473_vm2, %v6789_v11  ;;  %v15327_v46 = vshll.u32 %v15326_v37, 16  ;;  %v15329_v30 = vshrl.u32 %v15322_v19, 16 }
 0x106   :  { %v3315_v26 = vor.u32 %v3313_v57, %v15321_v43  ;;  %v3316_v25 = vrot.slane %v15323_v40, 1  ;;  %9994 = vmatmul.mubr.msk.bf16.gmra.mrb[60].mxu1 %vm3473_vm2, %v3306_v0  ;;  %10295 = vmatprep.mubr.msk.bf16.mxu0 %vm3473_vm2, %v6790_v34  ;;  %v15328_v0 = vld [vmem:[#allocation49_spill] sm:$0xff] }
 0x107   :  { %9999 = vmatprep.mubr.msk.bf16.mxu1 %vm3473_vm2, %v3438_v16  ;;  %v3314_v8 = vsel %vm3307_vm4, %v3312_v1, %v3313_v57  ;;  %v3319_v35 = vrot.slane %v15327_v46, 1  ;;  %v6792_v57 = vmul.bf16 %v12564_v22, %v12522_v28  ;;  %v15330_v1 = vshrl.u32 %v15326_v37, 16  ;;  %v15331_v43 = vld [vmem:[#allocation17_spill] sm:$0xff] }
 0x108   :  { %v12960_v54 = vsel %vm3307_vm4, %v3315_v26, %v3316_v25  ;;  %v3439_v21 = vmul.bf16 %v3314_v8, %v15325_v58  ;;  %v3318_v16 = vor.u32 %v3316_v25, %v15329_v30  ;;  %v15332_v26 = vshll.u32 %v15331_v43, 16  ;;  %v15335_v25 = vld [vmem:[#allocation6_spill] sm:$0xff]  ;;  %v15336_v8 = vld [vmem:[#allocation51_spill] sm:$0xff] }
 0x109   :  { %15324 = vst [vmem:[#allocation9_spill] sm:$0xff] %v12960_v54  ;;  %v3440_v11 = vmul.bf16 %v12960_v54, %v15328_v0  ;;  %v3321_v34 = vor.u32 %v3319_v35, %v15330_v1  ;;  %v15342_v0 = vld [vmem:[#allocation22_spill] sm:$0xff] }
 0x10a   :  { %v3322_v40 = vrot.slane %v15332_v26, 1  ;;  %v12982_v7 = vsel %vm3307_vm4, %v3318_v16, %v3319_v35  ;;  %v6794_v16 = vmul.bf16 %v12614_v31, %v12552_v47  ;;  %v15351_v47 = vld [vmem:[#allocation120_spill] sm:$0xff] }
 0x10b   :  { %15333 = vst [vmem:[#allocation13_spill] sm:$0xff] %v12982_v7  ;;  %v3441_v46 = vmul.bf16 %v12982_v7, %v15336_v8  ;;  %v15343_v8 = vshll.u32 %v15342_v0, 16 }
 0x10c   :  { %v12986_v22 = vsel %vm3307_vm4, %v3321_v34, %v3322_v40 }
 0x10d   :  { %10296 = vmatmul.mubr.msk.bf16.gmra.mrb[32].mxu0 %vm3473_vm2, %v6791_v10  ;;  %15334 = vst [vmem:[#allocation14_spill] sm:$0xff] %v12986_v22  ;;  %v15337_v10 = vld [vmem:[#allocation18_spill] sm:$0xff]  ;;  %v3328_v28 = vrot.slane %v15343_v8, 1 }
 0x10e   :  { %10000 = vmatmul.mubr.msk.bf16.vlgmr.msra.gmra.mrb[0].mxu1 %vm3473_vm2, %v3439_v21  ;;  %10299 = vmatprep.mubr.msk.bf16.mxu0 %vm3473_vm2, %v6792_v57  ;;  %v6793_v21 = vmul.bf16 %v12606_v51, %v12549_v2  ;;  %v15340_v57 = vshrl.u32 %v15331_v43, 16  ;;  %v15341_v34 = vshrl.u32 %v15337_v10, 16 }
 0x10f   :  { %10064 = vmatpush3.bf16.msra.mxu1 %v12589_v18  ;;  %10003 = vmatprep.mubr.msk.bf16.mxu1 %vm3473_vm2, %v3440_v11  ;;  %v15338_v18 = vshll.u32 %v15337_v10, 16  ;;  %v15339_v11 = vld [vmem:[#allocation56_spill] sm:$0xff] }
 0x110   :  { %10459 = vmatprep.subr.bf16.mxu1 %v15335_v25  ;;  %v3442_v35 = vmul.bf16 %v12986_v22, %v15339_v11  ;;  %v3324_v1 = vor.u32 %v3322_v40, %v15340_v57  ;;  %v15346_v40 = vld [vmem:[#allocation58_spill] sm:$0xff]  ;;  %v15347_v57 = vld [vmem:[#allocation65_spill] sm:$0xff] }
 0x111   :  { %v3325_v30 = vrot.slane %v15338_v18, 1  ;;  %v6795_v8 = vmul.bf16 %v12635_v55, %v15347_v57 }
 0x113   :  { %v3327_v26 = vor.u32 %v3325_v30, %v15341_v34  ;;  %v13010_v51 = vsel %vm3307_vm4, %v3324_v1, %v3325_v30  ;;  %v15348_v34 = vld [vmem:[#allocation25_spill] sm:$0xff]  ;;  %v15353_v30 = vshrl.u32 %v15342_v0, 16 }
 0x114   :  { %15344 = vst [vmem:[#allocation17_spill] sm:$0xff] %v13010_v51  ;;  %v3443_v18 = vmul.bf16 %v13010_v51, %v15346_v40  ;;  %v15356_v40 = vshll.u32 %v15355_v32, 16 }
 0x115   :  { %10300 = vmatmul.mubr.msk.bf16.gmra.mrb[36].mxu0 %vm3473_vm2, %v6793_v21  ;;  %v13013_v31 = vsel %vm3307_vm4, %v3327_v26, %v3328_v28  ;;  %v15350_v21 = vld [vmem:[#allocation60_spill] sm:$0xff]  ;;  %v3330_v1 = vor.u32 %v3328_v28, %v15353_v30  ;;  %v15354_v26 = vshrl.u32 %v15348_v34, 16  ;;  %v15359_v28 = vld [vmem:[#allocation62_spill] sm:$0xff]  ;;  %v15360_v30 = vld [vmem:[#allocation121_spill] sm:$0xff] }
 0x116   :  { %10004 = vmatmul.mubr.msk.bf16.gmra.mrb[4].mxu1 %vm3473_vm2, %v3441_v46  ;;  %10303 = vmatprep.mubr.msk.bf16.mxu0 %vm3473_vm2, %v6794_v16  ;;  %15345 = vst [vmem:[#allocation6_spill] sm:$0xff] %v13013_v31  ;;  %v15349_v46 = vshll.u32 %v15348_v34, 16  ;;  %v15352_v16 = vld [vmem:[#allocation122_spill] sm:$0xff]  ;;  %v3334_v51 = vrot.slane %v15356_v40, 1  ;;  %v6797_v40 = vmul.bf16 %v12695_v38, %v15360_v30 }
 0x117   :  { %10007 = vmatprep.mubr.msk.bf16.mxu1 %vm3473_vm2, %v3442_v35  ;;  %v3444_v35 = vmul.bf16 %v13013_v31, %v15350_v21  ;;  %v6796_v2 = vmul.bf16 %v15352_v16, %v15351_v47  ;;  %v15364_v47 = vld [vmem:[#allocation70_spill] sm:$0xff]  ;;  %v15367_v31 = vld [vmem:[#allocation32_spill] sm:$0xff] }
 0x118   :  { %v3331_v11 = vrot.slane %v15349_v46, 1 }
 0x11a   :  { %v3333_v22 = vor.u32 %v3331_v11, %v15354_v26  ;;  %v13036_v55 = vsel %vm3307_vm4, %v3330_v1, %v3331_v11  ;;  %v15361_v26 = vld [vmem:[#allocation28_spill] sm:$0xff]  ;;  %v15365_v11 = vshrl.u32 %v15355_v32, 16 }
 0x11b   :  { %15357 = vst [vmem:[#allocation18_spill] sm:$0xff] %v13036_v55  ;;  %v3445_v16 = vmul.bf16 %v13036_v55, %v15359_v28  ;;  %v15368_v28 = vshll.u32 %v15367_v31, 16 }
 0x11c   :  { %v13039_v46 = vsel %vm3307_vm4, %v3333_v22, %v3334_v51  ;;  %v3336_v1 = vor.u32 %v3334_v51, %v15365_v11  ;;  %v15366_v22 = vshrl.u32 %v15361_v26, 16  ;;  %v15371_v51 = vld [vmem:[#allocation108_spill] sm:$0xff]  ;;  %v15372_v11 = vld [vmem:[#allocation71_spill] sm:$0xff] }
 0x11d   :  { %10304 = vmatmul.mubr.msk.bf16.gmra.mrb[40].mxu0 %vm3473_vm2, %v6795_v8  ;;  %15358 = vst [vmem:[#allocation22_spill] sm:$0xff] %v13039_v46  ;;  %v15363_v8 = vld [vmem:[#allocation68_spill] sm:$0xff]  ;;  %v3340_v55 = vrot.slane %v15368_v28, 1 }
 0x11e   :  { %10008 = vmatmul.mubr.msk.bf16.gmra.mrb[8].mxu1 %vm3473_vm2, %v3443_v18  ;;  %10307 = vmatprep.mubr.msk.bf16.mxu0 %vm3473_vm2, %v6796_v2  ;;  %v15362_v18 = vshll.u32 %v15361_v26, 16  ;;  %v6798_v2 = vmul.bf16 %v12712_v49, %v15364_v47  ;;  %v15376_v47 = vld [vmem:[#allocation72_spill] sm:$0xff] }
 0x11f   :  { %10011 = vmatprep.mubr.msk.bf16.mxu1 %vm3473_vm2, %v3444_v35  ;;  %v3446_v35 = vmul.bf16 %v13039_v46, %v15363_v8 }
 0x120   :  { %v3337_v21 = vrot.slane %v15362_v18, 1  ;;  %v13068_v18 = vmul.bf16 1.0|1.0, %v15371_v51  ;;  %v11010_v51 = vld [vmem:[%s14663_s2] sm:$0xff]  }
 0x122   :  { %v3339_v57 = vor.u32 %v3337_v21, %v15366_v22  ;;  %v13062_v38 = vsel %vm3307_vm4, %v3336_v1, %v3337_v21  ;;  %v15373_v22 = vld [vmem:[#allocation123_spill] sm:$0xff]  ;;  %v15377_v21 = vld [vmem:[#allocation124_spill] sm:$0xff] }
 0x123   :  { %15369 = vst [vmem:[#allocation25_spill] sm:$0xff] %v13062_v38  ;;  %v3447_v28 = vmul.bf16 %v13062_v38, %v15372_v11  ;;  %v15378_v1 = vld [vmem:[#allocation127_spill] sm:$0xff] }
 0x124   :  { %v13065_v49 = vsel %vm3307_vm4, %v3339_v57, %v3340_v55  ;;  %v6800_v30 = vmul.bf16 %v15378_v1, %v15377_v21  ;;  %v15379_v57 = vshrl.u32 %v15367_v31, 16  ;;  %v13097_v1 = vmul.bf16 0.0|0.0, %v11010_v51 }
 0x125   :  { %10308 = vmatmul.mubr.msk.bf16.gmra.mrb[44].mxu0 %vm3473_vm2, %v6797_v40  ;;  %15370 = vst [vmem:[#allocation122_spill] sm:$0xff] %v13065_v49  ;;  %v15374_v40 = vld [vmem:[#allocation33_spill] sm:$0xff] }
 0x126   :  { %10012 = vmatmul.mubr.msk.bf16.gmra.mrb[12].mxu1 %vm3473_vm2, %v3445_v16  ;;  %10311 = vmatprep.mubr.msk.bf16.mxu0 %vm3473_vm2, %v6798_v2  ;;  %v6799_v16 = vmul.bf16 %v12738_v15, %v15373_v22  ;;  %v15375_v8 = vshll.u32 %v15374_v40, 16  ;;  %v3448_v2 = vmul.bf16 %v13065_v49, %v15376_v47  ;;  %v3342_v46 = vor.u32 %v3340_v55, %v15379_v57  ;;  %v15381_v15 = vld [vmem:[#allocation36_spill] sm:$0xff]  ;;  %v15385_v47 = vld [vmem:[#allocation109_spill] sm:$0xff]  ;;  %v15389_v49 = vld [vmem:[#allocation126_spill] sm:$0xff] }
 0x127   :  { %10015 = vmatprep.mubr.msk.bf16.mxu1 %vm3473_vm2, %v3446_v35  ;;  %v15380_v11 = vshrl.u32 %v15374_v40, 16  ;;  %v15382_v22 = vshll.u32 %v15381_v15, 16  ;;  %v15390_v58 = vshrl.u32 %v15381_v15, 16  ;;  %v14968_v57 = vshrl.u32 %v13097_v1, 16 }
 0x128   :  { %v3343_v35 = vrot.slane %v15375_v8, 1  ;;  %v14965_v8 = vshrl.u32 %v13068_v18, 16 }
 0x129   :  { %v3346_v7 = vrot.slane %v15382_v22, 1 }
 0x12a   :  { %v3345_v38 = vor.u32 %v3343_v35, %v15380_v11  ;;  %v13095_v55 = vsel %vm3307_vm4, %v3342_v46, %v3343_v35  ;;  %v6728_v22 = vrot.slane %v14965_v8, 7  ;;  %v15388_v35 = vld [vmem:[#allocation79_spill] sm:$0xff] }
 0x12b   :  { %15383 = vst [vmem:[#allocation27_spill] sm:$0xff] %v13095_v55  ;;  %v3348_v8 = vor.u32 %v3346_v7, %v15390_v58 }
 0x12c   :  { %v13100_v11 = vsel %vm3307_vm4, %v3345_v38, %v3346_v7  ;;  %v6802_v38 = vmul.bf16 %v12811_v63, %v15389_v49  ;;  %v15396_v7 = vld [vmem:[#allocation80_spill] sm:$0xff] }
 0x12d   :  { %10312 = vmatmul.mubr.msk.bf16.gmra.mrb[48].mxu0 %vm3473_vm2, %v6799_v16  ;;  %v3450_v51 = vmul.bf16 %v13100_v11, %v15388_v35 }
 0x12e   :  { %10016 = vmatmul.mubr.msk.bf16.gmra.mrb[16].mxu1 %vm3473_vm2, %v3447_v28  ;;  %10315 = vmatprep.mubr.msk.bf16.mxu0 %vm3473_vm2, %v6800_v30  ;;  %v15384_v28 = vld [vmem:[#allocation73_spill] sm:$0xff] }
 0x12f   :  { %10019 = vmatprep.mubr.msk.bf16.mxu1 %vm3473_vm2, %v3448_v2  ;;  %v3449_v16 = vmul.bf16 %v13095_v55, %v15384_v28  ;;  %v6801_v2 = vmul.bf16 %v12790_v50, %v15385_v47  ;;  %v15386_v30 = vld [vmem:[#allocation37_spill] sm:$0xff]  ;;  %v15392_v55 = vld [vmem:[#allocation38_spill] sm:$0xff]  ;;  %v15394_v47 = vshll.u32 %v13068_v18, 16 }
 0x130   :  { %v15387_v21 = vshll.u32 %v15386_v30, 16  ;;  %v15391_v54 = vshrl.u32 %v15386_v30, 16  ;;  %v15393_v59 = vshll.u32 %v15392_v55, 16 }
 0x132   :  { %v3349_v46 = vrot.slane %v15387_v21, 1  ;;  %v3352_v50 = vrot.slane %v15393_v59, 1  ;;  %v6731_v21 = vor.u32 %v15394_v47, %v6728_v22 }
 0x134   :  { %v3351_v28 = vor.u32 %v3349_v46, %v15391_v54  ;;  %v13129_v63 = vsel %vm3307_vm4, %v3348_v8, %v3349_v46  ;;  %v6736_v54 = vrot.slane %v14968_v57, 7  ;;  %v6732_v47 = vsel %vm2984_vm7, %v12799_v23, %v6731_v21 }
 0x135   :  { %10316 = vmatmul.mubr.msk.bf16.gmra.mrb[52].mxu0 %vm3473_vm2, %v6801_v2  ;;  %15395 = vst [vmem:[#allocation28_spill] sm:$0xff] %v13129_v63  ;;  %v6803_v2 = vmul.bf16 %v12926_v41, %v12786_v60  ;;  %v6804_v58 = vmul.bf16 %v6732_v47, %v12808_v5  ;;  %v15401_v23 = vshll.u32 %v13097_v1, 16 }
 0x136   :  { %10020 = vmatmul.mubr.msk.bf16.gmra.mrb[20].mxu1 %vm3473_vm2, %v3449_v16  ;;  %10319 = vmatprep.mubr.msk.bf16.mxu0 %vm3473_vm2, %v6802_v38  ;;  %v13135_v59 = vsel %vm3307_vm4, %v3351_v28, %v3352_v50  ;;  %v3451_v16 = vmul.bf16 %v13129_v63, %v15396_v7  ;;  %v15399_v38 = vld [vmem:[#allocation81_spill] sm:$0xff]  ;;  %v15400_v28 = vshrl.u32 %v15392_v55, 16  ;;  %v15403_v63 = vld [vmem:[#allocation44_spill] sm:$0xff] }
 0x137   :  { %10023 = vmatprep.mubr.msk.bf16.mxu1 %vm3473_vm2, %v3450_v51  ;;  %v15397_v51 = vld [vmem:[#allocation40_spill] sm:$0xff]  ;;  %v3452_v57 = vmul.bf16 %v13135_v59, %v15399_v38  ;;  %v6739_v21 = vor.u32 %v15401_v23, %v6736_v54  ;;  %v15404_v41 = vshll.u32 %v15403_v63, 16 }
 0x138   :  { %v15398_v8 = vshll.u32 %v15397_v51, 16  ;;  %v13150_v35 = vor.u32 %v3352_v50, %v15400_v28  ;;  %v15402_v7 = vshrl.u32 %v15397_v51, 16  ;;  %v15405_v51 = vld [vmem:[#allocation84_spill] sm:$0xff]  ;;  %v15406_v28 = vld [vmem:[#allocation47_spill] sm:$0xff] }
 0x139   :  { %v3358_v60 = vrot.slane %v15404_v41, 1  ;;  %v6740_v47 = vsel %vm2984_vm7, %v6728_v22, %v6739_v21  ;;  %v15407_v23 = vshll.u32 %v15406_v28, 16  ;;  %v15410_v38 = vshrl.u32 %v15406_v28, 16  ;;  %v15411_v22 = vld [vmem:[#allocation129_spill] sm:$0xff] }
 0x13a   :  { %v3355_v46 = vrot.slane %v15398_v8, 1  ;;  %v6805_v8 = vmul.bf16 %v6740_v47, %v12918_v45  ;;  %v15414_v47 = vld [vmem:[#allocation128_spill] sm:$0xff] }
 0x13c   :  { %v3357_v49 = vor.u32 %v3355_v46, %v15402_v7  ;;  %v3356_v50 = vsel %vm3307_vm4, %v13150_v35, %v3355_v46 }
 0x13d   :  { %10320 = vmatmul.mubr.msk.bf16.gmra.mrb[56].mxu0 %vm3473_vm2, %v6803_v2  ;;  %v3453_v7 = vmul.bf16 %v3356_v50, %v15405_v51  ;;  %v15408_v2 = vld [vmem:[#allocation85_spill] sm:$0xff] }
 0x13e   :  { %10024 = vmatmul.mubr.msk.bf16.gmra.mrb[24].mxu1 %vm3473_vm2, %v3451_v16  ;;  %10323 = vmatprep.mubr.msk.bf16.mxu0 %vm3473_vm2, %v6804_v58  ;;  %v3359_v54 = vsel %vm3307_vm4, %v3357_v49, %v3358_v60  ;;  %v13170_v16 = vrot.slane %v15407_v23, 1  ;;  %v15413_v50 = vld [vmem:[#allocation89_spill] sm:$0xff] }
 0x13f   :  { %10027 = vmatprep.mubr.msk.bf16.mxu1 %vm3473_vm2, %v3452_v57  ;;  %v3454_v41 = vmul.bf16 %v3359_v54, %v15408_v2  ;;  %v15409_v57 = vshrl.u32 %v15403_v63, 16 }
 0x140   :  { %v3363_v46 = vor.u32 %v13170_v16, %v15410_v38 }
 0x141   :  { %v3360_v58 = vor.u32 %v3358_v60, %v15409_v57  ;;  %v15412_v60 = vld [vmem:[#allocation87_spill] sm:$0xff] }
 0x142   :  { %v13187_v63 = vsel %vm3307_vm4, %v3363_v46, %v15411_v22 }
 0x143   :  { %v3362_v49 = vsel %vm3307_vm4, %v3360_v58, %v13170_v16  ;;  %v3456_v38 = vmul.bf16 %v13187_v63, %v15413_v50 }
 0x144   :  { %v3455_v21 = vmul.bf16 %v3362_v49, %v15412_v60 }
 0x145   :  { %10324 = vmatmul.mubr.msk.bf16.gmra.mrb[60].mxu0 %vm3473_vm2, %v6805_v8 }
 0x146   :  { %10028 = vmatmul.mubr.msk.bf16.gmra.mrb[28].mxu1 %vm3473_vm2, %v3453_v7  ;;  %10329 = vmatprep.mubr.msk.bf16.mxu0 %vm3473_vm2, %v15317_v62  ;;  %v15415_v62 = vld [vmem:[#allocation91_spill] sm:$0xff]  ;;  %v15416_v7 = vld [vmem:[#allocation93_spill] sm:$0xff] }
 0x147   :  { %10031 = vmatprep.mubr.msk.bf16.mxu1 %vm3473_vm2, %v3454_v41  ;;  %v3457_v54 = vmul.bf16 %v12818_v33, %v15415_v62  ;;  %v3458_v8 = vmul.bf16 %v12829_v48, %v15416_v7  ;;  %v15419_v41 = vld [vmem:[#allocation132_spill] sm:$0xff] }
 0x14d   :  { %10330 = vmatmul.mubr.msk.bf16.vlgmr.msra.gmra.mrb[0].mxu0 %vm3473_vm2, %v15322_v19  ;;  %v15417_v19 = vld [vmem:[#allocation95_spill] sm:$0xff] }
 0x14e   :  { %10032 = vmatmul.mubr.msk.bf16.gmra.mrb[32].mxu1 %vm3473_vm2, %v3455_v21  ;;  %10394 = vmatpush3.bf16.msra.mxu0 %v15414_v47  ;;  %v3459_v23 = vmul.bf16 %v12839_v27, %v15417_v19 }
 0x14f   :  { %10035 = vmatprep.mubr.msk.bf16.mxu1 %vm3473_vm2, %v3456_v38  ;;  %10333 = vmatprep.mubr.msk.bf16.mxu0 %vm3473_vm2, %v15326_v37  ;;  %v15418_v37 = vld [vmem:[#allocation97_spill] sm:$0xff] }
 0x150   :  { %v3460_v57 = vmul.bf16 %v15419_v41, %v15418_v37 }
 0x155   :  { %10334 = vmatmul.mubr.msk.bf16.gmra.mrb[4].mxu0 %vm3473_vm2, %v15331_v43  ;;  %v15420_v43 = vld [vmem:[#allocation99_spill] sm:$0xff] }
 0x156   :  { %10036 = vmatmul.mubr.msk.bf16.gmra.mrb[36].mxu1 %vm3473_vm2, %v3457_v54  ;;  %10337 = vmatprep.mubr.msk.bf16.mxu0 %vm3473_vm2, %v15337_v10  ;;  %v3461_v58 = vmul.bf16 %v12866_v17, %v15420_v43  ;;  %v15421_v10 = vld [vmem:[#allocation101_spill] sm:$0xff] }
 0x157   :  { %10039 = vmatprep.mubr.msk.bf16.mxu1 %vm3473_vm2, %v3458_v8  ;;  %v3462_v46 = vmul.bf16 %v12869_v13, %v15421_v10 }
 0x15d   :  { %10338 = vmatmul.mubr.msk.bf16.gmra.mrb[8].mxu0 %vm3473_vm2, %v15342_v0  ;;  %v15422_v0 = vld [vmem:[#allocation103_spill] sm:$0xff] }
 0x15e   :  { %10040 = vmatmul.mubr.msk.bf16.gmra.mrb[40].mxu1 %vm3473_vm2, %v3459_v23  ;;  %10341 = vmatprep.mubr.msk.bf16.mxu0 %vm3473_vm2, %v15348_v34  ;;  %v3463_v49 = vmul.bf16 %v12880_v52, %v15422_v0  ;;  %v15423_v34 = vld [vmem:[#allocation105_spill] sm:$0xff] }
 0x15f   :  { %10043 = vmatprep.mubr.msk.bf16.mxu1 %vm3473_vm2, %v3460_v57  ;;  %v3464_v22 = vmul.bf16 %v12883_v61, %v15423_v34  ;;  %v15429_v23 = vld [vmem:[#allocation113_spill] sm:$0xff] }
 0x160   :  { %v3468_v57 = vmul.bf16 %v12935_v53, %v15429_v23  ;;  %v15437_v23 = vld [vmem:[#allocation83_spill] sm:$0xff]  ;;  %v15446_v53 = vld [vmem:[#allocation88_spill] sm:$0xff] }
 0x165   :  { %10342 = vmatmul.mubr.msk.bf16.gmra.mrb[12].mxu0 %vm3473_vm2, %v15355_v32  ;;  %v15424_v32 = vld [vmem:[#allocation107_spill] sm:$0xff] }
 0x166   :  { %10044 = vmatmul.mubr.msk.bf16.gmra.mrb[44].mxu1 %vm3473_vm2, %v3461_v58  ;;  %10345 = vmatprep.mubr.msk.bf16.mxu0 %vm3473_vm2, %v15361_v26  ;;  %v3465_v21 = vmul.bf16 %v12905_v3, %v15424_v32  ;;  %v15425_v26 = vld [vmem:[#allocation110_spill] sm:$0xff] }
 0x167   :  { %10047 = vmatprep.mubr.msk.bf16.mxu1 %vm3473_vm2, %v3462_v46  ;;  %v3466_v38 = vmul.bf16 %v12908_v24, %v15425_v26 }
 0x16d   :  { %10346 = vmatmul.mubr.msk.bf16.gmra.mrb[16].mxu0 %vm3473_vm2, %v15367_v31  ;;  %v15426_v31 = vld [vmem:[#allocation7_spill] sm:$0xff] }
 0x16e   :  { %10048 = vmatmul.mubr.msk.bf16.gmra.mrb[48].mxu1 %vm3473_vm2, %v3463_v49  ;;  %10349 = vmatprep.mubr.msk.bf16.mxu0 %vm3473_vm2, %v15374_v40  ;;  %v15427_v47 = vshrl.u32 %v15426_v31, 16  ;;  %v15428_v40 = vld [vmem:[#allocation112_spill] sm:$0xff]  ;;  %v15430_v58 = vshll.u32 %v15426_v31, 16  ;;  %v3437_v49 = vsel %vm12457_vm10, %v12939_v6, 0 }
 0x16f   :  { %10051 = vmatprep.mubr.msk.bf16.mxu1 %vm3473_vm2, %v3464_v22  ;;  %v3467_v8 = vmul.bf16 %v12913_v4, %v15428_v40 }
 0x170   :  { %v4679_v54 = vrot.slane %v15427_v47, 7 }
 0x172   :  { %v4682_v46 = vor.u32 %v15430_v58, %v4679_v54  ;;  %v15436_v58 = vld [vmem:[#allocation115_spill] sm:$0xff] }
 0x175   :  { %10350 = vmatmul.mubr.msk.bf16.gmra.mrb[20].mxu0 %vm3473_vm2, %v15381_v15  ;;  %v15431_v15 = vld [vmem:[#allocation125_spill] sm:$0xff] }
 0x176   :  { %10052 = vmatmul.mubr.msk.bf16.gmra.mrb[52].mxu1 %vm3473_vm2, %v3465_v21  ;;  %10353 = vmatprep.mubr.msk.bf16.mxu0 %vm3473_vm2, %v15386_v30  ;;  %v4963_v21 = vsel %vm11783_vm9, 0, %v4682_v46  ;;  %v15439_v30 = vld [vmem:[#allocation24_spill] sm:$0xff] }
 0x177   :  { %10055 = vmatprep.mubr.msk.bf16.mxu1 %vm3473_vm2, %v3466_v38  ;;  %v15434_v38 = vld [vmem:[#allocation10_spill] sm:$0xff]  ;;  %v4964_v40 = vmul.bf16 %v4963_v21, %v15437_v23  ;;  %v4690_v6 = vsel %vm2984_vm7, %v4679_v54, %v15439_v30  ;;  %v15440_v46 = vld [vmem:[#allocation12_spill] sm:$0xff] }
 0x178   :  { %v15435_v31 = vshrl.u32 %v15434_v38, 16  ;;  %v15442_v23 = vld [vmem:[#allocation20_spill] sm:$0xff]  ;;  %v15447_v54 = vshll.u32 %v15440_v46, 16 }
 0x17a   :  { %v4694_v47 = vrot.slane %v15435_v31, 7 }
 0x17d   :  { %10354 = vmatmul.mubr.msk.bf16.gmra.mrb[24].mxu0 %vm3473_vm2, %v15392_v55  ;;  %v15438_v55 = vshll.u32 %v15434_v38, 16  ;;  %v15443_v38 = vld [vmem:[#allocation15_spill] sm:$0xff] }
 0x17e   :  { %10056 = vmatmul.mubr.msk.bf16.gmra.mrb[56].mxu1 %vm3473_vm2, %v3467_v8  ;;  %10357 = vmatprep.mubr.msk.bf16.mxu0 %vm3473_vm2, %v15431_v15  ;;  %v3469_v8 = vmul.bf16 %v3437_v49, %v15436_v58  ;;  %v15441_v49 = vshrl.u32 %v15440_v46, 16  ;;  %v15444_v31 = vshrl.u32 %v15443_v38, 16 }
 0x17f   :  { %10059 = vmatprep.mubr.msk.bf16.mxu1 %vm3473_vm2, %v3468_v57  ;;  %v4697_v57 = vor.u32 %v15438_v55, %v4694_v47  ;;  %v15445_v55 = vld [vmem:[#allocation86_spill] sm:$0xff] }
 0x180   :  { %v4702_v22 = vrot.slane %v15441_v49, 7  ;;  %v4965_v58 = vmul.bf16 %v4690_v6, %v15445_v55  ;;  %v15450_v6 = vld [vmem:[#allocation16_spill] sm:$0xff] }
 0x181   :  { %v4698_v21 = vsel %vm2984_vm7, %v15442_v23, %v4697_v57  ;;  %v15451_v49 = vshrl.u32 %v15450_v6, 16  ;;  %v15452_v23 = vld [vmem:[#allocation53_spill] sm:$0xff] }
 0x182   :  { %v4966_v26 = vmul.bf16 %v4698_v21, %v15446_v53  ;;  %v4705_v30 = vor.u32 %v15447_v54, %v4702_v22  ;;  %v15453_v21 = vld [vmem:[#allocation19_spill] sm:$0xff]  ;;  %v15456_v54 = vld [vmem:[#allocation92_spill] sm:$0xff] }
 0x183   :  { %v4718_v53 = vrot.slane %v15451_v49, 7 }
 0x184   :  { %v4706_v57 = vsel %vm2984_vm7, %v4694_v47, %v4705_v30  ;;  %v15458_v47 = vshll.u32 %v15453_v21, 16 }
 0x185   :  { %10358 = vmatmul.mubr.msk.bf16.gmra.mrb[28].mxu0 %vm3473_vm2, %v12777_v36 }
 0x186   :  { %10060 = vmatmul.mubr.msk.bf16.gmra.mrb[60].mxu1 %vm3473_vm2, %v3469_v8  ;;  %10361 = vmatprep.mubr.msk.bf16.mxu0 %vm3473_vm2, %v15406_v28  ;;  %v4710_v8 = vrot.slane %v15444_v31, 7  ;;  %v15449_v28 = vld [vmem:[#allocation48_spill] sm:$0xff]  ;;  %v15455_v31 = vld [vmem:[#allocation90_spill] sm:$0xff] }
 0x187   :  { %10065 = vmatprep.mubr.msk.bf16.mxu1 %vm3473_vm2, %v4964_v40  ;;  %v15448_v40 = vshll.u32 %v15443_v38, 16  ;;  %v15454_v38 = vshrl.u32 %v15453_v21, 16  ;;  %v4967_v55 = vmul.bf16 %v4706_v57, %v15455_v31  ;;  %v15461_v57 = vld [vmem:[#allocation21_spill] sm:$0xff]  ;;  %v15465_v31 = vld [vmem:[#allocation94_spill] sm:$0xff] }
 0x188   :  { %v15462_v49 = vshrl.u32 %v15461_v57, 16 }
 0x189   :  { %v4713_v4 = vor.u32 %v15448_v40, %v4710_v8 }
 0x18b   :  { %v4714_v46 = vsel %vm2984_vm7, %v4702_v22, %v4713_v4  ;;  %v15460_v4 = vld [vmem:[#allocation59_spill] sm:$0xff] }
 0x18c   :  { %v4968_v40 = vmul.bf16 %v4714_v46, %v15456_v54  ;;  %v15463_v46 = vld [vmem:[#allocation23_spill] sm:$0xff]  ;;  %v15466_v54 = vld [vmem:[#allocation96_spill] sm:$0xff] }
 0x18d   :  { %10362 = vmatmul.mubr.msk.bf16.gmra.mrb[32].mxu0 %vm3473_vm2, %v15449_v28  ;;  %v15459_v28 = vld [vmem:[#allocation54_spill] sm:$0xff]  ;;  %v15464_v21 = vshrl.u32 %v15463_v46, 16 }
 0x18e   :  { %10066 = vmatmul.mubr.msk.bf16.vlgmr.msra.gmra.mrb[0].mxu1 %vm3473_vm2, %v4965_v58  ;;  %10365 = vmatprep.mubr.msk.bf16.mxu0 %vm3473_vm2, %v15452_v23  ;;  %v4726_v58 = vrot.slane %v15454_v38, 7  ;;  %v4734_v23 = vrot.slane %v15462_v49, 7  ;;  %v15472_v49 = vld [vmem:[#allocation29_spill] sm:$0xff] }
 0x18f   :  { %10460 = vmatpush3.bf16.msra.mxu1 %v15335_v25  ;;  %10069 = vmatprep.mubr.msk.bf16.mxu1 %vm3473_vm2, %v4966_v26  ;;  %v15457_v25 = vshll.u32 %v15450_v6, 16  ;;  %v4742_v38 = vrot.slane %v15464_v21, 7  ;;  %v15474_v21 = vld [vmem:[#allocation98_spill] sm:$0xff] }
 0x190   :  { %v4729_v30 = vor.u32 %v15458_v47, %v4726_v58  ;;  %v15467_v47 = vshll.u32 %v15461_v57, 16 }
 0x191   :  { %v4721_v26 = vor.u32 %v15457_v25, %v4718_v53 }
 0x192   :  { %v4730_v6 = vsel %vm2984_vm7, %v4718_v53, %v4729_v30 }
 0x193   :  { %v4722_v22 = vsel %vm2984_vm7, %v4710_v8, %v4721_v26  ;;  %v4970_v25 = vmul.bf16 %v4730_v6, %v15466_v54  ;;  %v15469_v8 = vld [vmem:[#allocation64_spill] sm:$0xff]  ;;  %v15470_v26 = vld [vmem:[#allocation26_spill] sm:$0xff]  ;;  %v15473_v6 = vshrl.u32 %v15472_v49, 16 }
 0x194   :  { %v15471_v30 = vshrl.u32 %v15470_v26, 16 }
 0x195   :  { %10366 = vmatmul.mubr.msk.bf16.gmra.mrb[36].mxu0 %vm3473_vm2, %v15459_v28  ;;  %v15468_v28 = vshll.u32 %v15463_v46, 16  ;;  %v4758_v46 = vrot.slane %v15473_v6, 7  ;;  %v15483_v6 = vld [vmem:[#allocation104_spill] sm:$0xff] }
 0x196   :  { %10070 = vmatmul.mubr.msk.bf16.gmra.mrb[4].mxu1 %vm3473_vm2, %v4967_v55  ;;  %10369 = vmatprep.mubr.msk.bf16.mxu0 %vm3473_vm2, %v15460_v4  ;;  %v4969_v55 = vmul.bf16 %v4722_v22, %v15465_v31  ;;  %v4750_v22 = vrot.slane %v15471_v30, 7 }
 0x197   :  { %10073 = vmatprep.mubr.msk.bf16.mxu1 %vm3473_vm2, %v4968_v40  ;;  %v4737_v40 = vor.u32 %v15467_v47, %v4734_v23  ;;  %v4745_v4 = vor.u32 %v15468_v28, %v4742_v38  ;;  %v15476_v47 = vshll.u32 %v15470_v26, 16  ;;  %v15477_v28 = vshll.u32 %v15472_v49, 16 }
 0x199   :  { %v4738_v53 = vsel %vm2984_vm7, %v4726_v58, %v4737_v40  ;;  %v4746_v57 = vsel %vm2984_vm7, %v4734_v23, %v4745_v4  ;;  %v15478_v23 = vld [vmem:[#allocation31_spill] sm:$0xff] }
 0x19a   :  { %v4971_v31 = vmul.bf16 %v4738_v53, %v15474_v21  ;;  %v15479_v40 = vshrl.u32 %v15478_v23, 16  ;;  %v15480_v53 = vld [vmem:[#allocation30_spill] sm:$0xff] }
 0x19b   :  { %v15481_v26 = vshrl.u32 %v15480_v53, 16 }
 0x19c   :  { %v4766_v4 = vrot.slane %v15479_v40, 7  ;;  %v15491_v40 = vld [vmem:[#allocation106_spill] sm:$0xff] }
 0x19d   :  { %10370 = vmatmul.mubr.msk.bf16.gmra.mrb[40].mxu0 %vm3473_vm2, %v15469_v8  ;;  %v4774_v30 = vrot.slane %v15481_v26, 7 }
 0x19e   :  { %10074 = vmatmul.mubr.msk.bf16.gmra.mrb[8].mxu1 %vm3473_vm2, %v4969_v55  ;;  %10373 = vmatprep.mubr.msk.bf16.mxu0 %vm3473_vm2, %v15248_v20  ;;  %v15475_v55 = vld [vmem:[#allocation100_spill] sm:$0xff]  ;;  %v4761_v20 = vor.u32 %v15477_v28, %v4758_v46 }
 0x19f   :  { %10077 = vmatprep.mubr.msk.bf16.mxu1 %vm3473_vm2, %v4970_v25  ;;  %v4972_v54 = vmul.bf16 %v4746_v57, %v15475_v55  ;;  %v4753_v25 = vor.u32 %v15476_v47, %v4750_v22  ;;  %v15482_v57 = vld [vmem:[#allocation102_spill] sm:$0xff]  ;;  %v15485_v55 = vshll.u32 %v15480_v53, 16  ;;  %v15492_v53 = vld [vmem:[#allocation5_spill] sm:$0xff] }
 0x1a0   :  { %v4762_v8 = vsel %vm2984_vm7, %v4750_v22, %v4761_v20  ;;  %v15489_v20 = vld [vmem:[#allocation35_spill] sm:$0xff] }
 0x1a1   :  { %v4754_v58 = vsel %vm2984_vm7, %v4742_v38, %v4753_v25  ;;  %v4974_v21 = vmul.bf16 %v4762_v8, %v15483_v6  ;;  %v15486_v38 = vld [vmem:[#allocation75_spill] sm:$0xff] }
 0x1a2   :  { %v4973_v49 = vmul.bf16 %v4754_v58, %v15482_v57  ;;  %v15490_v58 = vshrl.u32 %v15489_v20, 16 }
 0x1a5   :  { %10374 = vmatmul.mubr.msk.bf16.gmra.mrb[44].mxu0 %vm3473_vm2, %v11583_v56  ;;  %v15484_v56 = vshll.u32 %v15478_v23, 16  ;;  %v4790_v23 = vrot.slane %v15490_v58, 7 }
 0x1a6   :  { %10078 = vmatmul.mubr.msk.bf16.gmra.mrb[12].mxu1 %vm3473_vm2, %v4971_v31  ;;  %10377 = vmatprep.mubr.msk.bf16.mxu0 %vm3473_vm2, %v11629_v14  ;;  %v4777_v14 = vor.u32 %v15485_v55, %v4774_v30 }
 0x1a7   :  { %10081 = vmatprep.mubr.msk.bf16.mxu1 %vm3473_vm2, %v4972_v54  ;;  %v4769_v31 = vor.u32 %v15484_v56, %v4766_v4  ;;  %v15487_v54 = vld [vmem:[#allocation34_spill] sm:$0xff] }
 0x1a8   :  { %v15488_v47 = vshrl.u32 %v15487_v54, 16  ;;  %v4778_v28 = vsel %vm2984_vm7, %v4766_v4, %v4777_v14  ;;  %v15498_v14 = vld [vmem:[#allocation41_spill] sm:$0xff] }
 0x1a9   :  { %v4770_v22 = vsel %vm2984_vm7, %v4758_v46, %v4769_v31  ;;  %v4976_v26 = vmul.bf16 %v4778_v28, %v15492_v53  ;;  %v15495_v46 = vld [vmem:[#allocation76_spill] sm:$0xff] }
 0x1aa   :  { %v4782_v25 = vrot.slane %v15488_v47, 7  ;;  %v4975_v8 = vmul.bf16 %v4770_v22, %v15491_v40  ;;  %v15502_v40 = vshll.u32 %v15498_v14, 16 }
 0x1ad   :  { %10378 = vmatmul.mubr.msk.bf16.gmra.mrb[48].mxu0 %vm3473_vm2, %v15254_v29  ;;  %v15493_v29 = vshll.u32 %v15487_v54, 16  ;;  %v15500_v54 = vld [vmem:[#allocation111_spill] sm:$0xff] }
 0x1ae   :  { %10082 = vmatmul.mubr.msk.bf16.gmra.mrb[16].mxu1 %vm3473_vm2, %v4973_v49  ;;  %10381 = vmatprep.mubr.msk.bf16.mxu0 %vm3473_vm2, %v15486_v38  ;;  %v15494_v49 = vshll.u32 %v15489_v20, 16  ;;  %v15499_v38 = vshrl.u32 %v15498_v14, 16 }
 0x1af   :  { %10085 = vmatprep.mubr.msk.bf16.mxu1 %vm3473_vm2, %v4974_v21  ;;  %v4785_v57 = vor.u32 %v15493_v29, %v4782_v25  ;;  %v15496_v21 = vld [vmem:[#allocation39_spill] sm:$0xff] }
 0x1b0   :  { %v4793_v6 = vor.u32 %v15494_v49, %v4790_v23  ;;  %v15497_v56 = vshrl.u32 %v15496_v21, 16  ;;  %v4806_v22 = vrot.slane %v15499_v38, 7  ;;  %v15501_v20 = vshll.u32 %v15496_v21, 16 }
 0x1b1   :  { %v4786_v4 = vsel %vm2984_vm7, %v4774_v30, %v4785_v57 }
 0x1b2   :  { %v4798_v31 = vrot.slane %v15497_v56, 7  ;;  %v4794_v55 = vsel %vm2984_vm7, %v4782_v25, %v4793_v6  ;;  %v4977_v47 = vmul.bf16 %v4786_v4, %v15500_v54  ;;  %v15503_v25 = vld [vmem:[#allocation43_spill] sm:$0xff]  ;;  %v15513_v54 = vld [vmem:[#allocation52_spill] sm:$0xff] }
 0x1b3   :  { %v4978_v28 = vmul.bf16 %v4794_v55, %v12419_v39  ;;  %v15504_v39 = vshrl.u32 %v15503_v25, 16  ;;  %v15509_v21 = vshll.u32 %v15503_v25, 16  ;;  %v15518_v25 = vld [vmem:[#allocation117_spill] sm:$0xff] }
 0x1b4   :  { %v4801_v58 = vor.u32 %v15501_v20, %v4798_v31  ;;  %v15515_v20 = vld [vmem:[#allocation46_spill] sm:$0xff] }
 0x1b5   :  { %10382 = vmatmul.mubr.msk.bf16.gmra.mrb[52].mxu0 %vm3473_vm2, %v15495_v46  ;;  %v15508_v46 = vld [vmem:[#allocation9_spill] sm:$0xff] }
 0x1b6   :  { %10086 = vmatmul.mubr.msk.bf16.gmra.mrb[20].mxu1 %vm3473_vm2, %v4975_v8  ;;  %10385 = vmatprep.mubr.msk.bf16.mxu0 %vm3473_vm2, %v11745_v12  ;;  %v4809_v12 = vor.u32 %v15502_v40, %v4806_v22  ;;  %v4802_v30 = vsel %vm2984_vm7, %v4790_v23, %v4801_v58  ;;  %v4814_v8 = vrot.slane %v15504_v39, 7  ;;  %v15516_v58 = vld [vmem:[#allocation13_spill] sm:$0xff] }
 0x1b7   :  { %10089 = vmatprep.mubr.msk.bf16.mxu1 %vm3473_vm2, %v4976_v26  ;;  %v15505_v26 = vld [vmem:[#allocation45_spill] sm:$0xff]  ;;  %v4979_v49 = vmul.bf16 %v4802_v30, %v12468_v44  ;;  %v6935_v40 = vmul.bf16 %v15516_v58, %v15515_v20  ;;  %v15530_v20 = vld [vmem:[#allocation119_spill] sm:$0xff] }
 0x1b8   :  { %v4810_v53 = vsel %vm2984_vm7, %v4798_v31, %v4809_v12  ;;  %v15506_v29 = vshrl.u32 %v15505_v26, 16  ;;  %v4817_v56 = vor.u32 %v15509_v21, %v4814_v8  ;;  %v15510_v23 = vshll.u32 %v15505_v26, 16  ;;  %v15517_v12 = vld [vmem:[#allocation116_spill] sm:$0xff]  ;;  %v15520_v26 = vld [vmem:[#allocation14_spill] sm:$0xff] }
 0x1b9   :  { %v4980_v6 = vmul.bf16 %v4810_v53, %v12485_v42  ;;  %v15511_v42 = vld [vmem:[#allocation50_spill] sm:$0xff]  ;;  %v15519_v53 = vld [vmem:[#allocation49_spill] sm:$0xff] }
 0x1ba   :  { %v4822_v57 = vrot.slane %v15506_v29, 7  ;;  %v4818_v44 = vsel %vm2984_vm7, %v4806_v22, %v4817_v56  ;;  %v15512_v31 = vshrl.u32 %v15511_v42, 16  ;;  %v6936_v29 = vmul.bf16 %v15520_v26, %v15519_v53  ;;  %v15535_v26 = vld [vmem:[#allocation61_spill] sm:$0xff] }
 0x1bb   :  { %v4981_v30 = vmul.bf16 %v4818_v44, %v15517_v12  ;;  %v15521_v22 = vshll.u32 %v15511_v42, 16  ;;  %v15527_v42 = vld [vmem:[#allocation118_spill] sm:$0xff] }
 0x1bc   :  { %v4825_v55 = vor.u32 %v15510_v23, %v4822_v57  ;;  %v4830_v14 = vrot.slane %v15512_v31, 7  ;;  %v15525_v23 = vld [vmem:[#allocation57_spill] sm:$0xff]  ;;  %v15532_v12 = vld [vmem:[#allocation6_spill] sm:$0xff] }
 0x1bd   :  { %10386 = vmatmul.mubr.msk.bf16.gmra.mrb[56].mxu0 %vm3473_vm2, %v11758_v9  ;;  %v15507_v9 = vld [vmem:[#allocation42_spill] sm:$0xff] }
 0x1be   :  { %10090 = vmatmul.mubr.msk.bf16.gmra.mrb[24].mxu1 %vm3473_vm2, %v4977_v47  ;;  %10389 = vmatprep.mubr.msk.bf16.mxu0 %vm3473_vm2, %v13068_v18  ;;  %v6934_v4 = vmul.bf16 %v15508_v46, %v15507_v9  ;;  %v4826_v38 = vsel %vm2984_vm7, %v4814_v8, %v4825_v55  ;;  %v15514_v47 = vshrl.u32 %v15513_v54, 16  ;;  %v15523_v46 = vld [vmem:[#allocation55_spill] sm:$0xff]  ;;  %v15526_v55 = vshrl.u32 %v15525_v23, 16 }
 0x1bf   :  { %10093 = vmatprep.mubr.msk.bf16.mxu1 %vm3473_vm2, %v4978_v28  ;;  %v4982_v39 = vmul.bf16 %v4826_v38, %v15518_v25  ;;  %v15528_v38 = vld [vmem:[#allocation51_spill] sm:$0xff] }
 0x1c0   :  { %v4838_v28 = vrot.slane %v15514_v47, 7  ;;  %v4854_v44 = vrot.slane %v15526_v55, 7 }
 0x1c5   :  { %10390 = vmatmul.mubr.msk.bf16.gmra.mrb[60].mxu0 %vm3473_vm2, %v13097_v1 }
 0x1c6   :  { %10094 = vmatmul.mubr.msk.bf16.gmra.mrb[28].mxu1 %vm3473_vm2, %v4979_v49  ;;  %10395 = vmatprep.mubr.msk.bf16.mxu0 %vm3473_vm2, %v6934_v4  ;;  %v4833_v49 = vor.u32 %v15521_v22, %v4830_v14  ;;  %v15524_v4 = vshrl.u32 %v15523_v46, 16 }
 0x1c7   :  { %10097 = vmatprep.mubr.msk.bf16.mxu1 %vm3473_vm2, %v4980_v6  ;;  %v15522_v6 = vshll.u32 %v15513_v54, 16  ;;  %v15529_v54 = vld [vmem:[#allocation17_spill] sm:$0xff] }
 0x1c8   :  { %v4834_v8 = vsel %vm2984_vm7, %v4822_v57, %v4833_v49  ;;  %v4846_v21 = vrot.slane %v15524_v4, 7  ;;  %v6937_v47 = vmul.bf16 %v15529_v54, %v15528_v38  ;;  %v15533_v57 = vshll.u32 %v15523_v46, 16  ;;  %v15539_v46 = vld [vmem:[#allocation65_spill] sm:$0xff]  ;;  %v15543_v38 = vld [vmem:[#allocation60_spill] sm:$0xff]  ;;  %v15544_v54 = vld [vmem:[#allocation22_spill] sm:$0xff] }
 0x1c9   :  { %v4841_v9 = vor.u32 %v15522_v6, %v4838_v28  ;;  %v4983_v31 = vmul.bf16 %v4834_v8, %v15527_v42  ;;  %v15537_v6 = vld [vmem:[#allocation63_spill] sm:$0xff]  ;;  %v15542_v42 = vld [vmem:[#allocation120_spill] sm:$0xff] }
 0x1ca   :  { %v4849_v25 = vor.u32 %v15533_v57, %v4846_v21 }
 0x1cb   :  { %v4842_v56 = vsel %vm2984_vm7, %v4830_v14, %v4841_v9  ;;  %v15538_v9 = vshrl.u32 %v15537_v6, 16 }
 0x1cc   :  { %v4984_v58 = vmul.bf16 %v4842_v56, %v15530_v20  ;;  %v4850_v14 = vsel %vm2984_vm7, %v4838_v28, %v4849_v25  ;;  %v15540_v56 = vld [vmem:[#allocation58_spill] sm:$0xff]  ;;  %v15545_v28 = vshll.u32 %v15535_v26, 16 }
 0x1cd   :  { %10396 = vmatmul.mubr.msk.bf16.vlgmr.msra.gmra.mrb[0].mxu0 %vm3473_vm2, %v6935_v40  ;;  %v15531_v40 = vld [vmem:[#allocation56_spill] sm:$0xff]  ;;  %v4870_v8 = vrot.slane %v15538_v9, 7  ;;  %v4985_v4 = vmul.bf16 %v4850_v14, %v15539_v46  ;;  %v15554_v46 = vld [vmem:[#allocation70_spill] sm:$0xff] }
 0x1ce   :  { %10098 = vmatmul.mubr.msk.bf16.gmra.mrb[32].mxu1 %vm3473_vm2, %v4981_v30  ;;  %10399 = vmatprep.mubr.msk.bf16.mxu0 %vm3473_vm2, %v6936_v29  ;;  %v6938_v30 = vmul.bf16 %v15532_v12, %v15531_v40  ;;  %v15536_v29 = vshrl.u32 %v15535_v26, 16  ;;  %v15547_v12 = vld [vmem:[#allocation66_spill] sm:$0xff]  ;;  %v15551_v26 = vld [vmem:[#allocation121_spill] sm:$0xff] }
 0x1cf   :  { %10101 = vmatprep.mubr.msk.bf16.mxu1 %vm3473_vm2, %v4982_v39  ;;  %v15534_v39 = vshll.u32 %v15525_v23, 16  ;;  %v15541_v23 = vld [vmem:[#allocation18_spill] sm:$0xff] }
 0x1d0   :  { %v4862_v22 = vrot.slane %v15536_v29, 7  ;;  %v6939_v55 = vmul.bf16 %v15541_v23, %v15540_v56  ;;  %v15555_v56 = vld [vmem:[#allocation68_spill] sm:$0xff]  ;;  %v15556_v23 = vld [vmem:[#allocation122_spill] sm:$0xff] }
 0x1d1   :  { %v4857_v53 = vor.u32 %v15534_v39, %v4854_v44  ;;  %v15549_v39 = vld [vmem:[#allocation67_spill] sm:$0xff] }
 0x1d2   :  { %v4865_v20 = vor.u32 %v15545_v28, %v4862_v22 }
 0x1d3   :  { %v4858_v49 = vsel %vm2984_vm7, %v4846_v21, %v4857_v53  ;;  %v15550_v53 = vshrl.u32 %v15549_v39, 16 }
 0x1d4   :  { %v4866_v21 = vsel %vm2984_vm7, %v4854_v44, %v4865_v20  ;;  %v15557_v44 = vshll.u32 %v15547_v12, 16 }
 0x1d5   :  { %10400 = vmatmul.mubr.msk.bf16.gmra.mrb[4].mxu0 %vm3473_vm2, %v6937_v47  ;;  %v6940_v47 = vmul.bf16 %v15544_v54, %v15543_v38  ;;  %v4886_v14 = vrot.slane %v15550_v53, 7  ;;  %v4987_v29 = vmul.bf16 %v4866_v21, %v15551_v26  ;;  %v15559_v54 = vld [vmem:[#allocation69_spill] sm:$0xff]  ;;  %v15566_v26 = vld [vmem:[#allocation124_spill] sm:$0xff] }
 0x1d6   :  { %10102 = vmatmul.mubr.msk.bf16.gmra.mrb[36].mxu1 %vm3473_vm2, %v4983_v31  ;;  %10403 = vmatprep.mubr.msk.bf16.mxu0 %vm3473_vm2, %v6938_v30  ;;  %v4986_v31 = vmul.bf16 %v4858_v49, %v15542_v42  ;;  %v15548_v30 = vshrl.u32 %v15547_v12, 16  ;;  %v15552_v49 = vld [vmem:[#allocation62_spill] sm:$0xff]  ;;  %v15563_v12 = vld [vmem:[#allocation123_spill] sm:$0xff] }
 0x1d7   :  { %10105 = vmatprep.mubr.msk.bf16.mxu1 %vm3473_vm2, %v4984_v58  ;;  %v15546_v58 = vshll.u32 %v15537_v6, 16  ;;  %v15553_v6 = vld [vmem:[#allocation25_spill] sm:$0xff] }
 0x1d8   :  { %v4878_v57 = vrot.slane %v15548_v30, 7  ;;  %v6941_v9 = vmul.bf16 %v15553_v6, %v15552_v49  ;;  %v15567_v49 = vld [vmem:[#allocation72_spill] sm:$0xff] }
 0x1d9   :  { %v4873_v40 = vor.u32 %v15546_v58, %v4870_v8  ;;  %v15561_v58 = vld [vmem:[#allocation74_spill] sm:$0xff]  ;;  %v6944_v6 = vmul.bf16 %v13100_v11, %v15567_v49 }
 0x1da   :  { %v4881_v42 = vor.u32 %v15557_v44, %v4878_v57  ;;  %v15572_v44 = vld [vmem:[#allocation78_spill] sm:$0xff] }
 0x1db   :  { %v4874_v25 = vsel %vm2984_vm7, %v4862_v22, %v4873_v40  ;;  %v15562_v40 = vshrl.u32 %v15561_v58, 16 }
 0x1dc   :  { %v4882_v22 = vsel %vm2984_vm7, %v4870_v8, %v4881_v42  ;;  %v15568_v8 = vshll.u32 %v15559_v54, 16  ;;  %v15573_v42 = vshrl.u32 %v15572_v44, 16 }
 0x1dd   :  { %10404 = vmatmul.mubr.msk.bf16.gmra.mrb[8].mxu0 %vm3473_vm2, %v6939_v55  ;;  %v6942_v55 = vmul.bf16 %v15556_v23, %v15555_v56  ;;  %v4902_v21 = vrot.slane %v15562_v40, 7  ;;  %v4989_v30 = vmul.bf16 %v4882_v22, %v15563_v12  ;;  %v15570_v56 = vld [vmem:[#allocation77_spill] sm:$0xff]  ;;  %v15578_v12 = vld [vmem:[#allocation126_spill] sm:$0xff] }
 0x1de   :  { %10106 = vmatmul.mubr.msk.bf16.gmra.mrb[40].mxu1 %vm3473_vm2, %v4985_v4  ;;  %10407 = vmatprep.mubr.msk.bf16.mxu0 %vm3473_vm2, %v6940_v47  ;;  %v4988_v4 = vmul.bf16 %v4874_v25, %v15554_v46  ;;  %v15560_v47 = vshrl.u32 %v15559_v54, 16  ;;  %v15564_v25 = vld [vmem:[#allocation71_spill] sm:$0xff]  ;;  %v15569_v46 = vshll.u32 %v15561_v58, 16  ;;  %v15571_v23 = vshrl.u32 %v15570_v56, 16  ;;  %v15575_v54 = vld [vmem:[#allocation73_spill] sm:$0xff] }
 0x1df   :  { %10109 = vmatprep.mubr.msk.bf16.mxu1 %vm3473_vm2, %v4986_v31  ;;  %v15558_v31 = vshll.u32 %v15549_v39, 16  ;;  %v15565_v39 = vld [vmem:[#allocation27_spill] sm:$0xff]  ;;  %v15577_v58 = vshll.u32 %v15431_v15, 16 }
 0x1e0   :  { %v4894_v28 = vrot.slane %v15560_v47, 7  ;;  %v6943_v53 = vmul.bf16 %v15565_v39, %v15564_v25  ;;  %v15576_v47 = vld [vmem:[#allocation28_spill] sm:$0xff]  ;;  %v15579_v25 = vld [vmem:[#allocation79_spill] sm:$0xff]  ;;  %v15580_v39 = vshll.u32 %v15570_v56, 16 }
 0x1e1   :  { %v4889_v38 = vor.u32 %v15558_v31, %v4886_v14  ;;  %v4918_v31 = vrot.slane %v15573_v42, 7  ;;  %v6847_v40 = vrot.slane %v15577_v58, 1 }
 0x1e3   :  { %v4890_v20 = vsel %vm2984_vm7, %v4878_v57, %v4889_v38  ;;  %v15574_v38 = vld [vmem:[#allocation109_spill] sm:$0xff] }
 0x1e5   :  { %10408 = vmatmul.mubr.msk.bf16.gmra.mrb[12].mxu0 %vm3473_vm2, %v6941_v9  ;;  %v4897_v9 = vor.u32 %v15568_v8, %v4894_v28 }
 0x1e6   :  { %10110 = vmatmul.mubr.msk.bf16.gmra.mrb[44].mxu1 %vm3473_vm2, %v4987_v29  ;;  %10411 = vmatprep.mubr.msk.bf16.mxu0 %vm3473_vm2, %v6942_v55  ;;  %v4990_v29 = vmul.bf16 %v4890_v20, %v15566_v26  ;;  %v4910_v55 = vrot.slane %v15571_v23, 7  ;;  %v6945_v20 = vmul.bf16 %v15576_v47, %v15575_v54  ;;  %v15586_v23 = vld [vmem:[#allocation131_spill] sm:$0xff] }
 0x1e7   :  { %10113 = vmatprep.mubr.msk.bf16.mxu1 %vm3473_vm2, %v4988_v4  ;;  %v4905_v4 = vor.u32 %v15569_v46, %v4902_v21  ;;  %v4898_v57 = vsel %vm2984_vm7, %v4886_v14, %v4897_v9  ;;  %v6946_v14 = vmul.bf16 %v13135_v59, %v15579_v25  ;;  %v15584_v9 = vld [vmem:[#allocation108_spill] sm:$0xff]  ;;  %v15596_v25 = vshrl.u32 %v13068_v18, 16 }
 0x1e8   :  { %v4991_v22 = vmul.bf16 %v4898_v57, %v15574_v38  ;;  %v15585_v46 = vshrl.u32 %v15584_v9, 16  ;;  %v15589_v47 = vshll.u32 %v15584_v9, 16 }
 0x1e9   :  { %v4906_v11 = vsel %vm2984_vm7, %v4894_v28, %v4905_v4  ;;  %v15581_v28 = vshll.u32 %v15572_v44, 16  ;;  %v15587_v44 = vld [vmem:[#allocation80_spill] sm:$0xff] }
 0x1ea   :  { %v4926_v4 = vrot.slane %v15585_v46, 7  ;;  %v15601_v46 = vshrl.u32 %v13097_v1, 16 }
 0x1eb   :  { %v4921_v26 = vor.u32 %v15581_v28, %v4918_v31  ;;  %v11023_v28 = vld [vmem:[%s14662_s1 + $0xd8] sm:$0xff]  }
 0x1ed   :  { %10412 = vmatmul.mubr.msk.bf16.gmra.mrb[16].mxu0 %vm3473_vm2, %v6943_v53  ;;  %v4913_v53 = vor.u32 %v15580_v39, %v4910_v55  ;;  %v4922_v57 = vsel %vm2984_vm7, %v4910_v55, %v4921_v26  ;;  %v15597_v39 = vshll.u32 %v13097_v1, 16 }
 0x1ee   :  { %10114 = vmatmul.mubr.msk.bf16.gmra.mrb[48].mxu1 %vm3473_vm2, %v4989_v30  ;;  %10415 = vmatprep.mubr.msk.bf16.mxu0 %vm3473_vm2, %v6944_v6  ;;  %v4992_v30 = vmul.bf16 %v4906_v11, %v15578_v12  ;;  %v15583_v6 = vshll.u32 %v12777_v36, 16  ;;  %v4994_v38 = vmul.bf16 %v4922_v57, %v12808_v5  ;;  %v15591_v12 = vld [vmem:[#allocation130_spill] sm:$0xff] }
 0x1ef   :  { %10117 = vmatprep.mubr.msk.bf16.mxu1 %vm3473_vm2, %v4990_v29  ;;  %v15582_v29 = vshrl.u32 %v15431_v15, 16  ;;  %v4914_v59 = vsel %vm2984_vm7, %v4902_v21, %v4913_v53  ;;  %v6848_v15 = vsel %vm3307_vm4, %v13150_v35, %v6847_v40  ;;  %v15590_v21 = vshrl.u32 %v12777_v36, 16 }
 0x1f0   :  { %v6850_v8 = vrot.slane %v15583_v6, 1  ;;  %v4993_v11 = vmul.bf16 %v4914_v59, %v15586_v23  ;;  %v6947_v42 = vmul.bf16 %v6848_v15, %v15587_v44  ;;  %v6950_v36 = vmul.bf16 %v13187_v63, %v15408_v2  ;;  %v11015_v2 = vld [vmem:[%s14662_s1 + $0x98] sm:$0xff]   ;;  %v11016_v63 = vld [vmem:[%s14662_s1 + $0xa0] sm:$0xff]   ;;  %v11025_v59 = vld [vmem:[%s14662_s1 + $0xe8] sm:$0xff]  }
 0x1f1   :  { %v6849_v49 = vor.u32 %v6847_v40, %v15582_v29  ;;  %v6898_v53 = vrot.slane %v15597_v39, 1  ;;  %v11026_v15 = vld [vmem:[%s14662_s1 + $0xf0] sm:$0xff]  }
 0x1f2   :  { %v6852_v58 = vor.u32 %v6850_v8, %v15590_v21 }
 0x1f3   :  { %v6851_v56 = vsel %vm3307_vm4, %v6849_v49, %v6850_v8  ;;  %v15599_v49 = vld [vmem:[#allocation112_spill] sm:$0xff]  ;;  %v15600_v8 = vld [vmem:[#allocation113_spill] sm:$0xff] }
 0x1f4   :  { %v6854_v5 = vsel %vm3307_vm4, %v6852_v58, %v13170_v16  ;;  %v11014_v16 = vld [vmem:[%s14662_s1 + $0x90] sm:$0xff]  }
 0x1f5   :  { %10416 = vmatmul.mubr.msk.bf16.gmra.mrb[20].mxu0 %vm3473_vm2, %v6945_v20  ;;  %v4929_v20 = vor.u32 %v15589_v47, %v4926_v4  ;;  %v6949_v40 = vmul.bf16 %v6854_v5, %v15405_v51  ;;  %v11013_v51 = vld [vmem:[%s14662_s1 + $0x88] sm:$0xff]   ;;  %v6900_v4 = vor.u32 %v6898_v53, %v15601_v46 }
 0x1f6   :  { %10118 = vmatmul.mubr.msk.bf16.gmra.mrb[52].mxu1 %vm3473_vm2, %v4991_v22  ;;  %10419 = vmatprep.mubr.msk.bf16.mxu0 %vm3473_vm2, %v6946_v14  ;;  %v15588_v22 = vld [vmem:[#allocation81_spill] sm:$0xff] }
 0x1f7   :  { %10121 = vmatprep.mubr.msk.bf16.mxu1 %vm3473_vm2, %v4992_v30  ;;  %v6948_v54 = vmul.bf16 %v6851_v56, %v15588_v22  ;;  %v4930_v35 = vsel %vm2984_vm7, %v4918_v31, %v4929_v20  ;;  %v6951_v31 = vmul.bf16 %v12818_v33, %v15412_v60  ;;  %v6953_v33 = vmul.bf16 %v12839_v27, %v15415_v62  ;;  %v11018_v62 = vld [vmem:[%s14662_s1 + $0xb0] sm:$0xff]  }
 0x1f8   :  { %v4995_v55 = vmul.bf16 %v4930_v35, %v12918_v45  ;;  %v6952_v45 = vmul.bf16 %v12829_v48, %v15413_v50  ;;  %v6954_v48 = vmul.bf16 %v15419_v41, %v15416_v7  ;;  %v6955_v27 = vmul.bf16 %v12866_v17, %v15417_v19  ;;  %v11017_v50 = vld [vmem:[%s14662_s1 + $0xa8] sm:$0xff]   ;;  %v11019_v7 = vld [vmem:[%s14662_s1 + $0xb8] sm:$0xff]   ;;  %v11020_v19 = vld [vmem:[%s14662_s1 + $0xc0] sm:$0xff]  }
 0x1f9   :  { %v6956_v60 = vmul.bf16 %v12869_v13, %v15418_v37  ;;  %v6957_v17 = vmul.bf16 %v12880_v52, %v15420_v43  ;;  %v6958_v13 = vmul.bf16 %v12883_v61, %v15421_v10  ;;  %v6959_v52 = vmul.bf16 %v12905_v3, %v15422_v0  ;;  %v11021_v37 = vld [vmem:[%s14662_s1 + $0xc8] sm:$0xff]   ;;  %v11022_v41 = vld [vmem:[%s14662_s1 + $0xd0] sm:$0xff]   ;;  %v15592_v3 = vld [vmem:[#allocation8_spill] sm:$0xff] }
 0x1fa   :  { %v6960_v61 = vmul.bf16 %v12908_v24, %v15423_v34  ;;  %v6961_v43 = vmul.bf16 %v15592_v3, %v15424_v32  ;;  %v15593_v24 = vshll.u32 %v13068_v18, 16  ;;  %v15594_v0 = vld [vmem:[#allocation110_spill] sm:$0xff]  ;;  %v15595_v34 = vld [vmem:[#allocation11_spill] sm:$0xff]  ;;  %v11024_v32 = vld [vmem:[%s14662_s1 + $0xe0] sm:$0xff]   ;;  %v6933_v1 = vsel %vm12457_vm10, %v6900_v4, 0 }
 0x1fb   :  { %v6962_v30 = vmul.bf16 %v15595_v34, %v15594_v0  ;;  %v15598_v18 = vld [vmem:[#allocation133_spill] sm:$0xff]  ;;  %v15603_v56 = vld [vmem:[#allocation115_spill] sm:$0xff]  ;;  %vm8693_vm7 = vcmask 25600  }
 0x1fc   :  { %v6895_v10 = vrot.slane %v15593_v24, 1  ;;  %v6965_v23 = vmul.bf16 %v6933_v1, %v15603_v56 }
 0x1fd   :  { %10420 = vmatmul.mubr.msk.bf16.gmra.mrb[24].mxu0 %vm3473_vm2, %v6947_v42 }
 0x1fe   :  { %10122 = vmatmul.mubr.msk.bf16.gmra.mrb[56].mxu1 %vm3473_vm2, %v4993_v11  ;;  %10423 = vmatprep.mubr.msk.bf16.mxu0 %vm3473_vm2, %v6948_v54  ;;  %v6897_v14 = vor.u32 %v6895_v10, %v15596_v25  ;;  %v6896_v26 = vsel %vm3307_vm4, %v15598_v18, %v6895_v10  ;;  %v11027_v11 = vld [vmem:[%s14662_s1 + $0xf8] sm:$0xff]  }
 0x1ff   :  { %10125 = vmatprep.mubr.msk.bf16.mxu1 %vm3473_vm2, %v4994_v38  ;;  %v6963_v6 = vmul.bf16 %v6896_v26, %v15599_v49 }
 0x200   :  { %v6899_v29 = vsel %vm3307_vm4, %v6897_v14, %v6898_v53  ;;  %vm8296_vm4 = vcmask 31744  }
 0x201   :  { %v6964_v9 = vmul.bf16 %v6899_v29, %v15600_v8 }
 0x205   :  { %10424 = vmatmul.mubr.msk.bf16.gmra.mrb[28].mxu0 %vm3473_vm2, %v6949_v40 }
 0x206   :  { %10126 = vmatmul.mubr.msk.bf16.gmra.mrb[60].mxu1 %vm3473_vm2, %v4995_v55  ;;  %10427 = vmatprep.mubr.msk.bf16.mxu0 %vm3473_vm2, %v6950_v36 }
 0x207   :  { %10163 = vmatprep.mubr.msk.bf16.mxu1 %vm3473_vm2, %v15591_v12 }
 0x20d   :  { %10428 = vmatmul.mubr.msk.bf16.gmra.mrb[32].mxu0 %vm3473_vm2, %v6951_v31 }
 0x20e   :  { %10164 = vmatmul.mubr.msk.bf16.vlgmr.msra.gmra.mrb[32].mxu1 %vm3473_vm2, %v11013_v51  ;;  %10431 = vmatprep.mubr.msk.bf16.mxu0 %vm3473_vm2, %v6952_v45 }
 0x20f   :  { %10167 = vmatprep.mubr.msk.bf16.mxu1 %vm3473_vm2, %v11014_v16 }
 0x215   :  { %10432 = vmatmul.mubr.msk.bf16.gmra.mrb[36].mxu0 %vm3473_vm2, %v6953_v33 }
 0x216   :  { %10168 = vmatmul.mubr.msk.bf16.gmra.mrb[36].mxu1 %vm3473_vm2, %v11015_v2  ;;  %10435 = vmatprep.mubr.msk.bf16.mxu0 %vm3473_vm2, %v6954_v48 }
 0x217   :  { %10171 = vmatprep.mubr.msk.bf16.mxu1 %vm3473_vm2, %v11016_v63 }
 0x21d   :  { %10436 = vmatmul.mubr.msk.bf16.gmra.mrb[40].mxu0 %vm3473_vm2, %v6955_v27 }
 0x21e   :  { %10172 = vmatmul.mubr.msk.bf16.gmra.mrb[40].mxu1 %vm3473_vm2, %v11017_v50  ;;  %10439 = vmatprep.mubr.msk.bf16.mxu0 %vm3473_vm2, %v6956_v60 }
 0x21f   :  { %10175 = vmatprep.mubr.msk.bf16.mxu1 %vm3473_vm2, %v11018_v62 }
 0x225   :  { %10440 = vmatmul.mubr.msk.bf16.gmra.mrb[44].mxu0 %vm3473_vm2, %v6957_v17 }
 0x226   :  { %10176 = vmatmul.mubr.msk.bf16.gmra.mrb[44].mxu1 %vm3473_vm2, %v11019_v7  ;;  %10443 = vmatprep.mubr.msk.bf16.mxu0 %vm3473_vm2, %v6958_v13 }
 0x227   :  { %10179 = vmatprep.mubr.msk.bf16.mxu1 %vm3473_vm2, %v11020_v19 }
 0x22d   :  { %10444 = vmatmul.mubr.msk.bf16.gmra.mrb[48].mxu0 %vm3473_vm2, %v6959_v52 }
 0x22e   :  { %10180 = vmatmul.mubr.msk.bf16.gmra.mrb[48].mxu1 %vm3473_vm2, %v11021_v37  ;;  %10447 = vmatprep.mubr.msk.bf16.mxu0 %vm3473_vm2, %v6960_v61 }
 0x22f   :  { %10183 = vmatprep.mubr.msk.bf16.mxu1 %vm3473_vm2, %v11022_v41 }
 0x235   :  { %10448 = vmatmul.mubr.msk.bf16.gmra.mrb[52].mxu0 %vm3473_vm2, %v6961_v43 }
 0x236   :  { %10184 = vmatmul.mubr.msk.bf16.gmra.mrb[52].mxu1 %vm3473_vm2, %v11023_v28  ;;  %10451 = vmatprep.mubr.msk.bf16.mxu0 %vm3473_vm2, %v6962_v30 }
 0x237   :  { %10187 = vmatprep.mubr.msk.bf16.mxu1 %vm3473_vm2, %v11024_v32 }
 0x23d   :  { %10452 = vmatmul.mubr.msk.bf16.gmra.mrb[56].mxu0 %vm3473_vm2, %v6963_v6 }
 0x23e   :  { %10188 = vmatmul.mubr.msk.bf16.gmra.mrb[56].mxu1 %vm3473_vm2, %v11025_v59  ;;  %10455 = vmatprep.mubr.msk.bf16.mxu0 %vm3473_vm2, %v6964_v9 }
 0x23f   :  { %10191 = vmatprep.mubr.msk.bf16.mxu1 %vm3473_vm2, %v11026_v15 }
 0x245   :  { %10456 = vmatmul.mubr.msk.bf16.gmra.mrb[60].mxu0 %vm3473_vm2, %v6965_v23 }
 0x246   :  { %10192 = vmatmul.mubr.msk.bf16.gmra.mrb[60].mxu1 %vm3473_vm2, %v11027_v11  ;;  %vm8951_vm2 = vcmask 27648  }
 0x261   :  { %v10067_v44 = vpop.f32.mrb[0].mxu1 }
 0x262   :  { %v5291_v42 = vpop.f32.mrb[1].mxu1 }
 0x263   :  { %v10068_v38 = vpop.f32.mrb[2].mxu1 }
 0x264   :  { %v5294_v22 = vpop.f32.mrb[3].mxu1 }
 0x269   :  { %v10071_v54 = vpop.f32.mrb[4].mxu1 }
 0x26a   :  { %v5307_v47 = vpop.f32.mrb[5].mxu1 }
 0x26b   :  { %v10072_v20 = vpop.f32.mrb[6].mxu1 }
 0x26c   :  { %v5310_v21 = vpop.f32.mrb[7].mxu1 }
 0x271   :  { %v13700_v58 = vpop.f32.mrb[8].mxu1 }
 0x272   :  { %v13702_v35 = vpop.f32.mrb[9].mxu1 }
 0x273   :  { %v13704_v5 = vpop.f32.mrb[10].mxu1 }
 0x274   :  { %v13706_v55 = vpop.f32.mrb[11].mxu1 }
 0x279   :  { %v13708_v40 = vpop.f32.mrb[12].mxu1 }
 0x27a   :  { %v13710_v36 = vpop.f32.mrb[13].mxu1 }
 0x27b   :  { %v13712_v12 = vpop.f32.mrb[14].mxu1 }
 0x27c   :  { %v13714_v31 = vpop.f32.mrb[15].mxu1 }
 0x281   :  { %v13716_v45 = vpop.f32.mrb[16].mxu1 }
 0x282   :  { %v13718_v51 = vpop.f32.mrb[17].mxu1 }
 0x283   :  { %v13720_v16 = vpop.f32.mrb[18].mxu1 }
 0x284   :  { %v13722_v33 = vpop.f32.mrb[19].mxu1 }
 0x289   :  { %v13724_v48 = vpop.f32.mrb[20].mxu1 }
 0x28a   :  { %v13726_v2 = vpop.f32.mrb[21].mxu1 }
 0x28b   :  { %v13728_v63 = vpop.f32.mrb[22].mxu1 }
 0x28c   :  { %v13730_v27 = vpop.f32.mrb[23].mxu1 }
 0x291   :  { %v13732_v60 = vpop.f32.mrb[24].mxu1 }
 0x292   :  { %v13734_v50 = vpop.f32.mrb[25].mxu1 }
 0x293   :  { %v13736_v62 = vpop.f32.mrb[26].mxu1 }
 0x294   :  { %v13738_v17 = vpop.f32.mrb[27].mxu1 }
 0x299   :  { %v13740_v13 = vpop.f32.mrb[28].mxu1 }
 0x29a   :  { %v13742_v7 = vpop.f32.mrb[29].mxu1 }
 0x29b   :  { %v13744_v19 = vpop.f32.mrb[30].mxu1 }
 0x29c   :  { %v13746_v52 = vpop.f32.mrb[31].mxu1 }
 0x2a0   :  { %v10397_v61 = vpop.f32.mrb[0].mxu0 }
 0x2a1   :  { %v13748_v37 = vadd.f32 %v10397_v61, %v10067_v44  ;;  %v7977_v41 = vpop.f32.mrb[1].mxu0 }
 0x2a2   :  { %v13750_v3 = vadd.f32 %v7977_v41, %v5291_v42  ;;  %v10398_v43 = vpop.f32.mrb[2].mxu0 }
 0x2a3   :  { %v9506_v24 = vpack.c.bf16 %v13748_v37, %v13748_v37  ;;  %v13754_v10 = vadd.f32 %v10398_v43, %v10068_v38  ;;  %v7980_v0 = vpop.f32.mrb[3].mxu0  ;;  %v8300_v32 = vsel %vm8296_vm4, %v13748_v37, 0.0 }
 0x2a4   :  { %v9504_v34 = vpack.c.bf16 %v13750_v3, %v13750_v3  ;;  %v13758_v30 = vadd.f32 %v7980_v0, %v5294_v22  ;;  %v8297_v14 = vsel %vm8296_vm4, %v13750_v3, 0.0 }
 0x2a5   :  { %8954 = vst.msk [vmem:[%s14665_s4 + $0x8] sm:$0xf] %vm8951_vm2, %v9506_v24  ;;  %v9507_v25 = vpack.c.bf16 %v13754_v10, %v13754_v10  ;;  %v8302_v6 = vsel %vm8296_vm4, %v13754_v10, 0.0 }
 0x2a6   :  { %8952 = vst.msk [vmem:[%s14665_s4] sm:$0xf] %vm8951_vm2, %v9504_v34  ;;  %v8298_v39 = vsel %vm8296_vm4, %v13758_v30, 0.0  ;;  %v9505_v53 = vpack.c.bf16 %v13758_v30, %v13758_v30 }
 0x2a7   :  { %8955 = vst.msk [vmem:[%s14665_s4 + $0xc] sm:$0xf] %vm8951_vm2, %v9507_v25  ;;  %v8299_v28 = vadd.f32 %v8298_v39, %v8297_v14 }
 0x2a8   :  { %8953 = vst.msk [vmem:[%s14665_s4 + $0x4] sm:$0xf] %vm8951_vm2, %v9505_v53  ;;  %v10401_v18 = vpop.f32.mrb[4].mxu0 }
 0x2a9   :  { %v8301_v26 = vadd.f32 %v8300_v32, %v8299_v28  ;;  %v13786_v29 = vadd.f32 %v10401_v18, %v10071_v54  ;;  %v7993_v49 = vpop.f32.mrb[5].mxu0 }
 0x2aa   :  { %v13790_v8 = vadd.f32 %v7993_v49, %v5307_v47  ;;  %v10402_v9 = vpop.f32.mrb[6].mxu0 }
 0x2ab   :  { %v9510_v46 = vpack.c.bf16 %v13786_v29, %v13786_v29  ;;  %v8303_v4 = vadd.f32 %v8302_v6, %v8301_v26  ;;  %v13794_v59 = vadd.f32 %v10402_v9, %v10072_v20  ;;  %v7996_v15 = vpop.f32.mrb[7].mxu0  ;;  %v8308_v22 = vsel %vm8296_vm4, %v13786_v29, 0.0 }
 0x2ac   :  { %v8304_v57 = vsel %vm8296_vm4, %v13790_v8, 0.0  ;;  %v9508_v1 = vpack.c.bf16 %v13790_v8, %v13790_v8  ;;  %v13800_v56 = vadd.f32 %v7996_v15, %v5310_v21 }
 0x2ad   :  { %8958 = vst.msk [vmem:[%s14665_s4 + $0x18] sm:$0xf] %vm8951_vm2, %v9510_v46  ;;  %v8305_v23 = vadd.f32 %v8304_v57, %v8303_v4  ;;  %v9511_v11 = vpack.c.bf16 %v13794_v59, %v13794_v59  ;;  %v8310_v61 = vsel %vm8296_vm4, %v13794_v59, 0.0 }
 0x2ae   :  { %8956 = vst.msk [vmem:[%s14665_s4 + $0x10] sm:$0xf] %vm8951_vm2, %v9508_v1  ;;  %v8306_v44 = vsel %vm8296_vm4, %v13800_v56, 0.0  ;;  %v9509_v42 = vpack.c.bf16 %v13800_v56, %v13800_v56 }
 0x2af   :  { %8959 = vst.msk [vmem:[%s14665_s4 + $0x1c] sm:$0xf] %vm8951_vm2, %v9511_v11  ;;  %v8307_v38 = vadd.f32 %v8306_v44, %v8305_v23 }
 0x2b0   :  { %8957 = vst.msk [vmem:[%s14665_s4 + $0x14] sm:$0xf] %vm8951_vm2, %v9509_v42  ;;  %v10405_v54 = vpop.f32.mrb[8].mxu0 }
 0x2b1   :  { %v8309_v47 = vadd.f32 %v8308_v22, %v8307_v38  ;;  %v13827_v20 = vadd.f32 %v10405_v54, %v13700_v58  ;;  %v8009_v21 = vpop.f32.mrb[9].mxu0 }
 0x2b2   :  { %v13832_v41 = vadd.f32 %v8009_v21, %v13702_v35  ;;  %v10406_v43 = vpop.f32.mrb[10].mxu0 }
 0x2b3   :  { %v9514_v24 = vpack.c.bf16 %v13827_v20, %v13827_v20  ;;  %v8311_v0 = vadd.f32 %v8310_v61, %v8309_v47  ;;  %v13837_v34 = vadd.f32 %v10406_v43, %v13704_v5  ;;  %v8012_v25 = vpop.f32.mrb[11].mxu0  ;;  %v8316_v32 = vsel %vm8296_vm4, %v13827_v20, 0.0 }
 0x2b4   :  { %v8312_v58 = vsel %vm8296_vm4, %v13832_v41, 0.0  ;;  %v9512_v14 = vpack.c.bf16 %v13832_v41, %v13832_v41  ;;  %v13844_v39 = vadd.f32 %v8012_v25, %v13706_v55 }
 0x2b5   :  { %8962 = vst.msk [vmem:[%s14665_s4 + $0x28] sm:$0xf] %vm8951_vm2, %v9514_v24  ;;  %v8313_v35 = vadd.f32 %v8312_v58, %v8311_v0  ;;  %v9515_v5 = vpack.c.bf16 %v13837_v34, %v13837_v34  ;;  %v8318_v9 = vsel %vm8296_vm4, %v13837_v34, 0.0 }
 0x2b6   :  { %8960 = vst.msk [vmem:[%s14665_s4 + $0x20] sm:$0xf] %vm8951_vm2, %v9512_v14  ;;  %v8314_v53 = vsel %vm8296_vm4, %v13844_v39, 0.0  ;;  %v9513_v55 = vpack.c.bf16 %v13844_v39, %v13844_v39 }
 0x2b7   :  { %8963 = vst.msk [vmem:[%s14665_s4 + $0x2c] sm:$0xf] %vm8951_vm2, %v9515_v5  ;;  %v8315_v28 = vadd.f32 %v8314_v53, %v8313_v35 }
 0x2b8   :  { %8961 = vst.msk [vmem:[%s14665_s4 + $0x24] sm:$0xf] %vm8951_vm2, %v9513_v55  ;;  %v10409_v18 = vpop.f32.mrb[12].mxu0 }
 0x2b9   :  { %v8317_v26 = vadd.f32 %v8316_v32, %v8315_v28  ;;  %v13871_v49 = vadd.f32 %v10409_v18, %v13708_v40  ;;  %v8025_v6 = vpop.f32.mrb[13].mxu0 }
 0x2ba   :  { %v13876_v46 = vadd.f32 %v8025_v6, %v13710_v36  ;;  %v10410_v4 = vpop.f32.mrb[14].mxu0 }
 0x2bb   :  { %v9518_v15 = vpack.c.bf16 %v13871_v49, %v13871_v49  ;;  %v8319_v57 = vadd.f32 %v8318_v9, %v8317_v26  ;;  %v13881_v1 = vadd.f32 %v10410_v4, %v13712_v12  ;;  %v8028_v23 = vpop.f32.mrb[15].mxu0  ;;  %v8324_v22 = vsel %vm8296_vm4, %v13871_v49, 0.0 }
 0x2bc   :  { %v8320_v40 = vsel %vm8296_vm4, %v13876_v46, 0.0  ;;  %v9516_v11 = vpack.c.bf16 %v13876_v46, %v13876_v46  ;;  %v13888_v44 = vadd.f32 %v8028_v23, %v13714_v31 }
 0x2bd   :  { %8966 = vst.msk [vmem:[%s14665_s4 + $0x38] sm:$0xf] %vm8951_vm2, %v9518_v15  ;;  %v8321_v36 = vadd.f32 %v8320_v40, %v8319_v57  ;;  %v9519_v12 = vpack.c.bf16 %v13881_v1, %v13881_v1  ;;  %v8326_v43 = vsel %vm8296_vm4, %v13881_v1, 0.0 }
 0x2be   :  { %8964 = vst.msk [vmem:[%s14665_s4 + $0x30] sm:$0xf] %vm8951_vm2, %v9516_v11  ;;  %v8322_v42 = vsel %vm8296_vm4, %v13888_v44, 0.0  ;;  %v9517_v31 = vpack.c.bf16 %v13888_v44, %v13888_v44 }
 0x2bf   :  { %8967 = vst.msk [vmem:[%s14665_s4 + $0x3c] sm:$0xf] %vm8951_vm2, %v9519_v12  ;;  %v8323_v38 = vadd.f32 %v8322_v42, %v8321_v36 }
 0x2c0   :  { %8965 = vst.msk [vmem:[%s14665_s4 + $0x34] sm:$0xf] %vm8951_vm2, %v9517_v31  ;;  %v10413_v54 = vpop.f32.mrb[16].mxu0 }
 0x2c1   :  { %v8325_v47 = vadd.f32 %v8324_v22, %v8323_v38  ;;  %v13915_v21 = vadd.f32 %v10413_v54, %v13716_v45  ;;  %v8041_v61 = vpop.f32.mrb[17].mxu0 }
 0x2c2   :  { %v13920_v24 = vadd.f32 %v8041_v61, %v13718_v51  ;;  %v10414_v0 = vpop.f32.mrb[18].mxu0 }
 0x2c3   :  { %v9522_v25 = vpack.c.bf16 %v13915_v21, %v13915_v21  ;;  %v8327_v58 = vadd.f32 %v8326_v43, %v8325_v47  ;;  %v13925_v14 = vadd.f32 %v10414_v0, %v13720_v16  ;;  %v8044_v35 = vpop.f32.mrb[19].mxu0  ;;  %v8332_v32 = vsel %vm8296_vm4, %v13915_v21, 0.0 }
 0x2c4   :  { %v8328_v45 = vsel %vm8296_vm4, %v13920_v24, 0.0  ;;  %v9520_v5 = vpack.c.bf16 %v13920_v24, %v13920_v24  ;;  %v13932_v53 = vadd.f32 %v8044_v35, %v13722_v33 }
 0x2c5   :  { %8970 = vst.msk [vmem:[%s14665_s4 + $0x48] sm:$0xf] %vm8951_vm2, %v9522_v25  ;;  %v8329_v51 = vadd.f32 %v8328_v45, %v8327_v58  ;;  %v9523_v16 = vpack.c.bf16 %v13925_v14, %v13925_v14  ;;  %v8334_v4 = vsel %vm8296_vm4, %v13925_v14, 0.0 }
 0x2c6   :  { %8968 = vst.msk [vmem:[%s14665_s4 + $0x40] sm:$0xf] %vm8951_vm2, %v9520_v5  ;;  %v8330_v55 = vsel %vm8296_vm4, %v13932_v53, 0.0  ;;  %v9521_v33 = vpack.c.bf16 %v13932_v53, %v13932_v53 }
 0x2c7   :  { %8971 = vst.msk [vmem:[%s14665_s4 + $0x4c] sm:$0xf] %vm8951_vm2, %v9523_v16  ;;  %v8331_v28 = vadd.f32 %v8330_v55, %v8329_v51 }
 0x2c8   :  { %8969 = vst.msk [vmem:[%s14665_s4 + $0x44] sm:$0xf] %vm8951_vm2, %v9521_v33  ;;  %v10417_v18 = vpop.f32.mrb[20].mxu0 }
 0x2c9   :  { %v8333_v26 = vadd.f32 %v8332_v32, %v8331_v28  ;;  %v13959_v6 = vadd.f32 %v10417_v18, %v13724_v48  ;;  %v8057_v9 = vpop.f32.mrb[21].mxu0 }
 0x2ca   :  { %v13964_v15 = vadd.f32 %v8057_v9, %v13726_v2  ;;  %v10418_v57 = vpop.f32.mrb[22].mxu0 }
 0x2cb   :  { %v9526_v23 = vpack.c.bf16 %v13959_v6, %v13959_v6  ;;  %v8335_v40 = vadd.f32 %v8334_v4, %v8333_v26  ;;  %v13969_v11 = vadd.f32 %v10418_v57, %v13728_v63  ;;  %v8060_v36 = vpop.f32.mrb[23].mxu0  ;;  %v8340_v22 = vsel %vm8296_vm4, %v13959_v6, 0.0 }
 0x2cc   :  { %v8336_v48 = vsel %vm8296_vm4, %v13964_v15, 0.0  ;;  %v9524_v12 = vpack.c.bf16 %v13964_v15, %v13964_v15  ;;  %v13976_v42 = vadd.f32 %v8060_v36, %v13730_v27 }
 0x2cd   :  { %8974 = vst.msk [vmem:[%s14665_s4 + $0x58] sm:$0xf] %vm8951_vm2, %v9526_v23  ;;  %v8337_v2 = vadd.f32 %v8336_v48, %v8335_v40  ;;  %v9527_v63 = vpack.c.bf16 %v13969_v11, %v13969_v11  ;;  %v8342_v0 = vsel %vm8296_vm4, %v13969_v11, 0.0 }
 0x2ce   :  { %8972 = vst.msk [vmem:[%s14665_s4 + $0x50] sm:$0xf] %vm8951_vm2, %v9524_v12  ;;  %v8338_v31 = vsel %vm8296_vm4, %v13976_v42, 0.0  ;;  %v9525_v27 = vpack.c.bf16 %v13976_v42, %v13976_v42 }
 0x2cf   :  { %8975 = vst.msk [vmem:[%s14665_s4 + $0x5c] sm:$0xf] %vm8951_vm2, %v9527_v63  ;;  %v8339_v38 = vadd.f32 %v8338_v31, %v8337_v2 }
 0x2d0   :  { %8973 = vst.msk [vmem:[%s14665_s4 + $0x54] sm:$0xf] %vm8951_vm2, %v9525_v27  ;;  %v10421_v54 = vpop.f32.mrb[24].mxu0 }
 0x2d1   :  { %v8341_v47 = vadd.f32 %v8340_v22, %v8339_v38  ;;  %v14003_v61 = vadd.f32 %v10421_v54, %v13732_v60  ;;  %v8073_v43 = vpop.f32.mrb[25].mxu0 }
 0x2d2   :  { %v14008_v25 = vadd.f32 %v8073_v43, %v13734_v50  ;;  %v10422_v58 = vpop.f32.mrb[26].mxu0 }
 0x2d3   :  { %v9530_v35 = vpack.c.bf16 %v14003_v61, %v14003_v61  ;;  %v8343_v45 = vadd.f32 %v8342_v0, %v8341_v47  ;;  %v14013_v5 = vadd.f32 %v10422_v58, %v13736_v62  ;;  %v8076_v51 = vpop.f32.mrb[27].mxu0  ;;  %v8348_v32 = vsel %vm8296_vm4, %v14003_v61, 0.0 }
 0x2d4   :  { %v8344_v60 = vsel %vm8296_vm4, %v14008_v25, 0.0  ;;  %v9528_v16 = vpack.c.bf16 %v14008_v25, %v14008_v25  ;;  %v14020_v55 = vadd.f32 %v8076_v51, %v13738_v17 }
 0x2d5   :  { %8978 = vst.msk [vmem:[%s14665_s4 + $0x68] sm:$0xf] %vm8951_vm2, %v9530_v35  ;;  %v8345_v50 = vadd.f32 %v8344_v60, %v8343_v45  ;;  %v9531_v62 = vpack.c.bf16 %v14013_v5, %v14013_v5  ;;  %v8350_v57 = vsel %vm8296_vm4, %v14013_v5, 0.0 }
 0x2d6   :  { %8976 = vst.msk [vmem:[%s14665_s4 + $0x60] sm:$0xf] %vm8951_vm2, %v9528_v16  ;;  %v8346_v33 = vsel %vm8296_vm4, %v14020_v55, 0.0  ;;  %v9529_v17 = vpack.c.bf16 %v14020_v55, %v14020_v55 }
 0x2d7   :  { %8979 = vst.msk [vmem:[%s14665_s4 + $0x6c] sm:$0xf] %vm8951_vm2, %v9531_v62  ;;  %v8347_v28 = vadd.f32 %v8346_v33, %v8345_v50 }
 0x2d8   :  { %8977 = vst.msk [vmem:[%s14665_s4 + $0x64] sm:$0xf] %vm8951_vm2, %v9529_v17  ;;  %v10425_v18 = vpop.f32.mrb[28].mxu0 }
 0x2d9   :  { %v8349_v26 = vadd.f32 %v8348_v32, %v8347_v28  ;;  %v14047_v9 = vadd.f32 %v10425_v18, %v13740_v13  ;;  %v8089_v4 = vpop.f32.mrb[29].mxu0 }
 0x2da   :  { %v14052_v23 = vadd.f32 %v8089_v4, %v13742_v7  ;;  %v10426_v40 = vpop.f32.mrb[30].mxu0 }
 0x2db   :  { %v9534_v36 = vpack.c.bf16 %v14047_v9, %v14047_v9  ;;  %v8351_v48 = vadd.f32 %v8350_v57, %v8349_v26  ;;  %v14057_v12 = vadd.f32 %v10426_v40, %v13744_v19  ;;  %v8092_v2 = vpop.f32.mrb[31].mxu0  ;;  %v8356_v22 = vsel %vm8296_vm4, %v14047_v9, 0.0 }
 0x2dc   :  { %v8352_v13 = vsel %vm8296_vm4, %v14052_v23, 0.0  ;;  %v9532_v63 = vpack.c.bf16 %v14052_v23, %v14052_v23  ;;  %v14064_v31 = vadd.f32 %v8092_v2, %v13746_v52 }
 0x2dd   :  { %15604 = vst [vmem:[#allocation32_spill] sm:$0xff] %v14057_v12  ;;  %8982 = vst.msk [vmem:[%s14665_s4 + $0x78] sm:$0xf] %vm8951_vm2, %v9534_v36  ;;  %v8353_v7 = vadd.f32 %v8352_v13, %v8351_v48  ;;  %v9535_v19 = vpack.c.bf16 %v14057_v12, %v14057_v12  ;;  %v8358_v45 = vsel %vm8296_vm4, %v14057_v12, 0.0 }
 0x2de   :  { %8980 = vst.msk [vmem:[%s14665_s4 + $0x70] sm:$0xf] %vm8951_vm2, %v9532_v63  ;;  %v8354_v27 = vsel %vm8296_vm4, %v14064_v31, 0.0  ;;  %v9533_v52 = vpack.c.bf16 %v14064_v31, %v14064_v31 }
 0x2df   :  { %8983 = vst.msk [vmem:[%s14665_s4 + $0x7c] sm:$0xf] %vm8951_vm2, %v9535_v19  ;;  %v8355_v38 = vadd.f32 %v8354_v27, %v8353_v7 }
 0x2e0   :  { %8981 = vst.msk [vmem:[%s14665_s4 + $0x74] sm:$0xf] %vm8951_vm2, %v9533_v52  ;;  %v10429_v47 = vpop.f32.mrb[32].mxu0 }
 0x2e1   :  { %v10165_v54 = vpop.f32.mrb[32].mxu1  ;;  %v8357_v43 = vadd.f32 %v8356_v22, %v8355_v38  ;;  %v8105_v35 = vpop.f32.mrb[33].mxu0 }
 0x2e2   :  { %v14090_v0 = vadd.f32 %v10429_v47, %v10165_v54  ;;  %v5841_v58 = vpop.f32.mrb[33].mxu1  ;;  %v10430_v16 = vpop.f32.mrb[34].mxu0 }
 0x2e3   :  { %v14094_v51 = vadd.f32 %v8105_v35, %v5841_v58  ;;  %v10166_v60 = vpop.f32.mrb[34].mxu1  ;;  %v8359_v62 = vadd.f32 %v8358_v45, %v8357_v43  ;;  %v8108_v28 = vpop.f32.mrb[35].mxu0 }
 0x2e4   :  { %15605 = vst [vmem:[#allocation33_spill] sm:$0xff] %v14090_v0  ;;  %v9538_v50 = vpack.c.bf16 %v14090_v0, %v14090_v0  ;;  %v14098_v33 = vadd.f32 %v10430_v16, %v10166_v60  ;;  %v5844_v17 = vpop.f32.mrb[35].mxu1  ;;  %v8364_v2 = vsel %vm8296_vm4, %v14090_v0, 0.0 }
 0x2e5   :  { %15606 = vst [vmem:[#allocation127_spill] sm:$0xff] %v14094_v51  ;;  %v8360_v32 = vsel %vm8296_vm4, %v14094_v51, 0.0  ;;  %v9536_v18 = vpack.c.bf16 %v14094_v51, %v14094_v51  ;;  %v14104_v26 = vadd.f32 %v8108_v28, %v5844_v17 }
 0x2e6   :  { %15607 = vst [vmem:[#allocation36_spill] sm:$0xff] %v14098_v33  ;;  %8986 = vst.msk [vmem:[%s14665_s4 + $0x88] sm:$0xf] %vm8951_vm2, %v9538_v50  ;;  %v8361_v4 = vadd.f32 %v8360_v32, %v8359_v62  ;;  %v9539_v57 = vpack.c.bf16 %v14098_v33, %v14098_v33  ;;  %v8366_v38 = vsel %vm8296_vm4, %v14098_v33, 0.0 }
 0x2e7   :  { %15608 = vst [vmem:[#allocation37_spill] sm:$0xff] %v14104_v26  ;;  %8984 = vst.msk [vmem:[%s14665_s4 + $0x80] sm:$0xf] %vm8951_vm2, %v9536_v18  ;;  %v8362_v40 = vsel %vm8296_vm4, %v14104_v26, 0.0  ;;  %v9537_v36 = vpack.c.bf16 %v14104_v26, %v14104_v26 }
 0x2e8   :  { %8987 = vst.msk [vmem:[%s14665_s4 + $0x8c] sm:$0xf] %vm8951_vm2, %v9539_v57  ;;  %v8363_v48 = vadd.f32 %v8362_v40, %v8361_v4  ;;  %v10433_v63 = vpop.f32.mrb[36].mxu0 }
 0x2e9   :  { %8985 = vst.msk [vmem:[%s14665_s4 + $0x84] sm:$0xf] %vm8951_vm2, %v9537_v36  ;;  %v10169_v13 = vpop.f32.mrb[36].mxu1  ;;  %v8121_v52 = vpop.f32.mrb[37].mxu0 }
 0x2ea   :  { %v8365_v7 = vadd.f32 %v8364_v2, %v8363_v48  ;;  %v14130_v19 = vadd.f32 %v10433_v63, %v10169_v13  ;;  %v5857_v27 = vpop.f32.mrb[37].mxu1  ;;  %v10434_v47 = vpop.f32.mrb[38].mxu0 }
 0x2eb   :  { %v14134_v22 = vadd.f32 %v8121_v52, %v5857_v27  ;;  %v10170_v54 = vpop.f32.mrb[38].mxu1  ;;  %v8124_v60 = vpop.f32.mrb[39].mxu0 }
 0x2ec   :  { %15609 = vst [vmem:[#allocation38_spill] sm:$0xff] %v14130_v19  ;;  %v9542_v43 = vpack.c.bf16 %v14130_v19, %v14130_v19  ;;  %v8367_v58 = vadd.f32 %v8366_v38, %v8365_v7  ;;  %v14138_v35 = vadd.f32 %v10434_v47, %v10170_v54  ;;  %v5860_v45 = vpop.f32.mrb[39].mxu1  ;;  %v8372_v57 = vsel %vm8296_vm4, %v14130_v19, 0.0 }
 0x2ed   :  { %15610 = vst [vmem:[#allocation40_spill] sm:$0xff] %v14134_v22  ;;  %v8368_v16 = vsel %vm8296_vm4, %v14134_v22, 0.0  ;;  %v9540_v50 = vpack.c.bf16 %v14134_v22, %v14134_v22  ;;  %v14144_v62 = vadd.f32 %v8124_v60, %v5860_v45 }
 0x2ee   :  { %15611 = vst [vmem:[#allocation44_spill] sm:$0xff] %v14138_v35  ;;  %8990 = vst.msk [vmem:[%s14665_s4 + $0x98] sm:$0xf] %vm8951_vm2, %v9542_v43  ;;  %v8369_v17 = vadd.f32 %v8368_v16, %v8367_v58  ;;  %v9543_v28 = vpack.c.bf16 %v14138_v35, %v14138_v35  ;;  %v8374_v7 = vsel %vm8296_vm4, %v14138_v35, 0.0 }
 0x2ef   :  { %15612 = vst [vmem:[#allocation84_spill] sm:$0xff] %v14144_v62  ;;  %8988 = vst.msk [vmem:[%s14665_s4 + $0x90] sm:$0xf] %vm8951_vm2, %v9540_v50  ;;  %v8370_v32 = vsel %vm8296_vm4, %v14144_v62, 0.0  ;;  %v9541_v18 = vpack.c.bf16 %v14144_v62, %v14144_v62 }
 0x2f0   :  { %8991 = vst.msk [vmem:[%s14665_s4 + $0x9c] sm:$0xf] %vm8951_vm2, %v9543_v28  ;;  %v8371_v4 = vadd.f32 %v8370_v32, %v8369_v17  ;;  %v10437_v36 = vpop.f32.mrb[40].mxu0 }
 0x2f1   :  { %8989 = vst.msk [vmem:[%s14665_s4 + $0x94] sm:$0xf] %vm8951_vm2, %v9541_v18  ;;  %v10173_v40 = vpop.f32.mrb[40].mxu1  ;;  %v8137_v63 = vpop.f32.mrb[41].mxu0 }
 0x2f2   :  { %v8373_v48 = vadd.f32 %v8372_v57, %v8371_v4  ;;  %v14170_v2 = vadd.f32 %v10437_v36, %v10173_v40  ;;  %v5873_v13 = vpop.f32.mrb[41].mxu1  ;;  %v10438_v38 = vpop.f32.mrb[42].mxu0 }
 0x2f3   :  { %v14174_v27 = vadd.f32 %v8137_v63, %v5873_v13  ;;  %v10174_v52 = vpop.f32.mrb[42].mxu1  ;;  %v8140_v45 = vpop.f32.mrb[43].mxu0 }
 0x2f4   :  { %15613 = vst [vmem:[#allocation47_spill] sm:$0xff] %v14170_v2  ;;  %v9546_v54 = vpack.c.bf16 %v14170_v2, %v14170_v2  ;;  %v8375_v47 = vadd.f32 %v8374_v7, %v8373_v48  ;;  %v14178_v43 = vadd.f32 %v10438_v38, %v10174_v52  ;;  %v5876_v58 = vpop.f32.mrb[43].mxu1  ;;  %v8380_v57 = vsel %vm8296_vm4, %v14170_v2, 0.0 }
 0x2f5   :  { %15614 = vst [vmem:[#allocation85_spill] sm:$0xff] %v14174_v27  ;;  %v8376_v60 = vsel %vm8296_vm4, %v14174_v27, 0.0  ;;  %v9544_v16 = vpack.c.bf16 %v14174_v27, %v14174_v27  ;;  %v14184_v50 = vadd.f32 %v8140_v45, %v5876_v58 }
 0x2f6   :  { %15615 = vst [vmem:[#allocation129_spill] sm:$0xff] %v14178_v43  ;;  %8994 = vst.msk [vmem:[%s14665_s4 + $0xa8] sm:$0xf] %vm8951_vm2, %v9546_v54  ;;  %v8377_v17 = vadd.f32 %v8376_v60, %v8375_v47  ;;  %v9547_v28 = vpack.c.bf16 %v14178_v43, %v14178_v43  ;;  %v8382_v52 = vsel %vm8296_vm4, %v14178_v43, 0.0 }
 0x2f7   :  { %15616 = vst [vmem:[#allocation87_spill] sm:$0xff] %v14184_v50  ;;  %8992 = vst.msk [vmem:[%s14665_s4 + $0xa0] sm:$0xf] %vm8951_vm2, %v9544_v16  ;;  %v8378_v32 = vsel %vm8296_vm4, %v14184_v50, 0.0  ;;  %v9545_v18 = vpack.c.bf16 %v14184_v50, %v14184_v50 }
 0x2f8   :  { %8995 = vst.msk [vmem:[%s14665_s4 + $0xac] sm:$0xf] %vm8951_vm2, %v9547_v28  ;;  %v8379_v4 = vadd.f32 %v8378_v32, %v8377_v17  ;;  %v10441_v36 = vpop.f32.mrb[44].mxu0 }
 0x2f9   :  { %8993 = vst.msk [vmem:[%s14665_s4 + $0xa4] sm:$0xf] %vm8951_vm2, %v9545_v18  ;;  %v10177_v40 = vpop.f32.mrb[44].mxu1  ;;  %v8153_v7 = vpop.f32.mrb[45].mxu0 }
 0x2fa   :  { %v8381_v48 = vadd.f32 %v8380_v57, %v8379_v4  ;;  %v14210_v13 = vadd.f32 %v10441_v36, %v10177_v40  ;;  %v5889_v63 = vpop.f32.mrb[45].mxu1  ;;  %v10442_v47 = vpop.f32.mrb[46].mxu0 }
 0x2fb   :  { %v14214_v38 = vadd.f32 %v8153_v7, %v5889_v63  ;;  %v10178_v54 = vpop.f32.mrb[46].mxu1  ;;  %v8156_v17 = vpop.f32.mrb[47].mxu0 }
 0x2fc   :  { %15617 = vst [vmem:[#allocation89_spill] sm:$0xff] %v14210_v13  ;;  %v9550_v58 = vpack.c.bf16 %v14210_v13, %v14210_v13  ;;  %v8383_v45 = vadd.f32 %v8382_v52, %v8381_v48  ;;  %v14218_v60 = vadd.f32 %v10442_v47, %v10178_v54  ;;  %v5892_v16 = vpop.f32.mrb[47].mxu1  ;;  %v8388_v63 = vsel %vm8296_vm4, %v14210_v13, 0.0 }
 0x2fd   :  { %15618 = vst [vmem:[#allocation128_spill] sm:$0xff] %v14214_v38  ;;  %v8384_v28 = vsel %vm8296_vm4, %v14214_v38, 0.0  ;;  %v9548_v32 = vpack.c.bf16 %v14214_v38, %v14214_v38  ;;  %v14224_v18 = vadd.f32 %v8156_v17, %v5892_v16 }
 0x2fe   :  { %15619 = vst [vmem:[#allocation91_spill] sm:$0xff] %v14218_v60  ;;  %8998 = vst.msk [vmem:[%s14665_s4 + $0xb8] sm:$0xf] %vm8951_vm2, %v9550_v58  ;;  %v8385_v4 = vadd.f32 %v8384_v28, %v8383_v45  ;;  %v9551_v57 = vpack.c.bf16 %v14218_v60, %v14218_v60  ;;  %v8390_v16 = vsel %vm8296_vm4, %v14218_v60, 0.0 }
 0x2ff   :  { %8996 = vst.msk [vmem:[%s14665_s4 + $0xb0] sm:$0xf] %vm8951_vm2, %v9548_v32  ;;  %v8386_v40 = vsel %vm8296_vm4, %v14224_v18, 0.0  ;;  %v9549_v36 = vpack.c.bf16 %v14224_v18, %v14224_v18 }
 0x300   :  { %8999 = vst.msk [vmem:[%s14665_s4 + $0xbc] sm:$0xf] %vm8951_vm2, %v9551_v57  ;;  %v8387_v48 = vadd.f32 %v8386_v40, %v8385_v4  ;;  %v10445_v52 = vpop.f32.mrb[48].mxu0 }
 0x301   :  { %8997 = vst.msk [vmem:[%s14665_s4 + $0xb4] sm:$0xf] %vm8951_vm2, %v9549_v36  ;;  %v10181_v7 = vpop.f32.mrb[48].mxu1  ;;  %v8169_v45 = vpop.f32.mrb[49].mxu0 }
 0x302   :  { %v8389_v54 = vadd.f32 %v8388_v63, %v8387_v48  ;;  %v14250_v47 = vadd.f32 %v10445_v52, %v10181_v7  ;;  %v5905_v58 = vpop.f32.mrb[49].mxu1  ;;  %v10446_v32 = vpop.f32.mrb[50].mxu0 }
 0x303   :  { %v14254_v17 = vadd.f32 %v8169_v45, %v5905_v58  ;;  %v10182_v28 = vpop.f32.mrb[50].mxu1  ;;  %v8172_v13 = vpop.f32.mrb[51].mxu0 }
 0x304   :  { %v9554_v4 = vpack.c.bf16 %v14250_v47, %v14250_v47  ;;  %v8391_v57 = vadd.f32 %v8390_v16, %v8389_v54  ;;  %v14258_v40 = vadd.f32 %v10446_v32, %v10182_v28  ;;  %v5908_v36 = vpop.f32.mrb[51].mxu1  ;;  %v8396_v16 = vsel %vm8296_vm4, %v14250_v47, 0.0 }
 0x305   :  { %v8392_v48 = vsel %vm8296_vm4, %v14254_v17, 0.0  ;;  %v9552_v63 = vpack.c.bf16 %v14254_v17, %v14254_v17  ;;  %v14264_v7 = vadd.f32 %v8172_v13, %v5908_v36 }
 0x306   :  { %9002 = vst.msk [vmem:[%s14665_s4 + $0xc8] sm:$0xf] %vm8951_vm2, %v9554_v4  ;;  %v8393_v52 = vadd.f32 %v8392_v48, %v8391_v57  ;;  %v9555_v54 = vpack.c.bf16 %v14258_v40, %v14258_v40 }
 0x307   :  { %9000 = vst.msk [vmem:[%s14665_s4 + $0xc0] sm:$0xf] %vm8951_vm2, %v9552_v63  ;;  %v8394_v58 = vsel %vm8296_vm4, %v14264_v7, 0.0  ;;  %v9553_v13 = vpack.c.bf16 %v14264_v7, %v14264_v7  ;;  %v8398_v63 = vsel %vm8296_vm4, %v14258_v40, 0.0 }
 0x308   :  { %9003 = vst.msk [vmem:[%s14665_s4 + $0xcc] sm:$0xf] %vm8951_vm2, %v9555_v54  ;;  %v8395_v45 = vadd.f32 %v8394_v58, %v8393_v52  ;;  %v10449_v32 = vpop.f32.mrb[52].mxu0 }
 0x309   :  { %9001 = vst.msk [vmem:[%s14665_s4 + $0xc4] sm:$0xf] %vm8951_vm2, %v9553_v13  ;;  %v10185_v28 = vpop.f32.mrb[52].mxu1  ;;  %v8185_v48 = vpop.f32.mrb[53].mxu0 }
 0x30a   :  { %v8397_v4 = vadd.f32 %v8396_v16, %v8395_v45  ;;  %v14290_v57 = vadd.f32 %v10449_v32, %v10185_v28  ;;  %v5921_v36 = vpop.f32.mrb[53].mxu1  ;;  %v10450_v58 = vpop.f32.mrb[54].mxu0 }
 0x30b   :  { %v14294_v54 = vadd.f32 %v8185_v48, %v5921_v36  ;;  %v10186_v52 = vpop.f32.mrb[54].mxu1  ;;  %v8188_v2 = vpop.f32.mrb[55].mxu0 }
 0x30c   :  { %v9558_v60 = vpack.c.bf16 %v14290_v57, %v14290_v57  ;;  %v8399_v38 = vadd.f32 %v8398_v63, %v8397_v4  ;;  %v14298_v43 = vadd.f32 %v10450_v58, %v10186_v52  ;;  %v5924_v13 = vpop.f32.mrb[55].mxu1 }
 0x30d   :  { %v8400_v45 = vsel %vm8296_vm4, %v14294_v54, 0.0  ;;  %v9556_v16 = vpack.c.bf16 %v14294_v54, %v14294_v54  ;;  %v14304_v28 = vadd.f32 %v8188_v2, %v5924_v13 }
 0x30e   :  { %9006 = vst.msk [vmem:[%s14665_s4 + $0xd8] sm:$0xf] %vm8951_vm2, %v9558_v60  ;;  %v8401_v32 = vadd.f32 %v8400_v45, %v8399_v38  ;;  %v9559_v4 = vpack.c.bf16 %v14298_v43, %v14298_v43  ;;  %v8404_v60 = vsel %vm8296_vm4, %v14290_v57, 0.0 }
 0x30f   :  { %9004 = vst.msk [vmem:[%s14665_s4 + $0xd0] sm:$0xf] %vm8951_vm2, %v9556_v16  ;;  %v8402_v36 = vsel %vm8296_vm4, %v14304_v28, 0.0  ;;  %v9557_v2 = vpack.c.bf16 %v14304_v28, %v14304_v28  ;;  %v8406_v16 = vsel %vm8296_vm4, %v14298_v43, 0.0 }
 0x310   :  { %9007 = vst.msk [vmem:[%s14665_s4 + $0xdc] sm:$0xf] %vm8951_vm2, %v9559_v4  ;;  %v8403_v38 = vadd.f32 %v8402_v36, %v8401_v32  ;;  %v10453_v63 = vpop.f32.mrb[56].mxu0 }
 0x311   :  { %9005 = vst.msk [vmem:[%s14665_s4 + $0xd4] sm:$0xf] %vm8951_vm2, %v9557_v2  ;;  %v10189_v48 = vpop.f32.mrb[56].mxu1  ;;  %v8201_v45 = vpop.f32.mrb[57].mxu0 }
 0x312   :  { %v8405_v52 = vadd.f32 %v8404_v60, %v8403_v38  ;;  %v14330_v58 = vadd.f32 %v10453_v63, %v10189_v48  ;;  %v5937_v13 = vpop.f32.mrb[57].mxu1  ;;  %v10454_v36 = vpop.f32.mrb[58].mxu0 }
 0x313   :  { %v14334_v4 = vadd.f32 %v8201_v45, %v5937_v13  ;;  %v10190_v32 = vpop.f32.mrb[58].mxu1  ;;  %v8204_v19 = vpop.f32.mrb[59].mxu0 }
 0x314   :  { %v9562_v50 = vpack.c.bf16 %v14330_v58, %v14330_v58  ;;  %v8407_v27 = vadd.f32 %v8406_v16, %v8405_v52  ;;  %v14338_v35 = vadd.f32 %v10454_v36, %v10190_v32  ;;  %v5940_v2 = vpop.f32.mrb[59].mxu1 }
 0x315   :  { %v8408_v38 = vsel %vm8296_vm4, %v14334_v4, 0.0  ;;  %v9560_v60 = vpack.c.bf16 %v14334_v4, %v14334_v4  ;;  %v10520_v48 = vadd.f32 %v8204_v19, %v5940_v2 }
 0x316   :  { %9010 = vst.msk [vmem:[%s14665_s4 + $0xe8] sm:$0xf] %vm8951_vm2, %v9562_v50  ;;  %v8409_v63 = vadd.f32 %v8408_v38, %v8407_v27  ;;  %v9563_v52 = vpack.c.bf16 %v14338_v35, %v14338_v35  ;;  %v8412_v27 = vsel %vm8296_vm4, %v14330_v58, 0.0 }
 0x317   :  { %9008 = vst.msk [vmem:[%s14665_s4 + $0xe0] sm:$0xf] %vm8951_vm2, %v9560_v60  ;;  %v8410_v13 = vsel %vm8296_vm4, %v10520_v48, 0.0  ;;  %v9561_v45 = vpack.c.bf16 %v10520_v48, %v10520_v48  ;;  %v8414_v60 = vsel %vm8296_vm4, %v14338_v35, 0.0 }
 0x318   :  { %9011 = vst.msk [vmem:[%s14665_s4 + $0xec] sm:$0xf] %vm8951_vm2, %v9563_v52  ;;  %v8411_v19 = vadd.f32 %v8410_v13, %v8409_v63  ;;  %v10457_v16 = vpop.f32.mrb[60].mxu0 }
 0x319   :  { %9009 = vst.msk [vmem:[%s14665_s4 + $0xe4] sm:$0xf] %vm8951_vm2, %v9561_v45  ;;  %v10193_v50 = vpop.f32.mrb[60].mxu1  ;;  %v8217_v38 = vpop.f32.mrb[61].mxu0 }
 0x31a   :  { %v8413_v32 = vadd.f32 %v8412_v27, %v8411_v19  ;;  %v10521_v36 = vadd.f32 %v10457_v16, %v10193_v50  ;;  %v5953_v2 = vpop.f32.mrb[61].mxu1  ;;  %v10458_v63 = vpop.f32.mrb[62].mxu0 }
 0x31b   :  { %v10522_v62 = vadd.f32 %v8217_v38, %v5953_v2  ;;  %v10194_v52 = vpop.f32.mrb[62].mxu1  ;;  %v8220_v26 = vpop.f32.mrb[63].mxu0 }
 0x31c   :  { %v9566_v13 = vpack.c.bf16 %v10521_v36, %v10521_v36  ;;  %v8415_v22 = vadd.f32 %v8414_v60, %v8413_v32  ;;  %v10523_v33 = vadd.f32 %v10458_v63, %v10194_v52  ;;  %v5956_v0 = vpop.f32.mrb[63].mxu1 }
 0x31d   :  { %v8416_v51 = vsel %vm8296_vm4, %v10522_v62, 0.0  ;;  %v9564_v45 = vpack.c.bf16 %v10522_v62, %v10522_v62  ;;  %v10524_v12 = vadd.f32 %v8220_v26, %v5956_v0  ;;  %v8420_v26 = vsel %vm8296_vm4, %v10521_v36, 0.0 }
 0x31e   :  { %9014 = vst.msk [vmem:[%s14665_s4 + $0xf8] sm:$0xf] %vm8951_vm2, %v9566_v13  ;;  %v8417_v19 = vadd.f32 %v8416_v51, %v8415_v22  ;;  %v9567_v27 = vpack.c.bf16 %v10523_v33, %v10523_v33  ;;  %v8422_v22 = vsel %vm8296_vm4, %v10523_v33, 0.0 }
 0x31f   :  { %9012 = vst.msk [vmem:[%s14665_s4 + $0xf0] sm:$0xf] %vm8951_vm2, %v9564_v45  ;;  %v8418_v50 = vsel %vm8296_vm4, %v10524_v12, 0.0  ;;  %v9565_v16 = vpack.c.bf16 %v10524_v12, %v10524_v12 }
 0x320   :  { %9015 = vst.msk [vmem:[%s14665_s4 + $0xfc] sm:$0xf] %vm8951_vm2, %v9567_v27  ;;  %v8419_v0 = vadd.f32 %v8418_v50, %v8417_v19 }
 0x321   :  { %9013 = vst.msk [vmem:[%s14665_s4 + $0xf4] sm:$0xf] %vm8951_vm2, %v9565_v16  ;;  %s11055_s4 = smov [#allocation2]  }
 0x322   :  { %v8421_v51 = vadd.f32 %v8420_v26, %v8419_v0  ;;  %s9024_s15 = sshll.u32 %s11055_s4, 4  ;;  %s9025_s15 = int_to_ptr.vmem [resolvable:$true] %s9024_s15 }
 0x323   :  { %s11028_s16 = scalar_lea.vmem %s9025_s15, 32  ;;  %p11033_p1 = scmp.lt.s32.totalorder %s9025_s15, %s9025_s15 }
 0x324   :  { %v8423_v32 = vadd.f32 %v8422_v22, %v8421_v51  ;;  %p11029_p0 = scmp.ne.s32.totalorder %s9025_s15, %s11028_s16  ;;  %p11034_p2 = scmp.lt.s32.totalorder %s11028_s16, %s11028_s16 }
 0x326   :  { %v8424_v2 = vrot.slane %v8423_v32, 4  ;;  %p11035_p3 = por %p11034_p2, %p11033_p1 }
 0x328   :  { %v8425_v38 = vadd.f32 %v8424_v2, %v8423_v32  ;;  %p11036_p4 = pnand %p11035_p3, %p11029_p0 }
 0x32a   :  { %v8426_v60 = vrot.slane %v8425_v38, 2 }
 0x32c   :  { %v8427_v52 = vadd.f32 %v8426_v60, %v8425_v38 }
 0x32e   :  { %v8428_v63 = vrot.slane %v8427_v52, 1 }
 0x330   :  { %v14387_v13 = vadd.f32 %v8428_v63, %v8427_v52 }
 0x332   :  { %v14390_v45 = vmul.f32 0.001953125, %v14387_v13 }
 0x334   :  { %v14394_v19 = vsub.f32 %v14224_v18, %v14390_v45  ;;  %v14398_v27 = vsub.f32 %v14254_v17, %v14390_v45  ;;  %v14402_v50 = vsub.f32 %v14264_v7, %v14390_v45  ;;  %v14406_v16 = vsub.f32 %v14250_v47, %v14390_v45 }
 0x335   :  { %v14410_v0 = vsub.f32 %v14258_v40, %v14390_v45  ;;  %v14414_v18 = vsub.f32 %v14294_v54, %v14390_v45  ;;  %v14418_v17 = vsub.f32 %v14304_v28, %v14390_v45  ;;  %v14422_v7 = vsub.f32 %v14290_v57, %v14390_v45 }
 0x336   :  { %v14426_v47 = vsub.f32 %v14298_v43, %v14390_v45  ;;  %v14430_v40 = vsub.f32 %v14334_v4, %v14390_v45  ;;  %v14433_v26 = vsub.f32 %v10520_v48, %v14390_v45  ;;  %v14437_v54 = vsub.f32 %v14330_v58, %v14390_v45 }
 0x337   :  { %v14441_v28 = vsub.f32 %v14338_v35, %v14390_v45  ;;  %v14444_v57 = vsub.f32 %v10522_v62, %v14390_v45  ;;  %v14447_v43 = vsub.f32 %v10524_v12, %v14390_v45  ;;  %v14450_v4 = vsub.f32 %v10521_v36, %v14390_v45 }
 0x338   :  { %v14453_v48 = vsub.f32 %v10523_v33, %v14390_v45  ;;  %v8431_v58 = vsub.f32 %v13750_v3, %v14390_v45  ;;  %v8432_v51 = vsub.f32 %v13758_v30, %v14390_v45  ;;  %v8433_v35 = vsub.f32 %v13748_v37, %v14390_v45 }
 0x339   :  { %v8434_v62 = vsub.f32 %v13754_v10, %v14390_v45  ;;  %v8435_v36 = vsub.f32 %v13790_v8, %v14390_v45  ;;  %v8436_v33 = vsub.f32 %v13800_v56, %v14390_v45  ;;  %v8437_v37 = vsub.f32 %v13786_v29, %v14390_v45 }
 0x33a   :  { %v8495_v12 = vmul.f32 %v8431_v58, %v8431_v58  ;;  %v8496_v22 = vmul.f32 %v8432_v51, %v8432_v51  ;;  %v8497_v32 = vmul.f32 %v8433_v35, %v8433_v35  ;;  %v8438_v8 = vsub.f32 %v13794_v59, %v14390_v45 }
 0x33b   :  { %v8498_v2 = vmul.f32 %v8434_v62, %v8434_v62  ;;  %v8499_v60 = vmul.f32 %v8435_v36, %v8435_v36  ;;  %v8500_v63 = vmul.f32 %v8436_v33, %v8436_v33  ;;  %v8439_v51 = vsub.f32 %v13832_v41, %v14390_v45 }
 0x33c   :  { %v8559_v3 = vsel %vm8296_vm4, %v8495_v12, 0.0  ;;  %v8560_v30 = vsel %vm8296_vm4, %v8496_v22, 0.0  ;;  %v8562_v10 = vsel %vm8296_vm4, %v8497_v32, 0.0  ;;  %v8501_v35 = vmul.f32 %v8437_v37, %v8437_v37 }
 0x33d   :  { %v8561_v38 = vadd.f32 %v8560_v30, %v8559_v3  ;;  %v8564_v58 = vsel %vm8296_vm4, %v8498_v2, 0.0  ;;  %v8566_v62 = vsel %vm8296_vm4, %v8499_v60, 0.0  ;;  %v8440_v29 = vsub.f32 %v13844_v39, %v14390_v45 }
 0x33e   :  { %v8502_v22 = vmul.f32 %v8438_v8, %v8438_v8  ;;  %v8568_v36 = vsel %vm8296_vm4, %v8500_v63, 0.0  ;;  %v8441_v59 = vsub.f32 %v13827_v20, %v14390_v45  ;;  %v8503_v33 = vmul.f32 %v8439_v51, %v8439_v51 }
 0x33f   :  { %v8563_v52 = vadd.f32 %v8562_v10, %v8561_v38  ;;  %v8570_v2 = vsel %vm8296_vm4, %v8501_v35, 0.0  ;;  %v8442_v41 = vsub.f32 %v13837_v34, %v14390_v45  ;;  %v8504_v30 = vmul.f32 %v8440_v29, %v8440_v29 }
 0x340   :  { %v8572_v38 = vsel %vm8296_vm4, %v8502_v22, 0.0  ;;  %v8443_v39 = vsub.f32 %v13876_v46, %v14390_v45  ;;  %v8505_v60 = vmul.f32 %v8441_v59, %v8441_v59  ;;  %v8574_v10 = vsel %vm8296_vm4, %v8503_v33, 0.0 }
 0x341   :  { %v8565_v56 = vadd.f32 %v8564_v58, %v8563_v52  ;;  %v8444_v20 = vsub.f32 %v13888_v44, %v14390_v45  ;;  %v8506_v8 = vmul.f32 %v8442_v41, %v8442_v41  ;;  %v8576_v63 = vsel %vm8296_vm4, %v8504_v30, 0.0 }
 0x342   :  { %v8445_v34 = vsub.f32 %v13871_v49, %v14390_v45  ;;  %v8578_v51 = vsel %vm8296_vm4, %v8505_v60, 0.0  ;;  %v8446_v46 = vsub.f32 %v13881_v1, %v14390_v45  ;;  %v8447_v44 = vsub.f32 %v13920_v24, %v14390_v45 }
 0x343   :  { %v8567_v12 = vadd.f32 %v8566_v62, %v8565_v56  ;;  %v8507_v56 = vmul.f32 %v8443_v39, %v8443_v39  ;;  %v8508_v62 = vmul.f32 %v8444_v20, %v8444_v20  ;;  %v8448_v49 = vsub.f32 %v13932_v53, %v14390_v45 }
 0x344   :  { %v8509_v22 = vmul.f32 %v8445_v34, %v8445_v34  ;;  %v8510_v59 = vmul.f32 %v8446_v46, %v8446_v46  ;;  %v8449_v1 = vsub.f32 %v13915_v21, %v14390_v45  ;;  %v8450_v24 = vsub.f32 %v13925_v14, %v14390_v45 }
 0x345   :  { %v8569_v32 = vadd.f32 %v8568_v36, %v8567_v12  ;;  %v8580_v12 = vsel %vm8296_vm4, %v8506_v8, 0.0  ;;  %v8582_v36 = vsel %vm8296_vm4, %v8507_v56, 0.0  ;;  %v8584_v33 = vsel %vm8296_vm4, %v8508_v62, 0.0 }
 0x346   :  { %v8586_v41 = vsel %vm8296_vm4, %v8509_v22, 0.0  ;;  %v8451_v53 = vsub.f32 %v13964_v15, %v14390_v45  ;;  %v8513_v60 = vmul.f32 %v8449_v1, %v8449_v1  ;;  %v8452_v21 = vsub.f32 %v13976_v42, %v14390_v45 }
 0x347   :  { %v8571_v3 = vadd.f32 %v8570_v2, %v8569_v32  ;;  %v8514_v20 = vmul.f32 %v8450_v24, %v8450_v24  ;;  %v8453_v14 = vsub.f32 %v13959_v6, %v14390_v45  ;;  %v8454_v15 = vsub.f32 %v13969_v11, %v14390_v45 }
 0x348   :  { %v8594_v34 = vsel %vm8296_vm4, %v8513_v60, 0.0  ;;  %v8455_v42 = vsub.f32 %v14008_v25, %v14390_v45  ;;  %v8456_v6 = vsub.f32 %v14020_v55, %v14390_v45  ;;  %v8457_v11 = vsub.f32 %v14003_v61, %v14390_v45 }
 0x349   :  { %v8573_v37 = vadd.f32 %v8572_v38, %v8571_v3  ;;  %v8511_v3 = vmul.f32 %v8447_v44, %v8447_v44  ;;  %v8512_v38 = vmul.f32 %v8448_v49, %v8448_v49  ;;  %v8517_v62 = vmul.f32 %v8453_v14, %v8453_v14 }
 0x34a   :  { %v8518_v44 = vmul.f32 %v8454_v15, %v8454_v15  ;;  %v8458_v25 = vsub.f32 %v14013_v5, %v14390_v45  ;;  %v8459_v55 = vsub.f32 %v14052_v23, %v14390_v45  ;;  %v8460_v61 = vsub.f32 %v14064_v31, %v14390_v45  ;;  %v15620_v23 = vld [vmem:[#allocation32_spill] sm:$0xff]  ;;  %v15621_v31 = vld [vmem:[#allocation127_spill] sm:$0xff] }
 0x34b   :  { %v8575_v52 = vadd.f32 %v8574_v10, %v8573_v37  ;;  %v8588_v37 = vsel %vm8296_vm4, %v8510_v59, 0.0  ;;  %v8590_v10 = vsel %vm8296_vm4, %v8511_v3, 0.0  ;;  %v8592_v8 = vsel %vm8296_vm4, %v8512_v38, 0.0 }
 0x34c   :  { %v8602_v49 = vsel %vm8296_vm4, %v8517_v62, 0.0  ;;  %v8521_v3 = vmul.f32 %v8457_v11, %v8457_v11  ;;  %v8522_v24 = vmul.f32 %v8458_v25, %v8458_v25  ;;  %v8461_v5 = vsub.f32 %v14047_v9, %v14390_v45  ;;  %v15622_v9 = vld [vmem:[#allocation37_spill] sm:$0xff]  ;;  %v15625_v11 = vld [vmem:[#allocation40_spill] sm:$0xff] }
 0x34d   :  { %v8577_v58 = vadd.f32 %v8576_v63, %v8575_v52 }
 0x34f   :  { %v8579_v35 = vadd.f32 %v8578_v51, %v8577_v58  ;;  %v8515_v58 = vmul.f32 %v8451_v53, %v8451_v53  ;;  %v8516_v51 = vmul.f32 %v8452_v21, %v8452_v21  ;;  %v8610_v53 = vsel %vm8296_vm4, %v8521_v3, 0.0 }
 0x350   :  { %v8612_v21 = vsel %vm8296_vm4, %v8522_v24, 0.0 }
 0x351   :  { %v8581_v29 = vadd.f32 %v8580_v12, %v8579_v35  ;;  %v8596_v35 = vsel %vm8296_vm4, %v8514_v20, 0.0  ;;  %v8598_v12 = vsel %vm8296_vm4, %v8515_v58, 0.0  ;;  %v8600_v22 = vsel %vm8296_vm4, %v8516_v51, 0.0 }
 0x353   :  { %v8583_v32 = vadd.f32 %v8582_v36, %v8581_v29 }
 0x355   :  { %v8585_v2 = vadd.f32 %v8584_v33, %v8583_v32  ;;  %v8519_v32 = vmul.f32 %v8455_v42, %v8455_v42  ;;  %v8520_v33 = vmul.f32 %v8456_v6, %v8456_v6 }
 0x357   :  { %v8587_v30 = vadd.f32 %v8586_v41, %v8585_v2  ;;  %v8604_v2 = vsel %vm8296_vm4, %v8518_v44, 0.0  ;;  %v8606_v41 = vsel %vm8296_vm4, %v8519_v32, 0.0  ;;  %v8608_v38 = vsel %vm8296_vm4, %v8520_v33, 0.0  ;;  %v15626_v33 = vld [vmem:[#allocation84_spill] sm:$0xff] }
 0x358   :  { %v8467_v32 = vsub.f32 %v15625_v11, %v14390_v45 }
 0x359   :  { %v8589_v39 = vadd.f32 %v8588_v37, %v8587_v30 }
 0x35b   :  { %v8591_v52 = vadd.f32 %v8590_v10, %v8589_v39  ;;  %v8523_v39 = vmul.f32 %v8459_v55, %v8459_v55  ;;  %v8462_v10 = vsub.f32 %v15620_v23, %v14390_v45  ;;  %v15629_v23 = vld [vmem:[#allocation85_spill] sm:$0xff] }
 0x35d   :  { %v8593_v63 = vadd.f32 %v8592_v8, %v8591_v52  ;;  %v8524_v52 = vmul.f32 %v8460_v61, %v8460_v61  ;;  %v8463_v8 = vsub.f32 %v15621_v31, %v14390_v45  ;;  %v8614_v14 = vsel %vm8296_vm4, %v8523_v39, 0.0  ;;  %v15630_v31 = vld [vmem:[#allocation87_spill] sm:$0xff] }
 0x35e   :  { %v8531_v61 = vmul.f32 %v8467_v32, %v8467_v32 }
 0x35f   :  { %v8595_v56 = vadd.f32 %v8594_v34, %v8593_v63  ;;  %v8525_v63 = vmul.f32 %v8461_v5, %v8461_v5  ;;  %v8464_v34 = vsub.f32 %v15622_v9, %v14390_v45  ;;  %v8616_v15 = vsel %vm8296_vm4, %v8524_v52, 0.0  ;;  %v15631_v9 = vld [vmem:[#allocation47_spill] sm:$0xff] }
 0x360   :  { %v8527_v42 = vmul.f32 %v8463_v8, %v8463_v8  ;;  %v8472_v8 = vsub.f32 %v15630_v31, %v14390_v45 }
 0x361   :  { %v8597_v46 = vadd.f32 %v8596_v35, %v8595_v56  ;;  %v8526_v56 = vmul.f32 %v8462_v10, %v8462_v10  ;;  %v15623_v35 = vld [vmem:[#allocation33_spill] sm:$0xff]  ;;  %v8618_v62 = vsel %vm8296_vm4, %v8525_v63, 0.0  ;;  %v8528_v44 = vmul.f32 %v8464_v34, %v8464_v34 }
 0x362   :  { %v8471_v10 = vsub.f32 %v15629_v23, %v14390_v45  ;;  %v8473_v34 = vsub.f32 %v15631_v9, %v14390_v45  ;;  %v8548_v9 = vmul.f32 %v14418_v17, %v14418_v17 }
 0x363   :  { %v8599_v29 = vadd.f32 %v8598_v12, %v8597_v46  ;;  %v8465_v46 = vsub.f32 %v15623_v35, %v14390_v45  ;;  %v8624_v55 = vsel %vm8296_vm4, %v8528_v44, 0.0  ;;  %v15632_v35 = vld [vmem:[#allocation129_spill] sm:$0xff] }
 0x364   :  { %v8537_v44 = vmul.f32 %v8473_v34, %v8473_v34 }
 0x365   :  { %v8601_v36 = vadd.f32 %v8600_v22, %v8599_v29  ;;  %v15624_v29 = vld [vmem:[#allocation36_spill] sm:$0xff]  ;;  %v8620_v22 = vsel %vm8296_vm4, %v8526_v56, 0.0  ;;  %v8535_v56 = vmul.f32 %v8471_v10, %v8471_v10 }
 0x366   :  { %v8466_v6 = vsub.f32 %v15624_v29, %v14390_v45  ;;  %v15633_v29 = vld [vmem:[#allocation128_spill] sm:$0xff] }
 0x367   :  { %v8603_v59 = vadd.f32 %v8602_v49, %v8601_v36  ;;  %v8529_v49 = vmul.f32 %v8465_v46, %v8465_v46  ;;  %v8474_v46 = vsub.f32 %v15632_v35, %v14390_v45 }
 0x369   :  { %v8605_v1 = vadd.f32 %v8604_v2, %v8603_v59  ;;  %v8622_v59 = vsel %vm8296_vm4, %v8527_v42, 0.0  ;;  %v8468_v2 = vsub.f32 %v15626_v33, %v14390_v45  ;;  %v8626_v24 = vsel %vm8296_vm4, %v8529_v49, 0.0 }
 0x36a   :  { %v8536_v42 = vmul.f32 %v8472_v8, %v8472_v8  ;;  %v8538_v11 = vmul.f32 %v8474_v46, %v8474_v46  ;;  %v8546_v8 = vmul.f32 %v14410_v0, %v14410_v0  ;;  %v8551_v46 = vmul.f32 %v14430_v40, %v14430_v40 }
 0x36b   :  { %v8607_v30 = vadd.f32 %v8606_v41, %v8605_v1  ;;  %v8530_v1 = vmul.f32 %v8466_v6, %v8466_v6  ;;  %v15627_v41 = vld [vmem:[#allocation38_spill] sm:$0xff]  ;;  %v8532_v39 = vmul.f32 %v8468_v2, %v8468_v2  ;;  %v8475_v6 = vsub.f32 %v15633_v29, %v14390_v45 }
 0x36c   :  { %v8640_v32 = vsel %vm8296_vm4, %v8536_v42, 0.0  ;;  %v8642_v2 = vsel %vm8296_vm4, %v8537_v44, 0.0  ;;  %v8553_v29 = vmul.f32 %v14437_v54, %v14437_v54  ;;  %v8554_v44 = vmul.f32 %v14441_v28, %v14441_v28 }
 0x36d   :  { %v8609_v37 = vadd.f32 %v8608_v38, %v8607_v30  ;;  %v8469_v30 = vsub.f32 %v15627_v41, %v14390_v45  ;;  %v8539_v33 = vmul.f32 %v8475_v6, %v8475_v6  ;;  %v8540_v41 = vmul.f32 %v14394_v19, %v14394_v19 }
 0x36e   :  { %v8544_v19 = vmul.f32 %v14402_v50, %v14402_v50  ;;  %v8676_v54 = vsel %vm8296_vm4, %v8554_v44, 0.0 }
 0x36f   :  { %v8611_v60 = vadd.f32 %v8610_v53, %v8609_v37  ;;  %v15628_v37 = vld [vmem:[#allocation44_spill] sm:$0xff]  ;;  %v8628_v53 = vsel %vm8296_vm4, %v8530_v1, 0.0  ;;  %v8533_v52 = vmul.f32 %v8469_v30, %v8469_v30  ;;  %v8644_v30 = vsel %vm8296_vm4, %v8538_v11, 0.0 }
 0x370   :  { %v8470_v5 = vsub.f32 %v15628_v37, %v14390_v45 }
 0x371   :  { %v8613_v20 = vadd.f32 %v8612_v21, %v8611_v60  ;;  %v8630_v21 = vsel %vm8296_vm4, %v8531_v61, 0.0 }
 0x372   :  { %v8534_v63 = vmul.f32 %v8470_v5, %v8470_v5 }
 0x373   :  { %v8615_v58 = vadd.f32 %v8614_v14, %v8613_v20  ;;  %v8632_v14 = vsel %vm8296_vm4, %v8532_v39, 0.0  ;;  %v8648_v39 = vsel %vm8296_vm4, %v8540_v41, 0.0 }
 0x375   :  { %v8617_v51 = vadd.f32 %v8616_v15, %v8615_v58  ;;  %v8634_v15 = vsel %vm8296_vm4, %v8533_v52, 0.0 }
 0x377   :  { %v8619_v12 = vadd.f32 %v8618_v62, %v8617_v51  ;;  %v8636_v62 = vsel %vm8296_vm4, %v8534_v63, 0.0 }
 0x379   :  { %v8621_v36 = vadd.f32 %v8620_v22, %v8619_v12  ;;  %v8638_v22 = vsel %vm8296_vm4, %v8535_v56, 0.0  ;;  %v8549_v56 = vmul.f32 %v14422_v7, %v14422_v7 }
 0x37b   :  { %v8623_v25 = vadd.f32 %v8622_v59, %v8621_v36  ;;  %v15634_v59 = vld [vmem:[#allocation89_spill] sm:$0xff]  ;;  %v8666_v17 = vsel %vm8296_vm4, %v8549_v56, 0.0 }
 0x37d   :  { %v8625_v3 = vadd.f32 %v8624_v55, %v8623_v25  ;;  %v8477_v25 = vsub.f32 %v15634_v59, %v14390_v45  ;;  %v15635_v55 = vld [vmem:[#allocation91_spill] sm:$0xff]  ;;  %v8557_v59 = vmul.f32 %v14450_v4, %v14450_v4 }
 0x37f   :  { %v8627_v38 = vadd.f32 %v8626_v24, %v8625_v3  ;;  %v8478_v3 = vsub.f32 %v15635_v55, %v14390_v45  ;;  %v8541_v24 = vmul.f32 %v8477_v25, %v8477_v25 }
 0x381   :  { %v8629_v60 = vadd.f32 %v8628_v53, %v8627_v38  ;;  %v8646_v38 = vsel %vm8296_vm4, %v8539_v33, 0.0  ;;  %v8542_v5 = vmul.f32 %v8478_v3, %v8478_v3  ;;  %v8650_v23 = vsel %vm8296_vm4, %v8541_v24, 0.0 }
 0x382   :  { %v8558_v33 = vmul.f32 %v14453_v48, %v14453_v48 }
 0x383   :  { %v8631_v20 = vadd.f32 %v8630_v21, %v8629_v60  ;;  %v8543_v60 = vmul.f32 %v14398_v27, %v14398_v27  ;;  %v8652_v10 = vsel %vm8296_vm4, %v8542_v5, 0.0  ;;  %v8545_v21 = vmul.f32 %v14406_v16, %v14406_v16 }
 0x384   :  { %v8656_v27 = vsel %vm8296_vm4, %v8544_v19, 0.0  ;;  %v8660_v16 = vsel %vm8296_vm4, %v8546_v8, 0.0 }
 0x385   :  { %v8633_v58 = vadd.f32 %v8632_v14, %v8631_v20  ;;  %v8654_v20 = vsel %vm8296_vm4, %v8543_v60, 0.0  ;;  %v8547_v14 = vmul.f32 %v14414_v18, %v14414_v18  ;;  %v8658_v50 = vsel %vm8296_vm4, %v8545_v21, 0.0 }
 0x386   :  { %v8664_v18 = vsel %vm8296_vm4, %v8548_v9, 0.0 }
 0x387   :  { %v8635_v51 = vadd.f32 %v8634_v15, %v8633_v58  ;;  %v8662_v0 = vsel %vm8296_vm4, %v8547_v14, 0.0 }
 0x389   :  { %v8637_v12 = vadd.f32 %v8636_v62, %v8635_v51  ;;  %v8550_v51 = vmul.f32 %v14426_v47, %v14426_v47  ;;  %v8552_v62 = vmul.f32 %v14433_v26, %v14433_v26  ;;  %v8670_v47 = vsel %vm8296_vm4, %v8551_v46, 0.0 }
 0x38a   :  { %v8674_v26 = vsel %vm8296_vm4, %v8553_v29, 0.0 }
 0x38b   :  { %v8639_v36 = vadd.f32 %v8638_v22, %v8637_v12  ;;  %v8668_v7 = vsel %vm8296_vm4, %v8550_v51, 0.0  ;;  %v8672_v40 = vsel %vm8296_vm4, %v8552_v62, 0.0 }
 0x38d   :  { %v8641_v49 = vadd.f32 %v8640_v32, %v8639_v36  ;;  %v8555_v36 = vmul.f32 %v14444_v57, %v14444_v57  ;;  %v8556_v32 = vmul.f32 %v14447_v43, %v14447_v43  ;;  %v8684_v43 = vsel %vm8296_vm4, %v8558_v33, 0.0 }
 0x38f   :  { %v8643_v1 = vadd.f32 %v8642_v2, %v8641_v49  ;;  %v8678_v28 = vsel %vm8296_vm4, %v8555_v36, 0.0  ;;  %v8680_v57 = vsel %vm8296_vm4, %v8556_v32, 0.0 }
 0x391   :  { %v8645_v61 = vadd.f32 %v8644_v30, %v8643_v1  ;;  %v8682_v1 = vsel %vm8296_vm4, %v8557_v59, 0.0 }
 0x393   :  { %v8647_v37 = vadd.f32 %v8646_v38, %v8645_v61 }
 0x395   :  { %v8649_v53 = vadd.f32 %v8648_v39, %v8647_v37 }
 0x397   :  { %v8651_v45 = vadd.f32 %v8650_v23, %v8649_v53 }
 0x399   :  { %v8653_v52 = vadd.f32 %v8652_v10, %v8651_v45 }
 0x39b   :  { %v8655_v31 = vadd.f32 %v8654_v20, %v8653_v52 }
 0x39d   :  { %v8657_v63 = vadd.f32 %v8656_v27, %v8655_v31 }
 0x39f   :  { %v8659_v58 = vadd.f32 %v8658_v50, %v8657_v63 }
 0x3a1   :  { %v8661_v34 = vadd.f32 %v8660_v16, %v8659_v58 }
 0x3a3   :  { %v8663_v15 = vadd.f32 %v8662_v0, %v8661_v34 }
 0x3a5   :  { %v8665_v35 = vadd.f32 %v8664_v18, %v8663_v15 }
 0x3a7   :  { %v8667_v42 = vadd.f32 %v8666_v17, %v8665_v35 }
 0x3a9   :  { %v8669_v12 = vadd.f32 %v8668_v7, %v8667_v42 }
 0x3ab   :  { %v8671_v6 = vadd.f32 %v8670_v47, %v8669_v12 }
 0x3ad   :  { %v8673_v22 = vadd.f32 %v8672_v40, %v8671_v6 }
 0x3af   :  { %v8675_v11 = vadd.f32 %v8674_v26, %v8673_v22 }
 0x3b1   :  { %v8677_v49 = vadd.f32 %v8676_v54, %v8675_v11 }
 0x3b3   :  { %v8679_v25 = vadd.f32 %v8678_v28, %v8677_v49 }
 0x3b5   :  { %v8681_v2 = vadd.f32 %v8680_v57, %v8679_v25 }
 0x3b7   :  { %v8683_v55 = vadd.f32 %v8682_v1, %v8681_v2 }
 0x3b9   :  { %v8685_v3 = vadd.f32 %v8684_v43, %v8683_v55 }
 0x3bb   :  { %v8686_v41 = vrot.slane %v8685_v3, 4 }
 0x3bd   :  { %v8687_v30 = vadd.f32 %v8686_v41, %v8685_v3 }
 0x3bf   :  { %v8688_v61 = vrot.slane %v8687_v30, 2 }
 0x3c1   :  { %v8689_v24 = vadd.f32 %v8688_v61, %v8687_v30 }
 0x3c3   :  { %v8690_v4 = vrot.slane %v8689_v24, 1 }
 0x3c5   :  { %v8691_v38 = vadd.f32 %v8690_v4, %v8689_v24 }
 0x3c7   :  { %v8692_v48 = vsel %vm3272_vm0, %v14387_v13, %v8691_v38 }
 0x3c8   :  { %8694 = vst.msk [vmem:[#allocation2] sm:$0x3] %vm8693_vm7, %v8692_v48 }
 0x3c9   :  { %11039 = shalt.err (!%p11036_p4)
}
 0x3ca   :  { %s11040_s19 = scalar_lea.hbm %s14666_s5, 32 }
 0x3cb   :  { %p11041_p5 = scmp.ne.s32.totalorder %s14666_s5, %s11040_s19  ;;  %p11044_p6 = scmp.lt.u32.totalorder %s11040_s19, %s14666_s5 }
 0x3cd   :  { %p11046_p7 = pnand %p11044_p6, %p11041_p5 }
 0x3cf   :  { %11049 = shalt.err (!%p11046_p7)
}
 0x3d0   :  { %9027 = dma.vmem_to_hbm [thread:$0]  %s9025_s15, 32, %s14666_s5, [#allocation3]  }
 0x3d1   :  { %11050 = dma.done.wait [#allocation3], 32  }
 0x3d2   :  { %11051 = vsyncadd [#allocation3], 4294967264 }
 0x3d3   :  { %9033 = vsyncpa [#allocation3], 1 }

</bundles_post_ra>
